<compile_context>
chip_gen: v7x
topology: tpu7x:2x2x1
jax: 0.10.0
libtpu: 0.0.40
codegen_flags: <defaults>
</compile_context>

<pallas_src>
import math
from functools import partial

import jax
import jax.numpy as jnp
from jax.experimental import pallas as pl
from jax.experimental.pallas import tpu as pltpu

LN_EPS = 1e-5


def _encoder_level_kernel(n_heads, mm_dtype,
                          x_ref, m_ref, mt_ref, wqkv_ref, bqkv_ref,
                          wo_ref, w1_ref, bf1_ref, w2_ref, vecs_ref,
                          o_ref):
    """One grid step: all bz tokens for a tile of spatial positions.

    x_ref    : (L, tile_p, C)  -- L = bz (attention sequence axis)
    m_ref    : (C, H) channel -> head one-hot map;  mt_ref : (H, C) transpose
    wqkv_ref : (C, 3C) fused q|k|v weights (pre-transposed to (in, out))
    bqkv_ref : (1, 3C) fused biases with level_emb folded into the q/k parts
    vecs_ref : (6, C)  rows = [out_proj_b, norm1_w, norm1_b, linear2_b, norm2_w, norm2_b]
    """
    L, TP, C = x_ref.shape
    H = n_heads
    hd = C // H
    scale = 1.0 / math.sqrt(hd)
    N = L * TP          # rows fed to the big matmuls
    M2 = L * L * TP     # rows of the batched (query, key) pair slab

    x = x_ref[...].astype(jnp.float32)          # (L, TP, C), f32 elementwise math
    x2 = x.reshape(N, C)

    # ---- fused QKV projection (one matmul; level_emb already in the bias) ----
    qkv = jnp.dot(x2.astype(mm_dtype), wqkv_ref[...],
                  preferred_element_type=jnp.float32) + bqkv_ref[...]   # (N, 3C)
    q = qkv[:, 0:C] * scale                     # softmax scale hoisted into q
    k = qkv[:, C:2 * C]
    v = qkv[:, 2 * C:3 * C]
    q3 = q.reshape(L, TP, C)
    k3 = k.reshape(L, TP, C)
    v3 = v.reshape(L, TP, C)

    # ---- attention over the L (= bz) axis, per spatial position & head -------
    # all L*L (query, key) pairs stacked into one MXU op: (L*L*TP, C) @ (C, H)
    prod = (q3[:, None, :, :] * k3[None, :, :, :]).reshape(M2, C)
    scores = jnp.dot(prod.astype(mm_dtype), m_ref[...],
                     preferred_element_type=jnp.float32).reshape(L, L, TP, H)

    smax = jnp.max(scores, axis=1, keepdims=True)          # (L, 1, TP, H)
    ex = jnp.exp(scores - smax)                             # (L, L, TP, H)
    inv = pl.reciprocal(jnp.sum(ex, axis=1, keepdims=True), approx=True)
    probs = (ex * inv).reshape(M2, H)

    # broadcast per-head probabilities back to channel groups: (L*L*TP, H)@(H, C)
    pfull = jnp.dot(probs.astype(mm_dtype), mt_ref[...],
                    preferred_element_type=jnp.float32).reshape(L, L, TP, C)
    attn = jnp.sum(pfull * v3[None, :, :, :], axis=1).reshape(N, C)

    bo = vecs_ref[0:1, :]
    attn = jnp.dot(attn.astype(mm_dtype), wo_ref[...],
                   preferred_element_type=jnp.float32) + bo

    # ---- residual + LayerNorm1 (dropout layers are identity, p = 0.0) --------
    y = x2 + attn
    mu = jnp.mean(y, axis=-1, keepdims=True)
    var = jnp.mean(jnp.square(y - mu), axis=-1, keepdims=True)
    y = (y - mu) * jax.lax.rsqrt(var + LN_EPS) * vecs_ref[1:2, :] + vecs_ref[2:3, :]

    # ---- FFN: linear1 -> relu -> linear2 -> residual -> LayerNorm2 -----------
    h1 = jnp.maximum(
        jnp.dot(y.astype(mm_dtype), w1_ref[...],
                preferred_element_type=jnp.float32) + bf1_ref[...], 0.0)
    h2 = jnp.dot(h1.astype(mm_dtype), w2_ref[...],
                 preferred_element_type=jnp.float32) + vecs_ref[3:4, :]
    z = y + h2
    mu2 = jnp.mean(z, axis=-1, keepdims=True)
    var2 = jnp.mean(jnp.square(z - mu2), axis=-1, keepdims=True)
    z = (z - mu2) * jax.lax.rsqrt(var2 + LN_EPS) * vecs_ref[4:5, :] + vecs_ref[5:6, :]

    o_ref[...] = z.reshape(L, TP, C).astype(o_ref.dtype)


def _pick_tile_p(P, L, C, F, in_itemsize, budget_bytes=16 << 20):
    """Largest lane/MXU-friendly tile along P that fits a conservative VMEM budget."""
    # rough per-spatial-position working set: f32 intermediates + double-buffered io
    per_p = 4 * L * (C * (11 + 2 * L) + F) + 4 * in_itemsize * L * C
    cap = max(8, int(budget_bytes // per_p))
    cands = [t for t in range(8, min(P, cap) + 1, 8) if P % t == 0]
    if cands:
        # prefer multiples of 128 (sublane/MXU fill), then >=2 grid steps (v7x has
        # 2 TensorCores), then the largest remaining size.
        return max(cands, key=lambda t: (t % 128 == 0, P // t >= 2, t))
    t = min(cap, max(P, 8), 512)
    return max(8, (t // 8) * 8)


def transformer_encoder_layer_level(src, params, level_emb=0.0, n_heads=8,
                                    tile_p=None, matmul_dtype=jnp.float32):
    """src: NCHW (bz, c, h, w) -> NCHW (bz, c, h, w).

    `level_emb` may be a scalar or a per-channel vector of shape (c,).
    `matmul_dtype=jnp.bfloat16` casts only the matmul operands (f32 accumulation,
    f32 elementwise math) -- recommended on v6e/v7x.
    """
    bz, c, h, w = src.shape
    P = h * w
    assert c % n_heads == 0
    hd = c // n_heads
    d_ffn = params["linear1_w"].shape[0]
    mm = matmul_dtype

    # (bz, c, h, w) -> (bz, h, w, c) -> (L=bz, P=h*w, C)
    x = jnp.transpose(src, (0, 2, 3, 1)).reshape(bz, P, c)

    if tile_p is None:
        tile_p = _pick_tile_p(P, bz, c, d_ffn, jnp.dtype(src.dtype).itemsize)
    P_pad = (-(-P // tile_p)) * tile_p
    if P_pad != P:
        x = jnp.pad(x, ((0, 0), (0, P_pad - P), (0, 0)))

    # fold the (scalar or per-channel) level embedding into the q/k biases:
    # (x + le) @ Wq^T + bq == x @ Wq^T + (bq + le @ Wq^T)   (exact, by linearity)
    le = jnp.broadcast_to(jnp.asarray(level_emb, jnp.float32).reshape(-1), (c,))
    wq, wk, wv = jnp.split(params["in_proj_weight"], 3, axis=0)
    bq, bk, bv = jnp.split(params["in_proj_bias"], 3, axis=0)
    bq = bq + le @ wq.T
    bk = bk + le @ wk.T
    wqkv = jnp.concatenate([wq.T, wk.T, wv.T], axis=1).astype(mm)          # (C, 3C)
    bqkv = jnp.concatenate([bq, bk, bv]).reshape(1, 3 * c).astype(jnp.float32)

    # channel -> head one-hot map (C, H): channel i belongs to head i // hd
    m_map = jnp.repeat(jnp.eye(n_heads, dtype=jnp.float32), hd, axis=0)
    mt_map = m_map.T

    # packed (1, C)-style vectors: fewer inputs / DMAs
    vecs = jnp.stack([params["out_proj_bias"],
                      params["norm1_w"], params["norm1_b"],
                      params["linear2_b"],
                      params["norm2_w"], params["norm2_b"]],
                     axis=0).astype(jnp.float32)                           # (6, C)

    inputs = (
        x,
        m_map.astype(mm), mt_map.astype(mm),
        wqkv, bqkv,
        params["out_proj_weight"].T.astype(mm),
        params["linear1_w"].T.astype(mm),
        params["linear1_b"].reshape(1, -1).astype(jnp.float32),
        params["linear2_w"].T.astype(mm),
        vecs,
    )

    grid = (P_pad // tile_p,)
    x_spec = pl.BlockSpec((bz, tile_p, c), lambda i: (0, i, 0))
    full_specs = [pl.BlockSpec(a.shape, lambda i, nd=a.ndim: (0,) * nd)
                  for a in inputs[1:]]
    out_spec = pl.BlockSpec((bz, tile_p, c), lambda i: (0, i, 0))

    kernel = partial(_encoder_level_kernel, n_heads, mm)
    out = pl.pallas_call(
        kernel,
        out_shape=jax.ShapeDtypeStruct((bz, P_pad, c), src.dtype),
        grid=grid,
        in_specs=[x_spec] + full_specs,
        out_specs=out_spec,
        compiler_params=pltpu.CompilerParams(
            dimension_semantics=("parallel",),
            vmem_limit_bytes=48 * 1024 * 1024),
    )(*inputs)

    out = out[:, :P, :]
    # (bz, P, c) -> (bz, h, w, c) -> NCHW
    return jnp.transpose(out.reshape(bz, h, w, c), (0, 3, 1, 2))


# ---------------- plain-JAX reference (mirrors the PyTorch module) --------------
def _layer_norm(x, g, b):
    mu = jnp.mean(x, axis=-1, keepdims=True)
    var = jnp.mean(jnp.square(x - mu), axis=-1, keepdims=True)
    return (x - mu) / jnp.sqrt(var + LN_EPS) * g + b


def reference_forward(src, params, level_emb, n_heads):
    bz, c, h, w = src.shape
    x = jnp.transpose(src, (0, 2, 3, 1)).reshape(bz, h * w, c)   # (L=bz, N=hw, C)
    qk_in = x + level_emb
    wq, wk, wv = jnp.split(params["in_proj_weight"], 3, axis=0)
    bq, bk, bv = jnp.split(params["in_proj_bias"], 3, axis=0)
    q = qk_in @ wq.T + bq
    k = qk_in @ wk.T + bk
    v = x @ wv.T + bv
    hd = c // n_heads
    sh = lambda t: t.reshape(bz, h * w, n_heads, hd)
    scores = jnp.einsum("inhd,jnhd->nhij", sh(q), sh(k)) / math.sqrt(hd)
    probs = jax.nn.softmax(scores, axis=-1)
    attn = jnp.einsum("nhij,jnhd->inhd", probs, sh(v)).reshape(bz, h * w, c)
    attn = attn @ params["out_proj_weight"].T + params["out_proj_bias"]
    y = _layer_norm(x + attn, params["norm1_w"], params["norm1_b"])
    f = jnp.maximum(y @ params["linear1_w"].T + params["linear1_b"], 0.0)
    f = f @ params["linear2_w"].T + params["linear2_b"]
    z = _layer_norm(y + f, params["norm2_w"], params["norm2_b"])
    return jnp.transpose(z.reshape(bz, h, w, c), (0, 3, 1, 2))


def init_params(key, d_model, d_ffn):
    ks = jax.random.split(key, 8)
    s = 0.05
    return dict(
        in_proj_weight=s * jax.random.normal(ks[0], (3 * d_model, d_model), jnp.float32),
        in_proj_bias=s * jax.random.normal(ks[1], (3 * d_model,), jnp.float32),
        out_proj_weight=s * jax.random.normal(ks[2], (d_model, d_model), jnp.float32),
        out_proj_bias=s * jax.random.normal(ks[3], (d_model,), jnp.float32),
        norm1_w=jnp.ones((d_model,), jnp.float32),
        norm1_b=jnp.zeros((d_model,), jnp.float32),
        linear1_w=s * jax.random.normal(ks[4], (d_ffn, d_model), jnp.float32),
        linear1_b=s * jax.random.normal(ks[5], (d_ffn,), jnp.float32),
        linear2_w=s * jax.random.normal(ks[6], (d_model, d_ffn), jnp.float32),
        linear2_b=s * jax.random.normal(ks[7], (d_model,), jnp.float32),
        norm2_w=jnp.ones((d_model,), jnp.float32),
        norm2_b=jnp.zeros((d_model,), jnp.float32),
    )


if __name__ == "__main__":
    key = jax.random.PRNGKey(0)
    # small but lane-dense shapes: d_model multiple of 128 keeps output stores dense
    bz, c, h, w = 2, 128, 16, 16          # d_model=128, P=256
    d_ffn, n_heads = 256, 4
    params = init_params(key, c, d_ffn)
    src = jax.random.normal(jax.random.fold_in(key, 99), (bz, c, h, w), jnp.float32)
    # learned per-channel level embedding (the real module's case)
    level_emb = 0.02 * jax.random.normal(jax.random.fold_in(key, 7), (c,), jnp.float32)

    ref = reference_forward(src, params, level_emb, n_heads)

    # f32 path (tile_p auto-derived -> 128, grid of 2 steps)
    out = transformer_encoder_layer_level(src, params, level_emb=level_emb,
                                          n_heads=n_heads)
    out = jax.block_until_ready(out)
    assert out.shape == src.shape
    err = float(jnp.max(jnp.abs(out - ref)))
    assert jnp.allclose(out, ref, atol=5e-3, rtol=5e-3), f"f32 max abs err = {err}"

    # bf16 matmul-input path (recommended on v6e/v7x); elementwise math stays f32.
    out_bf16 = transformer_encoder_layer_level(src, params, level_emb=level_emb,
                                               n_heads=n_heads,
                                               matmul_dtype=jnp.bfloat16)
    out_bf16 = jax.block_until_ready(out_bf16)
    err_bf16 = float(jnp.max(jnp.abs(out_bf16 - ref)))
    assert err_bf16 < 0.25, f"bf16 max abs err = {err_bf16}"

    print("KERNEL_OK")
</pallas_src>

<mosaic_0001>
module attributes {stable_mosaic.version = 11 : i64} {
  func.func @_encoder_level_kernel(%arg0: i32, %arg1: memref<2x128x128xf32, #tpu.memory_space<vmem>>, %arg2: memref<128x4xf32, #tpu.memory_space<vmem>>, %arg3: memref<4x128xf32, #tpu.memory_space<vmem>>, %arg4: memref<128x384xf32, #tpu.memory_space<vmem>>, %arg5: memref<1x384xf32, #tpu.memory_space<vmem>>, %arg6: memref<128x128xf32, #tpu.memory_space<vmem>>, %arg7: memref<128x256xf32, #tpu.memory_space<vmem>>, %arg8: memref<1x256xf32, #tpu.memory_space<vmem>>, %arg9: memref<256x128xf32, #tpu.memory_space<vmem>>, %arg10: memref<6x128xf32, #tpu.memory_space<vmem>>, %arg11: memref<2x128x128xf32, #tpu.memory_space<vmem>>) attributes {dimension_semantics = [#tpu.dimension_semantics<parallel>], iteration_bounds = array<i64: 2>, scalar_prefetch = 0 : i64, scratch_operands = 0 : i64, tpu.core_type = #tpu.core_type<tc>, window_params = [{transform_indices = @transform_0, window_bounds = array<i64: 2, 128, 128>}, {pipeline_mode = #tpu.pipeline_mode<synchronous>, transform_indices = @transform_1, window_bounds = array<i64: 128, 4>}, {pipeline_mode = #tpu.pipeline_mode<synchronous>, transform_indices = @transform_2, window_bounds = array<i64: 4, 128>}, {pipeline_mode = #tpu.pipeline_mode<synchronous>, transform_indices = @transform_3, window_bounds = array<i64: 128, 384>}, {pipeline_mode = #tpu.pipeline_mode<synchronous>, transform_indices = @transform_4, window_bounds = array<i64: 1, 384>}, {pipeline_mode = #tpu.pipeline_mode<synchronous>, transform_indices = @transform_5, window_bounds = array<i64: 128, 128>}, {pipeline_mode = #tpu.pipeline_mode<synchronous>, transform_indices = @transform_6, window_bounds = array<i64: 128, 256>}, {pipeline_mode = #tpu.pipeline_mode<synchronous>, transform_indices = @transform_7, window_bounds = array<i64: 1, 256>}, {pipeline_mode = #tpu.pipeline_mode<synchronous>, transform_indices = @transform_8, window_bounds = array<i64: 256, 128>}, {pipeline_mode = #tpu.pipeline_mode<synchronous>, transform_indices = @transform_9, window_bounds = array<i64: 6, 128>}, {transform_indices = @transform_10, window_bounds = array<i64: 2, 128, 128>}]} {
    %c0 = arith.constant 0 : index
    %c0_0 = arith.constant 0 : index
    %c0_1 = arith.constant 0 : index
    %0 = vector.load %arg1[%c0, %c0_0, %c0_1] : memref<2x128x128xf32, #tpu.memory_space<vmem>>, vector<2x128x128xf32>
    %1 = vector.shape_cast %0 : vector<2x128x128xf32> to vector<256x128xf32>
    %c0_2 = arith.constant 0 : index
    %c0_3 = arith.constant 0 : index
    %2 = vector.load %arg4[%c0_2, %c0_3] : memref<128x384xf32, #tpu.memory_space<vmem>>, vector<128x384xf32>
    %cst = arith.constant dense<0.000000e+00> : vector<256x384xf32>
    %3 = tpu.matmul %1, %2, %cst {dimension_numbers = #tpu.dot_dimension_numbers<[1], [0], [0], [1], [0, 0, 1, 1], [], []>} : vector<256x128xf32>, vector<128x384xf32>, vector<256x384xf32> -> vector<256x384xf32>
    %c0_4 = arith.constant 0 : index
    %c0_5 = arith.constant 0 : index
    %4 = vector.load %arg5[%c0_4, %c0_5] : memref<1x384xf32, #tpu.memory_space<vmem>>, vector<1x384xf32>
    %5 = vector.broadcast %4 : vector<1x384xf32> to vector<256x384xf32>
    %6 = arith.addf %3, %5 : vector<256x384xf32>
    %7 = vector.extract_strided_slice %6 {offsets = [0, 0], sizes = [256, 128], strides = [1, 1]} : vector<256x384xf32> to vector<256x128xf32>
    %cst_6 = arith.constant 0.176776692 : f32
    %8 = vector.broadcast %cst_6 : f32 to vector<256x128xf32>
    %9 = arith.mulf %7, %8 : vector<256x128xf32>
    %10 = vector.extract_strided_slice %6 {offsets = [0, 128], sizes = [256, 128], strides = [1, 1]} : vector<256x384xf32> to vector<256x128xf32>
    %11 = vector.extract_strided_slice %6 {offsets = [0, 256], sizes = [256, 128], strides = [1, 1]} : vector<256x384xf32> to vector<256x128xf32>
    %12 = vector.shape_cast %9 : vector<256x128xf32> to vector<2x128x128xf32>
    %13 = vector.shape_cast %10 : vector<256x128xf32> to vector<2x128x128xf32>
    %14 = vector.shape_cast %11 : vector<256x128xf32> to vector<2x128x128xf32>
    %15 = vector.shape_cast %12 : vector<2x128x128xf32> to vector<2x1x128x128xf32>
    %16 = vector.shape_cast %13 : vector<2x128x128xf32> to vector<1x2x128x128xf32>
    %17 = vector.broadcast %15 : vector<2x1x128x128xf32> to vector<2x2x128x128xf32>
    %18 = vector.broadcast %16 : vector<1x2x128x128xf32> to vector<2x2x128x128xf32>
    %19 = arith.mulf %17, %18 : vector<2x2x128x128xf32>
    %20 = vector.shape_cast %19 : vector<2x2x128x128xf32> to vector<512x128xf32>
    %c0_7 = arith.constant 0 : index
    %c0_8 = arith.constant 0 : index
    %21 = vector.load %arg2[%c0_7, %c0_8] : memref<128x4xf32, #tpu.memory_space<vmem>>, vector<128x4xf32>
    %cst_9 = arith.constant dense<0.000000e+00> : vector<512x4xf32>
    %22 = tpu.matmul %20, %21, %cst_9 {dimension_numbers = #tpu.dot_dimension_numbers<[1], [0], [0], [1], [0, 0, 1, 1], [], []>} : vector<512x128xf32>, vector<128x4xf32>, vector<512x4xf32> -> vector<512x4xf32>
    %23 = vector.shape_cast %22 : vector<512x4xf32> to vector<2x2x128x4xf32>
    %cst_10 = arith.constant dense<0xFF800000> : vector<2x128x4xf32>
    %24 = vector.multi_reduction <maximumf>, %23, %cst_10 [1] : vector<2x2x128x4xf32> to vector<2x128x4xf32>
    %25 = vector.shape_cast %24 : vector<2x128x4xf32> to vector<2x1x128x4xf32>
    %26 = vector.broadcast %25 : vector<2x1x128x4xf32> to vector<2x2x128x4xf32>
    %27 = arith.subf %23, %26 : vector<2x2x128x4xf32>
    %28 = math.exp %27 : vector<2x2x128x4xf32>
    %cst_11 = arith.constant dense<0.000000e+00> : vector<2x128x4xf32>
    %29 = vector.multi_reduction <add>, %28, %cst_11 [1] : vector<2x2x128x4xf32> to vector<2x128x4xf32>
    %30 = vector.shape_cast %29 : vector<2x128x4xf32> to vector<2x1x128x4xf32>
    %31 = tpu.reciprocal %30 {approx = true} : vector<2x1x128x4xf32> -> vector<2x1x128x4xf32>
    %32 = vector.broadcast %31 : vector<2x1x128x4xf32> to vector<2x2x128x4xf32>
    %33 = arith.mulf %28, %32 : vector<2x2x128x4xf32>
    %34 = vector.shape_cast %33 : vector<2x2x128x4xf32> to vector<512x4xf32>
    %c0_12 = arith.constant 0 : index
    %c0_13 = arith.constant 0 : index
    %35 = vector.load %arg3[%c0_12, %c0_13] : memref<4x128xf32, #tpu.memory_space<vmem>>, vector<4x128xf32>
    %cst_14 = arith.constant dense<0.000000e+00> : vector<512x128xf32>
    %36 = tpu.matmul %34, %35, %cst_14 {dimension_numbers = #tpu.dot_dimension_numbers<[1], [0], [0], [1], [0, 0, 1, 1], [], []>} : vector<512x4xf32>, vector<4x128xf32>, vector<512x128xf32> -> vector<512x128xf32>
    %37 = vector.shape_cast %36 : vector<512x128xf32> to vector<2x2x128x128xf32>
    %38 = vector.shape_cast %14 : vector<2x128x128xf32> to vector<1x2x128x128xf32>
    %39 = vector.broadcast %38 : vector<1x2x128x128xf32> to vector<2x2x128x128xf32>
    %40 = arith.mulf %37, %39 : vector<2x2x128x128xf32>
    %cst_15 = arith.constant dense<0.000000e+00> : vector<2x128x128xf32>
    %41 = vector.multi_reduction <add>, %40, %cst_15 [1] : vector<2x2x128x128xf32> to vector<2x128x128xf32>
    %42 = vector.shape_cast %41 : vector<2x128x128xf32> to vector<256x128xf32>
    %c0_16 = arith.constant 0 : index
    %c0_17 = arith.constant 0 : index
    %43 = vector.load %arg10[%c0_16, %c0_17] : memref<6x128xf32, #tpu.memory_space<vmem>>, vector<1x128xf32>
    %c0_18 = arith.constant 0 : index
    %c0_19 = arith.constant 0 : index
    %44 = vector.load %arg6[%c0_18, %c0_19] : memref<128x128xf32, #tpu.memory_space<vmem>>, vector<128x128xf32>
    %cst_20 = arith.constant dense<0.000000e+00> : vector<256x128xf32>
    %45 = tpu.matmul %42, %44, %cst_20 {dimension_numbers = #tpu.dot_dimension_numbers<[1], [0], [0], [1], [0, 0, 1, 1], [], []>} : vector<256x128xf32>, vector<128x128xf32>, vector<256x128xf32> -> vector<256x128xf32>
    %46 = vector.broadcast %43 : vector<1x128xf32> to vector<256x128xf32>
    %47 = arith.addf %45, %46 : vector<256x128xf32>
    %48 = arith.addf %1, %47 : vector<256x128xf32>
    %cst_21 = arith.constant dense<0.000000e+00> : vector<256xf32>
    %49 = vector.multi_reduction <add>, %48, %cst_21 [1] : vector<256x128xf32> to vector<256xf32>
    %50 = vector.shape_cast %49 : vector<256xf32> to vector<256x1xf32>
    %cst_22 = arith.constant 1.280000e+02 : f32
    %51 = vector.broadcast %cst_22 : f32 to vector<256x1xf32>
    %52 = arith.divf %50, %51 : vector<256x1xf32>
    %53 = vector.broadcast %52 : vector<256x1xf32> to vector<256x128xf32>
    %54 = arith.subf %48, %53 : vector<256x128xf32>
    %55 = arith.mulf %54, %54 : vector<256x128xf32>
    %cst_23 = arith.constant dense<0.000000e+00> : vector<256xf32>
    %56 = vector.multi_reduction <add>, %55, %cst_23 [1] : vector<256x128xf32> to vector<256xf32>
    %57 = vector.shape_cast %56 : vector<256xf32> to vector<256x1xf32>
    %cst_24 = arith.constant 1.280000e+02 : f32
    %58 = vector.broadcast %cst_24 : f32 to vector<256x1xf32>
    %59 = arith.divf %57, %58 : vector<256x1xf32>
    %60 = vector.broadcast %52 : vector<256x1xf32> to vector<256x128xf32>
    %61 = arith.subf %48, %60 : vector<256x128xf32>
    %cst_25 = arith.constant 9.99999974E-6 : f32
    %62 = vector.broadcast %cst_25 : f32 to vector<256x1xf32>
    %63 = arith.addf %59, %62 : vector<256x1xf32>
    %64 = math.rsqrt %63 : vector<256x1xf32>
    %65 = vector.broadcast %64 : vector<256x1xf32> to vector<256x128xf32>
    %66 = arith.mulf %61, %65 : vector<256x128xf32>
    %c1 = arith.constant 1 : index
    %c0_26 = arith.constant 0 : index
    %67 = vector.load %arg10[%c1, %c0_26] : memref<6x128xf32, #tpu.memory_space<vmem>>, vector<1x128xf32>
    %68 = vector.broadcast %67 : vector<1x128xf32> to vector<256x128xf32>
    %69 = arith.mulf %66, %68 : vector<256x128xf32>
    %c2 = arith.constant 2 : index
    %c0_27 = arith.constant 0 : index
    %70 = vector.load %arg10[%c2, %c0_27] : memref<6x128xf32, #tpu.memory_space<vmem>>, vector<1x128xf32>
    %71 = vector.broadcast %70 : vector<1x128xf32> to vector<256x128xf32>
    %72 = arith.addf %69, %71 : vector<256x128xf32>
    %c0_28 = arith.constant 0 : index
    %c0_29 = arith.constant 0 : index
    %73 = vector.load %arg7[%c0_28, %c0_29] : memref<128x256xf32, #tpu.memory_space<vmem>>, vector<128x256xf32>
    %cst_30 = arith.constant dense<0.000000e+00> : vector<256x256xf32>
    %74 = tpu.matmul %72, %73, %cst_30 {dimension_numbers = #tpu.dot_dimension_numbers<[1], [0], [0], [1], [0, 0, 1, 1], [], []>} : vector<256x128xf32>, vector<128x256xf32>, vector<256x256xf32> -> vector<256x256xf32>
    %c0_31 = arith.constant 0 : index
    %c0_32 = arith.constant 0 : index
    %75 = vector.load %arg8[%c0_31, %c0_32] : memref<1x256xf32, #tpu.memory_space<vmem>>, vector<1x256xf32>
    %76 = vector.broadcast %75 : vector<1x256xf32> to vector<256x256xf32>
    %77 = arith.addf %74, %76 : vector<256x256xf32>
    %cst_33 = arith.constant 0.000000e+00 : f32
    %78 = vector.broadcast %cst_33 : f32 to vector<256x256xf32>
    %79 = arith.maximumf %77, %78 : vector<256x256xf32>
    %c0_34 = arith.constant 0 : index
    %c0_35 = arith.constant 0 : index
    %80 = vector.load %arg9[%c0_34, %c0_35] : memref<256x128xf32, #tpu.memory_space<vmem>>, vector<256x128xf32>
    %cst_36 = arith.constant dense<0.000000e+00> : vector<256x128xf32>
    %81 = tpu.matmul %79, %80, %cst_36 {dimension_numbers = #tpu.dot_dimension_numbers<[1], [0], [0], [1], [0, 0, 1, 1], [], []>} : vector<256x256xf32>, vector<256x128xf32>, vector<256x128xf32> -> vector<256x128xf32>
    %c3 = arith.constant 3 : index
    %c0_37 = arith.constant 0 : index
    %82 = vector.load %arg10[%c3, %c0_37] : memref<6x128xf32, #tpu.memory_space<vmem>>, vector<1x128xf32>
    %83 = vector.broadcast %82 : vector<1x128xf32> to vector<256x128xf32>
    %84 = arith.addf %81, %83 : vector<256x128xf32>
    %85 = arith.addf %72, %84 : vector<256x128xf32>
    %cst_38 = arith.constant dense<0.000000e+00> : vector<256xf32>
    %86 = vector.multi_reduction <add>, %85, %cst_38 [1] : vector<256x128xf32> to vector<256xf32>
    %87 = vector.shape_cast %86 : vector<256xf32> to vector<256x1xf32>
    %cst_39 = arith.constant 1.280000e+02 : f32
    %88 = vector.broadcast %cst_39 : f32 to vector<256x1xf32>
    %89 = arith.divf %87, %88 : vector<256x1xf32>
    %90 = vector.broadcast %89 : vector<256x1xf32> to vector<256x128xf32>
    %91 = arith.subf %85, %90 : vector<256x128xf32>
    %92 = arith.mulf %91, %91 : vector<256x128xf32>
    %cst_40 = arith.constant dense<0.000000e+00> : vector<256xf32>
    %93 = vector.multi_reduction <add>, %92, %cst_40 [1] : vector<256x128xf32> to vector<256xf32>
    %94 = vector.shape_cast %93 : vector<256xf32> to vector<256x1xf32>
    %cst_41 = arith.constant 1.280000e+02 : f32
    %95 = vector.broadcast %cst_41 : f32 to vector<256x1xf32>
    %96 = arith.divf %94, %95 : vector<256x1xf32>
    %97 = vector.broadcast %89 : vector<256x1xf32> to vector<256x128xf32>
    %98 = arith.subf %85, %97 : vector<256x128xf32>
    %cst_42 = arith.constant 9.99999974E-6 : f32
    %99 = vector.broadcast %cst_42 : f32 to vector<256x1xf32>
    %100 = arith.addf %96, %99 : vector<256x1xf32>
    %101 = math.rsqrt %100 : vector<256x1xf32>
    %102 = vector.broadcast %101 : vector<256x1xf32> to vector<256x128xf32>
    %103 = arith.mulf %98, %102 : vector<256x128xf32>
    %c4 = arith.constant 4 : index
    %c0_43 = arith.constant 0 : index
    %104 = vector.load %arg10[%c4, %c0_43] : memref<6x128xf32, #tpu.memory_space<vmem>>, vector<1x128xf32>
    %105 = vector.broadcast %104 : vector<1x128xf32> to vector<256x128xf32>
    %106 = arith.mulf %103, %105 : vector<256x128xf32>
    %c5 = arith.constant 5 : index
    %c0_44 = arith.constant 0 : index
    %107 = vector.load %arg10[%c5, %c0_44] : memref<6x128xf32, #tpu.memory_space<vmem>>, vector<1x128xf32>
    %108 = vector.broadcast %107 : vector<1x128xf32> to vector<256x128xf32>
    %109 = arith.addf %106, %108 : vector<256x128xf32>
    %110 = vector.shape_cast %109 : vector<256x128xf32> to vector<2x128x128xf32>
    %c0_45 = arith.constant 0 : index
    %c0_46 = arith.constant 0 : index
    %c0_47 = arith.constant 0 : index
    %111 = vector.load %arg11[%c0_45, %c0_46, %c0_47] : memref<2x128x128xf32, #tpu.memory_space<vmem>>, vector<2x128x128xf32>
    tpu.vector_store %arg11[%c0_45, %c0_46, %c0_47], %110 {strides = array<i32>} : memref<2x128x128xf32, #tpu.memory_space<vmem>>, vector<2x128x128xf32>,
    return
  }
  func.func @transform_0(%arg0: i32) -> (i32, i32, i32) {
    %c0_i32 = arith.constant 0 : i32
    %c0_i32_0 = arith.constant 0 : i32
    %c0_i32_1 = arith.constant 0 : i32
    return %c0_i32, %arg0, %c0_i32_0 : i32, i32, i32
  }
  func.func @transform_1(%arg0: i32) -> (i32, i32) {
    %c0_i32 = arith.constant 0 : i32
    %c0_i32_0 = arith.constant 0 : i32
    %c0_i32_1 = arith.constant 0 : i32
    return %c0_i32, %c0_i32_0 : i32, i32
  }
  func.func @transform_2(%arg0: i32) -> (i32, i32) {
    %c0_i32 = arith.constant 0 : i32
    %c0_i32_0 = arith.constant 0 : i32
    %c0_i32_1 = arith.constant 0 : i32
    return %c0_i32, %c0_i32_0 : i32, i32
  }
  func.func @transform_3(%arg0: i32) -> (i32, i32) {
    %c0_i32 = arith.constant 0 : i32
    %c0_i32_0 = arith.constant 0 : i32
    %c0_i32_1 = arith.constant 0 : i32
    return %c0_i32, %c0_i32_0 : i32, i32
  }
  func.func @transform_4(%arg0: i32) -> (i32, i32) {
    %c0_i32 = arith.constant 0 : i32
    %c0_i32_0 = arith.constant 0 : i32
    %c0_i32_1 = arith.constant 0 : i32
    return %c0_i32, %c0_i32_0 : i32, i32
  }
  func.func @transform_5(%arg0: i32) -> (i32, i32) {
    %c0_i32 = arith.constant 0 : i32
    %c0_i32_0 = arith.constant 0 : i32
    %c0_i32_1 = arith.constant 0 : i32
    return %c0_i32, %c0_i32_0 : i32, i32
  }
  func.func @transform_6(%arg0: i32) -> (i32, i32) {
    %c0_i32 = arith.constant 0 : i32
    %c0_i32_0 = arith.constant 0 : i32
    %c0_i32_1 = arith.constant 0 : i32
    return %c0_i32, %c0_i32_0 : i32, i32
  }
  func.func @transform_7(%arg0: i32) -> (i32, i32) {
    %c0_i32 = arith.constant 0 : i32
    %c0_i32_0 = arith.constant 0 : i32
    %c0_i32_1 = arith.constant 0 : i32
    return %c0_i32, %c0_i32_0 : i32, i32
  }
  func.func @transform_8(%arg0: i32) -> (i32, i32) {
    %c0_i32 = arith.constant 0 : i32
    %c0_i32_0 = arith.constant 0 : i32
    %c0_i32_1 = arith.constant 0 : i32
    return %c0_i32, %c0_i32_0 : i32, i32
  }
  func.func @transform_9(%arg0: i32) -> (i32, i32) {
    %c0_i32 = arith.constant 0 : i32
    %c0_i32_0 = arith.constant 0 : i32
    %c0_i32_1 = arith.constant 0 : i32
    return %c0_i32, %c0_i32_0 : i32, i32
  }
  func.func @transform_10(%arg0: i32) -> (i32, i32, i32) {
    %c0_i32 = arith.constant 0 : i32
    %c0_i32_0 = arith.constant 0 : i32
    %c0_i32_1 = arith.constant 0 : i32
    return %c0_i32, %arg0, %c0_i32_0 : i32, i32, i32
  }
}

</mosaic_0001>

<bundles_post_ra>
// kernel: tpu_custom_call.1
= control target key start
LH: loop header
LB: loop body
LE: loop exit
PB: predicated region body
PF: predicated region fallthrough
CT: control target
= control target key end

     0   :  { %s8984_s0 = inlined_call_operand.hbm [shape: f32[2,256,128], index: 0, kind: input, shape index: {}]   ;;  %s8985_s1 = inlined_call_operand.vmem [shape: f32[128,4], index: 1, kind: input, shape index: {}]   ;;  %s8986_s2 = inlined_call_operand.vmem [shape: f32[4,128], index: 2, kind: input, shape index: {}]   ;;  %s8987_s3 = inlined_call_operand.hbm [shape: f32[128,384], index: 3, kind: input, shape index: {}]   ;;  %s8988_s4 = inlined_call_operand.vmem [shape: f32[1,384], index: 4, kind: input, shape index: {}]   ;;  %s8989_s5 = inlined_call_operand.vmem [shape: f32[128,128], index: 5, kind: input, shape index: {}]   ;;  %s8990_s6 = inlined_call_operand.hbm [shape: f32[128,256], index: 6, kind: input, shape index: {}]   ;;  %s8991_s7 = inlined_call_operand.vmem [shape: f32[1,256], index: 7, kind: input, shape index: {}]   ;;  %s8992_s8 = inlined_call_operand.hbm [shape: f32[256,128], index: 8, kind: input, shape index: {}]   ;;  %s8993_s9 = inlined_call_operand.vmem [shape: f32[6,128], index: 9, kind: input, shape index: {}]   ;;  %s8994_s10 = inlined_call_operand.hbm [shape: f32[2,256,128], index: 10, kind: output, shape index: {}]  }
   0x1   :  { %9010 = sst [smem:[#allocation50_spill]] %s8987_s3 }
   0x2   :  { %9011 = sst [smem:[#allocation51_spill]] %s8991_s7 }
   0x3   :  { %9012 = sst [smem:[#allocation52_spill]] %s8994_s10 }
   0x4   :  { %15 = vsyncpa [#allocation3], 0 }
   0x5   :  { %17 = vsyncpa [#allocation3 + $0x1], 0 }
   0x6   :  { %18 = vsyncpa [#allocation6], 0 }
   0x7   :  { %19 = vsyncpa [#allocation9], 0 }
   0x8   :  { %20 = vsyncpa [#allocation4], 0 }
   0x9   :  { %22 = vsyncpa [#allocation4 + $0x1], 0  ;;  %s6251_s13 = smov 0   ;;  %s6253_s14 = smov 0  }
   0xa   :  { %s6255_s15 = smov 0   ;;  %s6257_s16 = smov 0  }
   0xb LB: > { %9013 = sst [smem:[#allocation20_spill]] %s6158_s13  ;;  %s6272_s17 = sadd.s32 4294967295, %s6170_s16   ;;  %s6170_s16 = sphi %s6257_s16, %s9093_s16   ;;  %s6166_s15 = sphi %s6255_s15, %s9097_s15   ;;  %s6162_s14 = sphi %s6253_s14, %s9096_s14   ;;  %s6158_s13 = sphi %s6251_s13, %s9095_s13  }
   0xc   : > { %s4651_s18 = sadd.s32 4294967294, %s6170_s16   ;;  %s6276_s19 = sadd.s32 1, %s6170_s16  }
   0xd   : > { %9014 = sst [smem:[#allocation21_spill]] %s6276_s19  ;;  %s35_s20 = sadd.s32 1, %s6166_s15 }
   0xe   : > { %s32_s21 = ssub.s32 %s6170_s16, %s6276_s19  ;;  %p42_p0 = scmp.ne.s32.totalorder %s6166_s15, %s6162_s14 }
   0xf   : > { %p33_p1 = scmp.eq.s32.totalorder %s32_s21, 0  ;;  %p43_p2 = scmp.eq.s32.totalorder %s6170_s16, 0 }
  0x10   : > { %p48_p3 = scmp.ne.s32.totalorder %s6162_s14, %s6158_s13  ;;  %p8998_p4 = scmp.eq.s32.totalorder %s6272_s17, 0 }
  0x11   : > { %s6288_s22 = scalar_select %p33_p1, %s6166_s15, %s35_s20  }
  0x12   : > { %p6290_p5 = por %p43_p2, %p42_p0  ;;  %p6296_p6 = por %p8998_p4, %p48_p3 }
  0x13   : > { %9015 = sst [smem:[#allocation22_spill]] %s6288_s22  ;;  %p261_p7 = scmp.eq.s32.totalorder %s6272_s17, 1 }
  0x14   : > { %s9016_s23 = scalar_select %p6290_p5, 1, 0 }
  0x15   : > { %s9017_s24 = scalar_select %p6296_p6, 1, 0 }
  0x16   : > { %p267_p8 = scmp.eq.s32.totalorder %s4651_s18, 1  ;;  %p4652_p9 = scmp.ge.s32.totalorder %s6170_s16, 1 }
  0x17   : > { %p274_p10 = scmp.lt.s32.totalorder %s6170_s16, 3  ;;  %p6303_p11 = por %p261_p7, %p42_p0 }
  0x18   : > { %p6307_p12 = por %p267_p8, %p48_p3  ;;  %s6172_s28 = smov [#allocation5]  }
  0x19   : > { %s9018_s25 = scalar_select %p6303_p11, 1, 0 }
  0x1a   : > { %s9020_s26 = scalar_select %p6307_p12, 1, 0 }
  0x1b   : > { %9019 = sst [smem:[#allocation23_spill]] %s9018_s25  ;;  %p6311_p13 = pnand %p4652_p9, %p274_p10 }
  0x1c   : > { %9021 = sst [smem:[#allocation24_spill]] %s9020_s26  ;;  %s292_s29 = sshll.u32 %s6172_s28, 4  ;;  %s293_s29 = int_to_ptr.vmem [resolvable:$true] %s292_s29 }
  0x1d   : > { %s9022_s27 = scalar_select %p6311_p13, 1, 0 }
  0x1e   : > { %p5610_p1 = pneg %p6311_p13  ;;  %s6173_s11 = smov [#allocation7]  }
  0x1f   : > { %s311_s12 = sshll.u32 %s6173_s11, 4  ;;  %s9024_s3 = sld [smem:[#allocation50_spill]]  ;;  %s6323_s12 = int_to_ptr.vmem [resolvable:$true] %s311_s12 }
  0x20   : > { %p6319_p2 = pnand %p5610_p1, %p8998_p4 }
  0x22   : > { %p6333_p3 = pneg %p6319_p2 }
  0x25   : > { %s6040_s21 = scalar_lea.hbm %s9024_s3, 6144 }
  0x26   : > { %p6041_p0 = scmp.ne.s32.totalorder %s9024_s3, %s6040_s21  ;;  %p6047_p9 = scmp.lt.u32.totalorder %s6040_s21, %s9024_s3 }
  0x28   : > { %p6043_p7 = pnand %p6333_p3, %p6041_p0 }
  0x2a   : > { %p6044_p8 = pneg %p6043_p7 }
  0x2c   : > { %p6049_p10 = pnand %p6047_p9, %p6044_p8 }
  0x2e   : > { %6052 = shalt.err (!%p6049_p10)
}
  0x2f   : > { %s6053_s18 = scalar_lea.vmem %s293_s29, 6144  ;;  %p6061_p11 = scmp.lt.s32.totalorder %s293_s29, %s293_s29 }
  0x30   : > { %p6054_p1 = scmp.ne.s32.totalorder %s293_s29, %s6053_s18  ;;  %p6062_p6 = scmp.lt.s32.totalorder %s6053_s18, %s6053_s18 }
  0x32   : > { %p6056_p4 = pnand %p6054_p1, %p6333_p3  ;;  %p6063_p13 = por %p6062_p6, %p6061_p11 }
  0x34   : > { %p6057_p12 = pneg %p6056_p4 }
  0x36   : > { %p6064_p5 = pnand %p6063_p13, %p6057_p12 }
  0x38   : > { %6067 = shalt.err (!%p6064_p5)
}
  0x39   : > { %s6174_s19 = smov 384   ;;  %s6175_s22 = smov 24  }
  0x3a   : > { %5613 = dma.hbm_to_vmem [thread:$0]  (!%p6319_p2), %s9024_s3, 6144, %s293_s29, [#allocation6], %s6174_s19, %s6174_s19, %s6175_s22  }
  0x3b   : > { %s6068_s13 = scalar_lea.hbm %s8990_s6, 4096 }
  0x3c   : > { %p6069_p4 = scmp.ne.s32.totalorder %s8990_s6, %s6068_s13  ;;  %p6075_p11 = scmp.lt.u32.totalorder %s6068_s13, %s8990_s6 }
  0x3e   : > { %p6071_p6 = pnand %p6069_p4, %p6333_p3 }
  0x40   : > { %p6072_p5 = pneg %p6071_p6 }
  0x42   : > { %p6077_p12 = pnand %p6075_p11, %p6072_p5 }
  0x44   : > { %6080 = shalt.err (!%p6077_p12)
}
  0x45   : > { %s6081_s29 = scalar_lea.vmem %s6323_s12, 4096  ;;  %p6089_p8 = scmp.lt.s32.totalorder %s6323_s12, %s6323_s12 }
  0x46   : > { %p6082_p13 = scmp.ne.s32.totalorder %s6323_s12, %s6081_s29  ;;  %p6090_p9 = scmp.lt.s32.totalorder %s6081_s29, %s6081_s29 }
  0x48   : > { %p6084_p0 = pnand %p6082_p13, %p6333_p3  ;;  %p6091_p10 = por %p6090_p9, %p6089_p8 }
  0x4a   : > { %p6085_p7 = pneg %p6084_p0 }
  0x4c   : > { %p6092_p1 = pnand %p6091_p10, %p6085_p7 }
  0x4e   : > { %6095 = shalt.err (!%p6092_p1)
}
  0x4f   : > { %s6176_s10 = smov 256   ;;  %s6177_s7 = smov 16  }
  0x50   : > { %5616 = dma.hbm_to_vmem [thread:$0]  (!%p6319_p2), %s8990_s6, 4096, %s6323_s12, [#allocation6], %s6176_s10, %s6176_s10, %s6177_s7  }
  0x51   : > { %s6178_s19 = smov [#allocation8]   ;;  %s6096_s21 = scalar_lea.hbm %s8992_s8, 4096 }
  0x52   : > { %s327_s22 = sshll.u32 %s6178_s19, 4  ;;  %p6097_p4 = scmp.ne.s32.totalorder %s8992_s8, %s6096_s21  ;;  %s328_s22 = int_to_ptr.vmem [resolvable:$true] %s327_s22 }
  0x53   : > { %p6103_p11 = scmp.lt.u32.totalorder %s6096_s21, %s8992_s8 }
  0x54   : > { %p6099_p6 = pnand %p6097_p4, %p6333_p3 }
  0x56   : > { %p6100_p5 = pneg %p6099_p6 }
  0x58   : > { %p6105_p12 = pnand %p6103_p11, %p6100_p5 }
  0x5a   : > { %6108 = shalt.err (!%p6105_p12)
}
  0x5b   : > { %s6109_s12 = scalar_lea.vmem %s328_s22, 4096  ;;  %p6117_p8 = scmp.lt.s32.totalorder %s328_s22, %s328_s22 }
  0x5c   : > { %p6110_p13 = scmp.ne.s32.totalorder %s328_s22, %s6109_s12  ;;  %p6118_p9 = scmp.lt.s32.totalorder %s6109_s12, %s6109_s12 }
  0x5e   : > { %p6112_p0 = pnand %p6110_p13, %p6333_p3  ;;  %p6119_p10 = por %p6118_p9, %p6117_p8 }
  0x60   : > { %p6113_p7 = pneg %p6112_p0 }
  0x62   : > { %p6120_p1 = pnand %p6119_p10, %p6113_p7 }
  0x64   : > { %6123 = shalt.err (!%p6120_p1)
}
  0x65   : > { %s6179_s10 = smov 128   ;;  %s6180_s7 = smov 8  }
  0x66   : > { %5619 = dma.hbm_to_vmem [thread:$0]  (!%p6319_p2), %s8992_s8, 4096, %s328_s22, [#allocation9], %s6179_s10, %s6179_s10, %s6180_s7  }
  0x67   : > { %p4656_p4 = scmp.ge.s32.totalorder %s6170_s16, 2 }
  0x69   : > { %340 = sbr.rel (%p4656_p4) target bundleno = 127 (0x7f), region = 52 }
  0x70   : > { %s344_s28 = sand.u32 1, %s6166_s15   ;;  %s4744_s25 = sshll.u32 %s6170_s16, 11 }
  0x71   : > { %s4657_s30 = sshll.u32 %s344_s28, 8  ;;  %s354_s22 = scalar_lea.hbm %s8984_s0, %s4744_s25 }
  0x72   : > { %p9026_p2 = scmp.ne.s32.totalorder %s9016_s23, 0  ;;  %s348_s21 = scalar_lea.vmem [#allocation2], %s4657_s30 }
  0x73   : > { %s367_s11 = sshll.u32 %s348_s21, 4  ;;  %s6181_s29 = smov 4096   ;;  %s368_s11 = int_to_ptr.vmem [resolvable:$true] %s367_s11 }
  0x74   : > { %s5587_s20 = scalar_select %p9026_p2, [#allocation0], [#allocation15] }
  0x75   : > { %5588 = sst [smem:[#allocation12]] (%p9026_p2), %s6181_s29  ;;  %s6182_s12 = smov 2048  }
  0x76   : > { %s359_s18 = sld [smem:[%s5587_s20]]   ;;  %s6183_s10 = smov 16  }
  0x77   : > { %5589 = sst [smem:[#allocation12 + $0x1]] (%p9026_p2), %s6182_s12  ;;  %s6184_s7 = smov 128  }
  0x78   : > { %5590 = sst [smem:[#allocation12 + $0x2]] (%p9026_p2), %s6183_s10  ;;  %s6185_s3 = smov 8  }
  0x79   : > { %5591 = sst [smem:[#allocation12 + $0x3]] (%p9026_p2), %s6184_s7  ;;  %s345_s30 = scalar_lea.sflag [#allocation3], %s344_s28 }
  0x7a   : > { %5592 = sst [smem:[#allocation12 + $0x4]] (%p9026_p2), %s6184_s7  ;;  %s6186_s19 = smov [#allocation11]  }
  0x7b   : > { %5593 = sst [smem:[#allocation12 + $0x5]] (%p9026_p2), %s6185_s3 }
  0x7c   : > { %s4660_s13 = sshll.u32 %s359_s18, 26 }
  0x7d   : > { %s4661_s25 = sadd.s32 134217728, %s4660_s13 }
  0x7e   : > { %5594 = dma.general (%p9026_p2), %s354_s22, 4096, %s368_s11, %s345_s30, %s6186_s19, [#allocation12], %s4661_s25, 0  }
  0x7f PF: > { %p9027_p3 = scmp.ne.s32.totalorder %s9022_s27, 0 }
  0x81   : > { %392 = sbr.rel (%p9027_p3) target bundleno = 2418 (0x972), region = 60 }
  0x88   : > { %s6417_s26 = sand.u32 1, %s6162_s14   ;;  %p9028_p6 = scmp.ne.s32.totalorder %s9017_s24, 0 }
  0x89   : > { %s4663_s20 = sshll.u32 %s6417_s26, 8  ;;  %s395_s21 = scalar_lea.sflag [#allocation3], %s6417_s26 }
  0x8a   : > { %s6423_s18 = scalar_lea.vmem [#allocation2], %s4663_s20 }
  0x8b   : > { %6141 = dma.done.wait (%p9028_p6), %s395_s21, 4096  }
  0x8c   : > { %6143 = vsyncadd (%p9028_p6), %s395_s21, 4294963200  ;;  %p9029_p5 = scmp.eq.s32.totalorder %s6272_s17, 0 }
  0x8e   : > { %6145 = dma.done.wait (%p9029_p5), [#allocation6], 10240   ;;  %p9030_p11 = pmov %p9029_p5 }
  0x8f   : > { %p9031_p12 = pmov %p9029_p5 }
  0x90   : > { %6147 = vsyncadd (%p9030_p11), [#allocation6], 4294957056 }
  0x91   : > { %6149 = dma.done.wait (%p9031_p12), [#allocation9], 4096   ;;  %p9032_p13 = pmov %p9029_p5 }
  0x92   : > { %v9008_v0 = vmov 0.0   ;;  %v482_v1 = vld [vmem:[#allocation5 + $0x8] sm:$0xff]  ;;  %v485_v2 = vld [vmem:[#allocation5 + $0x20] sm:$0xff]  ;;  %v484_v5 = vld [vmem:[#allocation5 + $0x18] sm:$0xff]  ;;  %vm2199_vm0 = vcmask 1043456   ;;  %vm1525_vm1 = vcmask 31744  }
  0x93   : > { %6151 = vsyncadd (%p9032_p13), [#allocation9], 4294963200  ;;  %610 = vmatprep.mubr.f32.mxu0 %v9008_v0  ;;  %v481_v3 = vld [vmem:[#allocation5] sm:$0xff]  ;;  %v5373_v4 = vpack.c.bf16 %v485_v2, %v482_v1  ;;  %v488_v6 = vld [vmem:[#allocation5 + $0x38] sm:$0xff]  ;;  %s9084_s30 = sld [smem:[#allocation51_spill]]  ;;  %s8820_s22 = scalar_lea.vmem [#allocation10], %s4663_s20 }
  0x94   : > { %v491_v7 = vld [vmem:[#allocation5 + $0x50] sm:$0xff]  ;;  %v5375_v8 = vpack.c.bf16 %v484_v5, %v481_v3  ;;  %v490_v11 = vld [vmem:[#allocation5 + $0x48] sm:$0xff]  ;;  %v497_v13 = vld [vmem:[#allocation5 + $0x80] sm:$0xff]  ;;  %s4507_s20 = scalar_lea.sflag [#allocation4], %s6417_s26 }
  0x95   : > { %v5377_v9 = vpack.c.bf16 %v491_v7, %v488_v6  ;;  %v487_v10 = vld [vmem:[#allocation5 + $0x30] sm:$0xff]  ;;  %v494_v12 = vld [vmem:[#allocation5 + $0x68] sm:$0xff]  ;;  %5374 = vmatprep.subr.bf16.mxu0 %v5373_v4  ;;  %v493_v16 = vld [vmem:[#allocation5 + $0x60] sm:$0xff] }
  0x96   : > { %5376 = vmatpush1.bf16.msra.mxu0 %v5375_v8  ;;  %v5379_v14 = vpack.c.bf16 %v490_v11, %v487_v10  ;;  %v5381_v15 = vpack.c.bf16 %v497_v13, %v494_v12  ;;  %v496_v17 = vld [vmem:[#allocation5 + $0x78] sm:$0xff]  ;;  %v503_v19 = vld [vmem:[#allocation5 + $0xb0] sm:$0xff]  ;;  %v502_v23 = vld [vmem:[#allocation5 + $0xa8] sm:$0xff] }
  0x97   : > { %5378 = vmatprep.subr.bf16.mxu0 %v5377_v9  ;;  %v500_v18 = vld [vmem:[#allocation5 + $0x98] sm:$0xff]  ;;  %v5383_v20 = vpack.c.bf16 %v496_v17, %v493_v16  ;;  %v499_v22 = vld [vmem:[#allocation5 + $0x90] sm:$0xff]  ;;  %v506_v24 = vld [vmem:[#allocation5 + $0xc8] sm:$0xff] }
  0x98   : > { %v5385_v21 = vpack.c.bf16 %v503_v19, %v500_v18  ;;  %v509_v25 = vld [vmem:[#allocation5 + $0xe0] sm:$0xff]  ;;  %v5387_v27 = vpack.c.bf16 %v502_v23, %v499_v22  ;;  %v508_v30 = vld [vmem:[#allocation5 + $0xd8] sm:$0xff]  ;;  %v515_v32 = vld [vmem:[#allocation5 + $0x110] sm:$0xff] }
  0x99   : > { %v449_v26 = vld [vmem:[%s6423_s18] sm:$0xff]  ;;  %v5389_v28 = vpack.c.bf16 %v509_v25, %v506_v24  ;;  %v512_v31 = vld [vmem:[#allocation5 + $0xf8] sm:$0xff]  ;;  %v511_v35 = vld [vmem:[#allocation5 + $0xf0] sm:$0xff] }
  0x9a   : > { %5380 = vmatpush1.bf16.msra.mxu0 %v5379_v14  ;;  %5019 = vmatprep.mubr.f32.mxu1 %v449_v26  ;;  %v505_v29 = vld [vmem:[#allocation5 + $0xc0] sm:$0xff]  ;;  %v5393_v34 = vpack.c.bf16 %v515_v32, %v512_v31  ;;  %v514_v36 = vld [vmem:[#allocation5 + $0x108] sm:$0xff]  ;;  %v520_v42 = vld [vmem:[#allocation5 + $0x138] sm:$0xff] }
  0x9b   : > { %5382 = vmatprep.subr.bf16.mxu0 %v5381_v15  ;;  %v5391_v33 = vpack.c.bf16 %v508_v30, %v505_v29  ;;  %v518_v37 = vld [vmem:[#allocation5 + $0x128] sm:$0xff]  ;;  %v521_v38 = vld [vmem:[#allocation5 + $0x140] sm:$0xff]  ;;  %v5395_v39 = vpack.c.bf16 %v514_v36, %v511_v35  ;;  %v524_v43 = vld [vmem:[#allocation5 + $0x158] sm:$0xff] }
  0x9c   : > { %v5397_v40 = vpack.c.bf16 %v521_v38, %v518_v37  ;;  %v517_v41 = vld [vmem:[#allocation5 + $0x120] sm:$0xff]  ;;  %v527_v44 = vld [vmem:[#allocation5 + $0x170] sm:$0xff]  ;;  %v526_v48 = vld [vmem:[#allocation5 + $0x168] sm:$0xff] }
  0x9d   : > { %v5399_v45 = vpack.c.bf16 %v520_v42, %v517_v41  ;;  %v5401_v46 = vpack.c.bf16 %v527_v44, %v524_v43  ;;  %v523_v47 = vld [vmem:[#allocation5 + $0x150] sm:$0xff]  ;;  %v486_v51 = vld [vmem:[#allocation5 + $0x28] sm:$0xff]  ;;  %v489_v53 = vld [vmem:[#allocation5 + $0x40] sm:$0xff] }
  0x9e   : > { %5384 = vmatpush1.bf16.msra.mxu0 %v5383_v20  ;;  %v5403_v49 = vpack.c.bf16 %v526_v48, %v523_v47  ;;  %v483_v50 = vld [vmem:[#allocation5 + $0x10] sm:$0xff]  ;;  %v492_v54 = vld [vmem:[#allocation5 + $0x58] sm:$0xff]  ;;  %v498_v57 = vld [vmem:[#allocation5 + $0x88] sm:$0xff] }
  0x9f   : > { %5386 = vmatprep.subr.bf16.mxu0 %v5385_v21  ;;  %v5405_v52 = vpack.c.bf16 %v486_v51, %v483_v50  ;;  %v495_v55 = vld [vmem:[#allocation5 + $0x70] sm:$0xff]  ;;  %v5409_v56 = vpack.c.bf16 %v492_v54, %v489_v53  ;;  %v501_v59 = vld [vmem:[#allocation5 + $0xa0] sm:$0xff]  ;;  %v504_v60 = vld [vmem:[#allocation5 + $0xb8] sm:$0xff] }
  0xa0   : > { %v5413_v58 = vpack.c.bf16 %v498_v57, %v495_v55  ;;  %v450_v61 = vld [vmem:[%s6423_s18 + $0x8] sm:$0xff]  ;;  %v5417_v62 = vpack.c.bf16 %v504_v60, %v501_v59  ;;  %v507_v63 = vld [vmem:[#allocation5 + $0xd0] sm:$0xff]  ;;  %v513_v4 = vld [vmem:[#allocation5 + $0x100] sm:$0xff] }
  0xa1   : > { %5406 = vmatprep.subr.bf16.mxu1 %v5405_v52  ;;  %v510_v1 = vld [vmem:[#allocation5 + $0xe8] sm:$0xff]  ;;  %v451_v2 = vld [vmem:[%s6423_s18 + $0x10] sm:$0xff]  ;;  %v516_v5 = vld [vmem:[#allocation5 + $0x118] sm:$0xff] }
  0xa2   : > { %5388 = vmatpush1.bf16.msra.mxu0 %v5387_v27  ;;  %5408 = vmatpush3.bf16.msra.mxu1 %v5405_v52  ;;  %v5421_v3 = vpack.c.bf16 %v510_v1, %v507_v63  ;;  %v452_v6 = vld [vmem:[%s6423_s18 + $0x18] sm:$0xff]  ;;  %v5425_v7 = vpack.c.bf16 %v516_v5, %v513_v4  ;;  %v519_v8 = vld [vmem:[#allocation5 + $0x130] sm:$0xff]  ;;  %v522_v9 = vld [vmem:[#allocation5 + $0x148] sm:$0xff] }
  0xa3   : > { %5390 = vmatprep.subr.bf16.mxu0 %v5389_v28  ;;  %5410 = vmatprep.subr.bf16.mxu1 %v5409_v56  ;;  %v453_v10 = vld [vmem:[%s6423_s18 + $0x20] sm:$0xff]  ;;  %v5429_v11 = vpack.c.bf16 %v522_v9, %v519_v8  ;;  %v528_v13 = vld [vmem:[#allocation5 + $0x178] sm:$0xff]  ;;  %v454_v14 = vld [vmem:[%s6423_s18 + $0x28] sm:$0xff] }
  0xa4   : > { %v525_v12 = vld [vmem:[#allocation5 + $0x160] sm:$0xff]  ;;  %v1125_v17 = vld [vmem:[%s8985_s1 + $0x8] sm:$0xff]  ;;  %v455_v18 = vld [vmem:[%s6423_s18 + $0x30] sm:$0xff] }
  0xa5   : > { %v5433_v15 = vpack.c.bf16 %v528_v13, %v525_v12  ;;  %v1124_v16 = vld [vmem:[%s8985_s1] sm:$0xff]  ;;  %v1126_v20 = vld [vmem:[%s8985_s1 + $0x10] sm:$0xff]  ;;  %v1127_v21 = vld [vmem:[%s8985_s1 + $0x18] sm:$0xff] }
  0xa6   : > { %5392 = vmatpush1.bf16.msra.mxu0 %v5391_v33  ;;  %5412 = vmatpush3.bf16.msra.mxu1 %v5409_v56  ;;  %v5437_v19 = vpack.c.bf16 %v1125_v17, %v1124_v16  ;;  %v456_v22 = vld [vmem:[%s6423_s18 + $0x38] sm:$0xff]  ;;  %v5441_v23 = vpack.c.bf16 %v1127_v21, %v1126_v20  ;;  %v1128_v24 = vld [vmem:[%s8985_s1 + $0x20] sm:$0xff]  ;;  %v1129_v25 = vld [vmem:[%s8985_s1 + $0x28] sm:$0xff] }
  0xa7   : > { %5394 = vmatprep.subr.bf16.mxu0 %v5393_v34  ;;  %5414 = vmatprep.subr.bf16.mxu1 %v5413_v58  ;;  %v5445_v27 = vpack.c.bf16 %v1129_v25, %v1128_v24  ;;  %v1130_v28 = vld [vmem:[%s8985_s1 + $0x30] sm:$0xff]  ;;  %v1131_v29 = vld [vmem:[%s8985_s1 + $0x38] sm:$0xff]  ;;  %v458_v30 = vld [vmem:[%s6423_s18 + $0x48] sm:$0xff] }
  0xa8   : > { %v5449_v31 = vpack.c.bf16 %v1131_v29, %v1130_v28  ;;  %v1132_v32 = vld [vmem:[%s8985_s1 + $0x40] sm:$0xff]  ;;  %v1133_v33 = vld [vmem:[%s8985_s1 + $0x48] sm:$0xff]  ;;  %v459_v34 = vld [vmem:[%s6423_s18 + $0x50] sm:$0xff] }
  0xa9   : > { %v5453_v35 = vpack.c.bf16 %v1133_v33, %v1132_v32  ;;  %v1134_v36 = vld [vmem:[%s8985_s1 + $0x50] sm:$0xff]  ;;  %v1135_v37 = vld [vmem:[%s8985_s1 + $0x58] sm:$0xff]  ;;  %v462_v41 = vld [vmem:[%s6423_s18 + $0x68] sm:$0xff] }
  0xaa   : > { %5396 = vmatpush1.bf16.msra.mxu0 %v5395_v39  ;;  %5416 = vmatpush3.bf16.msra.mxu1 %v5413_v58  ;;  %v460_v38 = vld [vmem:[%s6423_s18 + $0x58] sm:$0xff]  ;;  %v5457_v39 = vpack.c.bf16 %v1135_v37, %v1134_v36  ;;  %v463_v42 = vld [vmem:[%s6423_s18 + $0x70] sm:$0xff]  ;;  %v465_v44 = vld [vmem:[%s6423_s18 + $0x80] sm:$0xff] }
  0xab   : > { %5398 = vmatprep.subr.bf16.mxu0 %v5397_v40  ;;  %5418 = vmatprep.subr.bf16.mxu1 %v5417_v62  ;;  %v461_v40 = vld [vmem:[%s6423_s18 + $0x60] sm:$0xff]  ;;  %v464_v43 = vld [vmem:[%s6423_s18 + $0x78] sm:$0xff]  ;;  %v471_v50 = vld [vmem:[%s6423_s18 + $0xb0] sm:$0xff] }
  0xac   : > { %v468_v47 = vld [vmem:[%s6423_s18 + $0x98] sm:$0xff]  ;;  %v469_v48 = vld [vmem:[%s6423_s18 + $0xa0] sm:$0xff]  ;;  %v474_v53 = vld [vmem:[%s6423_s18 + $0xc8] sm:$0xff] }
  0xad   : > { %v472_v51 = vld [vmem:[%s6423_s18 + $0xb8] sm:$0xff]  ;;  %v473_v52 = vld [vmem:[%s6423_s18 + $0xc0] sm:$0xff]  ;;  %v475_v54 = vld [vmem:[%s6423_s18 + $0xd0] sm:$0xff] }
  0xae   : > { %5400 = vmatpush1.bf16.msra.mxu0 %v5399_v45  ;;  %5420 = vmatpush3.bf16.msra.mxu1 %v5417_v62  ;;  %v466_v45 = vld [vmem:[%s6423_s18 + $0x88] sm:$0xff]  ;;  %v476_v55 = vld [vmem:[%s6423_s18 + $0xd8] sm:$0xff]  ;;  %v477_v56 = vld [vmem:[%s6423_s18 + $0xe0] sm:$0xff] }
  0xaf   : > { %5402 = vmatprep.subr.bf16.mxu0 %v5401_v46  ;;  %5422 = vmatprep.subr.bf16.mxu1 %v5421_v3  ;;  %v467_v46 = vld [vmem:[%s6423_s18 + $0x90] sm:$0xff]  ;;  %v1136_v57 = vld [vmem:[%s8985_s1 + $0x60] sm:$0xff]  ;;  %v1137_v58 = vld [vmem:[%s8985_s1 + $0x68] sm:$0xff] }
  0xb0   : > { %v478_v59 = vld [vmem:[%s6423_s18 + $0xe8] sm:$0xff]  ;;  %v5461_v60 = vpack.c.bf16 %v1137_v58, %v1136_v57  ;;  %v1138_v62 = vld [vmem:[%s8985_s1 + $0x70] sm:$0xff]  ;;  %v1139_v63 = vld [vmem:[%s8985_s1 + $0x78] sm:$0xff] }
  0xb1   : > { %v480_v1 = vld [vmem:[%s6423_s18 + $0xf8] sm:$0xff] }
  0xb2   : > { %5404 = vmatpush1.bf16.msra.mxu0 %v5403_v49  ;;  %5424 = vmatpush3.bf16.msra.mxu1 %v5421_v3  ;;  %v470_v49 = vld [vmem:[%s6423_s18 + $0xa8] sm:$0xff]  ;;  %v531_v3 = vlaneseq }
  0xb3   : > { %5426 = vmatprep.subr.bf16.mxu1 %v5425_v7 }
  0xb4   : > { %v6549_v4 = vshrl.u32 %v531_v3, 7 }
  0xb5   : > { %611 = vmatmul.mubr.f32.vlgmr.msra.gmra.mrb[0].mxu0 %v449_v26  ;;  %v457_v26 = vld [vmem:[%s6423_s18 + $0x40] sm:$0xff] }
  0xb6   : > { %616 = vmatprep.mubr.f32.mxu0 %v9008_v0  ;;  %5428 = vmatpush3.bf16.msra.mxu1 %v5425_v7  ;;  %v9007_v5 = vsub.s32 0, %v6549_v4  ;;  %v9006_v7 = vsub.s32 1, %v6549_v4 }
  0xb7   : > { %5430 = vmatprep.subr.bf16.mxu1 %v5429_v11 }
  0xb9   : > { %617 = vmatmul.mubr.f32.gmra.mrb[2].mxu0 %v450_v61 }
  0xba   : > { %622 = vmatprep.mubr.f32.mxu0 %v9008_v0  ;;  %5432 = vmatpush3.bf16.msra.mxu1 %v5429_v11 }
  0xbb   : > { %5434 = vmatprep.subr.bf16.mxu1 %v5433_v15 }
  0xbd   : > { %623 = vmatmul.mubr.f32.gmra.mrb[4].mxu0 %v451_v2 }
  0xbe   : > { %628 = vmatprep.mubr.f32.mxu0 %v9008_v0  ;;  %5436 = vmatpush3.bf16.msra.mxu1 %v5433_v15 }
  0xbf   : > { %5438 = vmatprep.subr.bf16.mxu1 %v5437_v19 }
  0xc1   : > { %629 = vmatmul.mubr.f32.gmra.mrb[6].mxu0 %v452_v6  ;;  %5020 = vmatmul.mubr.f32.vlgmr.msra.gmra.mrb[0].mxu1 %v450_v61  ;;  %v479_v61 = vld [vmem:[%s6423_s18 + $0xf0] sm:$0xff] }
  0xc2   : > { %634 = vmatprep.mubr.f32.mxu0 %v9008_v0  ;;  %5022 = vmatprep.mubr.f32.mxu1 %v451_v2  ;;  %v5465_v2 = vpack.c.bf16 %v1139_v63, %v1138_v62 }
  0xc3   : > { %5440 = vmatpush3.bf16.msra.mxu1 %v5437_v19 }
  0xc4   : > { %5442 = vmatprep.subr.bf16.mxu1 %v5441_v23 }
  0xc5   : > { %635 = vmatmul.mubr.f32.gmra.mrb[8].mxu0 %v453_v10  ;;  %5023 = vmatmul.mubr.f32.gmra.mrb[2].mxu1 %v452_v6  ;;  %v529_v6 = vld [vmem:[%s8988_s4] sm:$0x7] }
  0xc6   : > { %640 = vmatprep.mubr.f32.mxu0 %v9008_v0  ;;  %5025 = vmatprep.mubr.f32.mxu1 %v453_v10  ;;  %v6558_v8 = vrot.slane %v529_v6, %v9007_v5  ;;  %v6562_v9 = vrot.slane %v529_v6, %v9006_v7 }
  0xc7   : > { %5444 = vmatpush3.bf16.msra.mxu1 %v5441_v23 }
  0xc8   : > { %5446 = vmatprep.subr.bf16.mxu1 %v5445_v27 }
  0xc9   : > { %641 = vmatmul.mubr.f32.gmra.mrb[10].mxu0 %v454_v14  ;;  %5026 = vmatmul.mubr.f32.gmra.mrb[4].mxu1 %v454_v14 }
  0xca   : > { %646 = vmatprep.mubr.f32.mxu0 %v9008_v0  ;;  %5028 = vmatprep.mubr.f32.mxu1 %v455_v18 }
  0xcb   : > { %5448 = vmatpush3.bf16.msra.mxu1 %v5445_v27 }
  0xcc   : > { %5450 = vmatprep.subr.bf16.mxu1 %v5449_v31 }
  0xcd   : > { %647 = vmatmul.mubr.f32.gmra.mrb[12].mxu0 %v455_v18  ;;  %5029 = vmatmul.mubr.f32.gmra.mrb[6].mxu1 %v456_v22 }
  0xce   : > { %652 = vmatprep.mubr.f32.mxu0 %v9008_v0  ;;  %5031 = vmatprep.mubr.f32.mxu1 %v457_v26 }
  0xcf   : > { %5452 = vmatpush3.bf16.msra.mxu1 %v5449_v31 }
  0xd0   : > { %5454 = vmatprep.subr.bf16.mxu1 %v5453_v35 }
  0xd1   : > { %653 = vmatmul.mubr.f32.gmra.mrb[14].mxu0 %v456_v22  ;;  %5032 = vmatmul.mubr.f32.gmra.mrb[8].mxu1 %v458_v30 }
  0xd2   : > { %658 = vmatprep.mubr.f32.mxu0 %v9008_v0  ;;  %5034 = vmatprep.mubr.f32.mxu1 %v459_v34 }
  0xd3   : > { %5456 = vmatpush3.bf16.msra.mxu1 %v5453_v35 }
  0xd4   : > { %5458 = vmatprep.subr.bf16.mxu1 %v5457_v39 }
  0xd5   : > { %659 = vmatmul.mubr.f32.gmra.mrb[16].mxu0 %v457_v26  ;;  %5035 = vmatmul.mubr.f32.gmra.mrb[10].mxu1 %v460_v38 }
  0xd6   : > { %664 = vmatprep.mubr.f32.mxu0 %v9008_v0  ;;  %5037 = vmatprep.mubr.f32.mxu1 %v461_v40 }
  0xd7   : > { %5460 = vmatpush3.bf16.msra.mxu1 %v5457_v39 }
  0xd8   : > { %5462 = vmatprep.subr.bf16.mxu1 %v5461_v60 }
  0xd9   : > { %665 = vmatmul.mubr.f32.gmra.mrb[18].mxu0 %v458_v30  ;;  %5038 = vmatmul.mubr.f32.gmra.mrb[12].mxu1 %v462_v41 }
  0xda   : > { %670 = vmatprep.mubr.f32.mxu0 %v9008_v0  ;;  %5040 = vmatprep.mubr.f32.mxu1 %v463_v42 }
  0xdb   : > { %5464 = vmatpush3.bf16.msra.mxu1 %v5461_v60 }
  0xdc   : > { %5466 = vmatprep.subr.bf16.mxu1 %v5465_v2 }
  0xdd   : > { %671 = vmatmul.mubr.f32.gmra.mrb[20].mxu0 %v459_v34  ;;  %5041 = vmatmul.mubr.f32.gmra.mrb[14].mxu1 %v464_v43 }
  0xde   : > { %676 = vmatprep.mubr.f32.mxu0 %v9008_v0  ;;  %5043 = vmatprep.mubr.f32.mxu1 %v465_v44 }
  0xdf   : > { %5468 = vmatpush3.bf16.msra.mxu1 %v5465_v2 }
  0xe1   : > { %677 = vmatmul.mubr.f32.gmra.mrb[22].mxu0 %v460_v38  ;;  %5044 = vmatmul.mubr.f32.gmra.mrb[16].mxu1 %v466_v45 }
  0xe2   : > { %682 = vmatprep.mubr.f32.mxu0 %v9008_v0  ;;  %5046 = vmatprep.mubr.f32.mxu1 %v467_v46 }
  0xe5   : > { %683 = vmatmul.mubr.f32.gmra.mrb[24].mxu0 %v461_v40  ;;  %5047 = vmatmul.mubr.f32.gmra.mrb[18].mxu1 %v468_v47 }
  0xe6   : > { %688 = vmatprep.mubr.f32.mxu0 %v9008_v0  ;;  %5049 = vmatprep.mubr.f32.mxu1 %v469_v48 }
  0xe9   : > { %689 = vmatmul.mubr.f32.gmra.mrb[26].mxu0 %v462_v41  ;;  %5050 = vmatmul.mubr.f32.gmra.mrb[20].mxu1 %v470_v49 }
  0xea   : > { %694 = vmatprep.mubr.f32.mxu0 %v9008_v0  ;;  %5052 = vmatprep.mubr.f32.mxu1 %v471_v50 }
  0xed   : > { %695 = vmatmul.mubr.f32.gmra.mrb[28].mxu0 %v463_v42  ;;  %5053 = vmatmul.mubr.f32.gmra.mrb[22].mxu1 %v472_v51 }
  0xee   : > { %700 = vmatprep.mubr.f32.mxu0 %v9008_v0  ;;  %5055 = vmatprep.mubr.f32.mxu1 %v473_v52 }
  0xf1   : > { %701 = vmatmul.mubr.f32.gmra.mrb[30].mxu0 %v464_v43  ;;  %5056 = vmatmul.mubr.f32.gmra.mrb[24].mxu1 %v474_v53 }
  0xf2   : > { %706 = vmatprep.mubr.f32.mxu0 %v9008_v0  ;;  %5058 = vmatprep.mubr.f32.mxu1 %v475_v54 }
  0xf5   : > { %707 = vmatmul.mubr.f32.gmra.mrb[32].mxu0 %v465_v44  ;;  %5059 = vmatmul.mubr.f32.gmra.mrb[26].mxu1 %v476_v55 }
  0xf6   : > { %712 = vmatprep.mubr.f32.mxu0 %v9008_v0  ;;  %5061 = vmatprep.mubr.f32.mxu1 %v477_v56 }
  0xf9   : > { %713 = vmatmul.mubr.f32.gmra.mrb[34].mxu0 %v466_v45  ;;  %5062 = vmatmul.mubr.f32.gmra.mrb[28].mxu1 %v478_v59 }
  0xfa   : > { %718 = vmatprep.mubr.f32.mxu0 %v9008_v0  ;;  %5064 = vmatprep.mubr.f32.mxu1 %v479_v61 }
  0xfd   : > { %719 = vmatmul.mubr.f32.gmra.mrb[36].mxu0 %v467_v46  ;;  %5065 = vmatmul.mubr.f32.gmra.mrb[30].mxu1 %v480_v1 }
  0xfe   : > { %724 = vmatprep.mubr.f32.mxu0 %v9008_v0 }
 0x101   : > { %725 = vmatmul.mubr.f32.gmra.mrb[38].mxu0 %v468_v47 }
 0x102   : > { %730 = vmatprep.mubr.f32.mxu0 %v9008_v0 }
 0x105   : > { %731 = vmatmul.mubr.f32.gmra.mrb[40].mxu0 %v469_v48 }
 0x106   : > { %736 = vmatprep.mubr.f32.mxu0 %v9008_v0 }
 0x109   : > { %737 = vmatmul.mubr.f32.gmra.mrb[42].mxu0 %v470_v49 }
 0x10a   : > { %742 = vmatprep.mubr.f32.mxu0 %v9008_v0 }
 0x10d   : > { %743 = vmatmul.mubr.f32.gmra.mrb[44].mxu0 %v471_v50 }
 0x10e   : > { %748 = vmatprep.mubr.f32.mxu0 %v9008_v0 }
 0x111   : > { %749 = vmatmul.mubr.f32.gmra.mrb[46].mxu0 %v472_v51 }
 0x112   : > { %754 = vmatprep.mubr.f32.mxu0 %v9008_v0 }
 0x115   : > { %755 = vmatmul.mubr.f32.gmra.mrb[48].mxu0 %v473_v52 }
 0x116   : > { %760 = vmatprep.mubr.f32.mxu0 %v9008_v0 }
 0x119   : > { %761 = vmatmul.mubr.f32.gmra.mrb[50].mxu0 %v474_v53 }
 0x11a   : > { %766 = vmatprep.mubr.f32.mxu0 %v9008_v0 }
 0x11d   : > { %767 = vmatmul.mubr.f32.gmra.mrb[52].mxu0 %v475_v54 }
 0x11e   : > { %772 = vmatprep.mubr.f32.mxu0 %v9008_v0 }
 0x121   : > { %773 = vmatmul.mubr.f32.gmra.mrb[54].mxu0 %v476_v55 }
 0x122   : > { %778 = vmatprep.mubr.f32.mxu0 %v9008_v0 }
 0x125   : > { %779 = vmatmul.mubr.f32.gmra.mrb[56].mxu0 %v477_v56 }
 0x126   : > { %784 = vmatprep.mubr.f32.mxu0 %v9008_v0 }
 0x129   : > { %785 = vmatmul.mubr.f32.gmra.mrb[58].mxu0 %v478_v59 }
 0x12a   : > { %790 = vmatprep.mubr.f32.mxu0 %v9008_v0 }
 0x12d   : > { %791 = vmatmul.mubr.f32.gmra.mrb[60].mxu0 %v479_v61 }
 0x12e   : > { %796 = vmatprep.mubr.f32.mxu0 %v9008_v0 }
 0x131   : > { %797 = vmatmul.mubr.f32.gmra.mrb[62].mxu0 %v480_v1 }
 0x188   : > { %v612_v10 = vpop.f32.mrb[0].mxu0 }
 0x189   : > { %v613_v11 = vadd.f32 %v612_v10, %v6558_v8  ;;  %v614_v12 = vpop.f32.mrb[1].mxu0 }
 0x18a   : > { %v6566_v13 = vadd.f32 %v614_v12, %v6562_v9 }
 0x18b   : > { %v6568_v14 = vmul.f32 0.17677669, %v613_v11 }
 0x18c   : > { %v618_v15 = vpop.f32.mrb[2].mxu0 }
 0x18d   : > { %v1060_v16 = vmul.f32 %v6568_v14, %v6566_v13  ;;  %v619_v17 = vadd.f32 %v618_v15, %v6558_v8  ;;  %v620_v18 = vpop.f32.mrb[3].mxu0 }
 0x18e   : > { %v6574_v19 = vadd.f32 %v620_v18, %v6562_v9 }
 0x18f   : > { %v6576_v20 = vmul.f32 0.17677669, %v619_v17  ;;  %5099 = vmatprep.mubr.f32.mxu1 %v1060_v16 }
 0x190   : > { %v624_v21 = vpop.f32.mrb[4].mxu0 }
 0x191   : > { %v1061_v22 = vmul.f32 %v6576_v20, %v6574_v19  ;;  %v625_v23 = vadd.f32 %v624_v21, %v6558_v8  ;;  %v626_v24 = vpop.f32.mrb[5].mxu0 }
 0x192   : > { %v6582_v25 = vadd.f32 %v626_v24, %v6562_v9 }
 0x193   : > { %v6584_v26 = vmul.f32 0.17677669, %v625_v23  ;;  %5100 = vmatmul.mubr.f32.vlgmr.msra.gmra.mrb[32].mxu1 %v1061_v22 }
 0x194   : > { %v630_v27 = vpop.f32.mrb[6].mxu0 }
 0x195   : > { %v1062_v28 = vmul.f32 %v6584_v26, %v6582_v25  ;;  %v631_v29 = vadd.f32 %v630_v27, %v6558_v8  ;;  %v632_v30 = vpop.f32.mrb[7].mxu0 }
 0x196   : > { %v6590_v31 = vadd.f32 %v632_v30, %v6562_v9 }
 0x197   : > { %v6592_v32 = vmul.f32 0.17677669, %v631_v29  ;;  %5102 = vmatprep.mubr.f32.mxu1 %v1062_v28 }
 0x198   : > { %v636_v33 = vpop.f32.mrb[8].mxu0 }
 0x199   : > { %v1063_v34 = vmul.f32 %v6592_v32, %v6590_v31  ;;  %v637_v35 = vadd.f32 %v636_v33, %v6558_v8  ;;  %v638_v36 = vpop.f32.mrb[9].mxu0 }
 0x19a   : > { %v6598_v37 = vadd.f32 %v638_v36, %v6562_v9 }
 0x19b   : > { %v6600_v38 = vmul.f32 0.17677669, %v637_v35  ;;  %5103 = vmatmul.mubr.f32.gmra.mrb[34].mxu1 %v1063_v34 }
 0x19c   : > { %v642_v39 = vpop.f32.mrb[10].mxu0 }
 0x19d   : > { %v1064_v40 = vmul.f32 %v6600_v38, %v6598_v37  ;;  %v643_v41 = vadd.f32 %v642_v39, %v6558_v8  ;;  %v644_v42 = vpop.f32.mrb[11].mxu0 }
 0x19e   : > { %v6606_v43 = vadd.f32 %v644_v42, %v6562_v9 }
 0x19f   : > { %v6608_v44 = vmul.f32 0.17677669, %v643_v41  ;;  %5105 = vmatprep.mubr.f32.mxu1 %v1064_v40 }
 0x1a0   : > { %v648_v45 = vpop.f32.mrb[12].mxu0 }
 0x1a1   : > { %v1065_v46 = vmul.f32 %v6608_v44, %v6606_v43  ;;  %v649_v47 = vadd.f32 %v648_v45, %v6558_v8  ;;  %v650_v48 = vpop.f32.mrb[13].mxu0 }
 0x1a2   : > { %v6614_v49 = vadd.f32 %v650_v48, %v6562_v9 }
 0x1a3   : > { %v6616_v50 = vmul.f32 0.17677669, %v649_v47  ;;  %5106 = vmatmul.mubr.f32.gmra.mrb[36].mxu1 %v1065_v46 }
 0x1a4   : > { %v654_v51 = vpop.f32.mrb[14].mxu0 }
 0x1a5   : > { %v1066_v52 = vmul.f32 %v6616_v50, %v6614_v49  ;;  %v655_v53 = vadd.f32 %v654_v51, %v6558_v8  ;;  %v656_v54 = vpop.f32.mrb[15].mxu0 }
 0x1a6   : > { %v6622_v55 = vadd.f32 %v656_v54, %v6562_v9 }
 0x1a7   : > { %v6624_v56 = vmul.f32 0.17677669, %v655_v53  ;;  %5108 = vmatprep.mubr.f32.mxu1 %v1066_v52 }
 0x1a8   : > { %v660_v57 = vpop.f32.mrb[16].mxu0 }
 0x1a9   : > { %v1067_v58 = vmul.f32 %v6624_v56, %v6622_v55  ;;  %v661_v59 = vadd.f32 %v660_v57, %v6558_v8  ;;  %v662_v60 = vpop.f32.mrb[17].mxu0  ;;  %v6682_v57 = vpop.f32.mrb[0].mxu1 }
 0x1aa   : > { %v6630_v61 = vadd.f32 %v662_v60, %v6562_v9 }
 0x1ab   : > { %v6632_v62 = vmul.f32 0.17677669, %v661_v59  ;;  %5109 = vmatmul.mubr.f32.gmra.mrb[38].mxu1 %v1067_v58 }
 0x1ac   : > { %v666_v63 = vpop.f32.mrb[18].mxu0 }
 0x1ad   : > { %v1068_v1 = vmul.f32 %v6632_v62, %v6630_v61  ;;  %v667_v2 = vadd.f32 %v666_v63, %v6558_v8  ;;  %v668_v3 = vpop.f32.mrb[19].mxu0 }
 0x1ae   : > { %v6638_v6 = vadd.f32 %v668_v3, %v6562_v9 }
 0x1af   : > { %v6640_v10 = vmul.f32 0.17677669, %v667_v2  ;;  %5111 = vmatprep.mubr.f32.mxu1 %v1068_v1  ;;  %v6690_v2 = vpop.f32.mrb[1].mxu1 }
 0x1b0   : > { %v672_v11 = vpop.f32.mrb[20].mxu0 }
 0x1b1   : > { %v1069_v12 = vmul.f32 %v6640_v10, %v6638_v6  ;;  %v673_v15 = vadd.f32 %v672_v11, %v6558_v8  ;;  %v674_v16 = vpop.f32.mrb[21].mxu0  ;;  %v6694_v11 = vpop.f32.mrb[2].mxu1 }
 0x1b2   : > { %v6646_v17 = vadd.f32 %v674_v16, %v6562_v9 }
 0x1b3   : > { %v6648_v18 = vmul.f32 0.17677669, %v673_v15  ;;  %5112 = vmatmul.mubr.f32.gmra.mrb[40].mxu1 %v1069_v12  ;;  %v6696_v15 = vpop.f32.mrb[3].mxu1 }
 0x1b4   : > { %v678_v21 = vpop.f32.mrb[22].mxu0 }
 0x1b5   : > { %v1070_v22 = vmul.f32 %v6648_v18, %v6646_v17  ;;  %v679_v23 = vadd.f32 %v678_v21, %v6558_v8  ;;  %v680_v24 = vpop.f32.mrb[23].mxu0 }
 0x1b6   : > { %v6654_v27 = vadd.f32 %v680_v24, %v6562_v9 }
 0x1b7   : > { %v6656_v28 = vmul.f32 0.17677669, %v679_v23  ;;  %5114 = vmatprep.mubr.f32.mxu1 %v1070_v22  ;;  %v6701_v23 = vpop.f32.mrb[4].mxu1 }
 0x1b8   : > { %v684_v29 = vpop.f32.mrb[24].mxu0  ;;  %9033 = vst [vmem:[#allocation25_spill] sm:$0xff] %v6701_v23 }
 0x1b9   : > { %v1071_v30 = vmul.f32 %v6656_v28, %v6654_v27  ;;  %v685_v33 = vadd.f32 %v684_v29, %v6558_v8  ;;  %v686_v34 = vpop.f32.mrb[25].mxu0  ;;  %v6704_v29 = vpop.f32.mrb[5].mxu1 }
 0x1ba   : > { %v6662_v35 = vadd.f32 %v686_v34, %v6562_v9  ;;  %9034 = vst [vmem:[#allocation26_spill] sm:$0xff] %v6704_v29  ;;  %v6709_v34 = vpop.f32.mrb[6].mxu1 }
 0x1bb   : > { %v6664_v36 = vmul.f32 0.17677669, %v685_v33  ;;  %5115 = vmatmul.mubr.f32.gmra.mrb[42].mxu1 %v1071_v30  ;;  %v2006_v30 = vld [vmem:[%s8986_s2] sm:$0xf]  ;;  %9035 = vst [vmem:[#allocation27_spill] sm:$0xff] %v6709_v34 }
 0x1bc   : > { %v690_v39 = vpop.f32.mrb[26].mxu0  ;;  %5195 = vmatprep.subr.msk.mxu0 %vm2199_vm0, %v2006_v30 }
 0x1bd   : > { %v1072_v40 = vmul.f32 %v6664_v36, %v6662_v35  ;;  %v691_v41 = vadd.f32 %v690_v39, %v6558_v8  ;;  %v692_v42 = vpop.f32.mrb[27].mxu0  ;;  %5196 = vmatpush3.msk.msra.mxu0 %vm2199_vm0, %v2006_v30 }
 0x1be   : > { %v6670_v45 = vadd.f32 %v692_v42, %v6562_v9 }
 0x1bf   : > { %v6672_v46 = vmul.f32 0.17677669, %v691_v41  ;;  %5117 = vmatprep.mubr.f32.mxu1 %v1072_v40  ;;  %v6712_v41 = vpop.f32.mrb[7].mxu1 }
 0x1c0   : > { %v696_v47 = vpop.f32.mrb[28].mxu0  ;;  %9036 = vst [vmem:[#allocation28_spill] sm:$0xff] %v6712_v41 }
 0x1c1   : > { %v1073_v48 = vmul.f32 %v6672_v46, %v6670_v45  ;;  %v697_v51 = vadd.f32 %v696_v47, %v6558_v8  ;;  %v698_v52 = vpop.f32.mrb[29].mxu0 }
 0x1c2   : > { %v6678_v53 = vadd.f32 %v698_v52, %v6562_v9  ;;  %v6720_v52 = vpop.f32.mrb[8].mxu1 }
 0x1c3   : > { %v6680_v54 = vmul.f32 0.17677669, %v697_v51  ;;  %5118 = vmatmul.mubr.f32.gmra.mrb[44].mxu1 %v1073_v48  ;;  %9037 = vst [vmem:[#allocation29_spill] sm:$0xff] %v6720_v52 }
 0x1c4   : > { %v702_v58 = vpop.f32.mrb[30].mxu0 }
 0x1c5   : > { %v1074_v59 = vmul.f32 %v6680_v54, %v6678_v53  ;;  %v703_v60 = vadd.f32 %v702_v58, %v6558_v8  ;;  %v704_v63 = vpop.f32.mrb[31].mxu0 }
 0x1c6   : > { %v6688_v1 = vadd.f32 %v704_v63, %v6562_v9 }
 0x1c7   : > { %v6692_v3 = vmul.f32 0.17677669, %v703_v60  ;;  %5120 = vmatprep.mubr.f32.mxu1 %v1074_v59  ;;  %v6723_v59 = vpop.f32.mrb[9].mxu1 }
 0x1c8   : > { %v708_v12 = vpop.f32.mrb[32].mxu0  ;;  %9038 = vst [vmem:[#allocation30_spill] sm:$0xff] %v6723_v59  ;;  %v6725_v60 = vpop.f32.mrb[10].mxu1 }
 0x1c9   : > { %v1075_v16 = vmul.f32 %v6692_v3, %v6688_v1  ;;  %v709_v21 = vadd.f32 %v708_v12, %v6558_v8  ;;  %v710_v22 = vpop.f32.mrb[33].mxu0  ;;  %9039 = vst [vmem:[#allocation31_spill] sm:$0xff] %v6725_v60 }
 0x1ca   : > { %v711_v24 = vadd.f32 %v710_v22, %v6562_v9 }
 0x1cb   : > { %v1044_v33 = vmul.f32 0.17677669, %v709_v21  ;;  %5121 = vmatmul.mubr.f32.gmra.mrb[46].mxu1 %v1075_v16 }
 0x1cc   : > { %v1076_v39 = vmul.f32 %v6568_v14, %v711_v24  ;;  %v714_v40 = vpop.f32.mrb[34].mxu0 }
 0x1cd   : > { %v6715_v42 = vmul.f32 %v1044_v33, %v6566_v13  ;;  %v6717_v47 = vmul.f32 %v1044_v33, %v711_v24  ;;  %v715_v48 = vadd.f32 %v714_v40, %v6558_v8  ;;  %v716_v51 = vpop.f32.mrb[35].mxu0  ;;  %v6728_v13 = vpop.f32.mrb[11].mxu1 }
 0x1ce   : > { %v717_v58 = vadd.f32 %v716_v51, %v6562_v9  ;;  %5123 = vmatprep.mubr.f32.mxu1 %v1076_v39  ;;  %9040 = vst [vmem:[#allocation32_spill] sm:$0xff] %v6728_v13  ;;  %v6736_v30 = vpop.f32.mrb[12].mxu1 }
 0x1cf   : > { %v1045_v14 = vmul.f32 0.17677669, %v715_v48  ;;  %9041 = vst [vmem:[#allocation33_spill] sm:$0xff] %v6736_v30  ;;  %v6739_v39 = vpop.f32.mrb[13].mxu1 }
 0x1d0   : > { %v1077_v63 = vmul.f32 %v6576_v20, %v717_v58  ;;  %v720_v12 = vpop.f32.mrb[36].mxu0  ;;  %9042 = vst [vmem:[#allocation34_spill] sm:$0xff] %v6739_v39  ;;  %v6741_v20 = vpop.f32.mrb[14].mxu1 }
 0x1d1   : > { %v6731_v16 = vmul.f32 %v1045_v14, %v6574_v19  ;;  %v6733_v21 = vmul.f32 %v1045_v14, %v717_v58  ;;  %v721_v22 = vadd.f32 %v720_v12, %v6558_v8  ;;  %v722_v24 = vpop.f32.mrb[37].mxu0  ;;  %9043 = vst [vmem:[#allocation35_spill] sm:$0xff] %v6741_v20  ;;  %v6744_v19 = vpop.f32.mrb[15].mxu1 }
 0x1d2   : > { %v723_v33 = vadd.f32 %v722_v24, %v6562_v9  ;;  %5124 = vmatmul.mubr.f32.gmra.mrb[48].mxu1 %v1077_v63  ;;  %9044 = vst [vmem:[#allocation36_spill] sm:$0xff] %v6744_v19  ;;  %v6752_v24 = vpop.f32.mrb[16].mxu1 }
 0x1d3   : > { %v1046_v40 = vmul.f32 0.17677669, %v721_v22  ;;  %v6755_v22 = vpop.f32.mrb[17].mxu1 }
 0x1d4   : > { %v1078_v48 = vmul.f32 %v6584_v26, %v723_v33  ;;  %v726_v51 = vpop.f32.mrb[38].mxu0  ;;  %v6757_v26 = vpop.f32.mrb[18].mxu1 }
 0x1d5   : > { %v6747_v58 = vmul.f32 %v1046_v40, %v6582_v25  ;;  %v6749_v14 = vmul.f32 %v1046_v40, %v723_v33  ;;  %v727_v12 = vadd.f32 %v726_v51, %v6558_v8  ;;  %v728_v7 = vpop.f32.mrb[39].mxu0  ;;  %v6760_v25 = vpop.f32.mrb[19].mxu1 }
 0x1d6   : > { %v729_v63 = vadd.f32 %v728_v7, %v6562_v9  ;;  %5126 = vmatprep.mubr.f32.mxu1 %v1078_v48  ;;  %9045 = vst [vmem:[#allocation37_spill] sm:$0xff] %v6760_v25  ;;  %v6768_v7 = vpop.f32.mrb[20].mxu1 }
 0x1d7   : > { %v1047_v5 = vmul.f32 0.17677669, %v727_v12  ;;  %9046 = vst [vmem:[#allocation38_spill] sm:$0xff] %v6768_v7  ;;  %v6771_v12 = vpop.f32.mrb[21].mxu1 }
 0x1d8   : > { %v1079_v0 = vmul.f32 %v6592_v32, %v729_v63  ;;  %v732_v19 = vpop.f32.mrb[40].mxu0  ;;  %9047 = vst [vmem:[#allocation39_spill] sm:$0xff] %v6771_v12  ;;  %v6773_v32 = vpop.f32.mrb[22].mxu1 }
 0x1d9   : > { %v6763_v33 = vmul.f32 %v1047_v5, %v6590_v31  ;;  %v6765_v40 = vmul.f32 %v1047_v5, %v729_v63  ;;  %v733_v51 = vadd.f32 %v732_v19, %v6558_v8  ;;  %v734_v20 = vpop.f32.mrb[41].mxu0  ;;  %9048 = vst [vmem:[#allocation40_spill] sm:$0xff] %v6773_v32  ;;  %v6776_v31 = vpop.f32.mrb[23].mxu1 }
 0x1da   : > { %v735_v48 = vadd.f32 %v734_v20, %v6562_v9  ;;  %5127 = vmatmul.mubr.f32.gmra.mrb[50].mxu1 %v1079_v0  ;;  %9049 = vst [vmem:[#allocation41_spill] sm:$0xff] %v6776_v31  ;;  %v6784_v20 = vpop.f32.mrb[24].mxu1 }
 0x1db   : > { %v1048_v39 = vmul.f32 0.17677669, %v733_v51  ;;  %9050 = vst [vmem:[#allocation42_spill] sm:$0xff] %v6784_v20  ;;  %v6787_v51 = vpop.f32.mrb[25].mxu1 }
 0x1dc   : > { %v1080_v30 = vmul.f32 %v6600_v38, %v735_v48  ;;  %v738_v13 = vpop.f32.mrb[42].mxu0  ;;  %9051 = vst [vmem:[#allocation43_spill] sm:$0xff] %v6787_v51  ;;  %v6789_v38 = vpop.f32.mrb[26].mxu1 }
 0x1dd   : > { %v6779_v5 = vmul.f32 %v1048_v39, %v6598_v37  ;;  %v6781_v19 = vmul.f32 %v1048_v39, %v735_v48  ;;  %v739_v63 = vadd.f32 %v738_v13, %v6558_v8  ;;  %v740_v60 = vpop.f32.mrb[43].mxu0  ;;  %9052 = vst [vmem:[#allocation44_spill] sm:$0xff] %v6789_v38  ;;  %v6792_v37 = vpop.f32.mrb[27].mxu1 }
 0x1de   : > { %v741_v0 = vadd.f32 %v740_v60, %v6562_v9  ;;  %5129 = vmatprep.mubr.f32.mxu1 %v1080_v30  ;;  %9053 = vst [vmem:[#allocation45_spill] sm:$0xff] %v6792_v37  ;;  %v6800_v60 = vpop.f32.mrb[28].mxu1 }
 0x1df   : > { %v1049_v59 = vmul.f32 0.17677669, %v739_v63  ;;  %9054 = vst [vmem:[#allocation46_spill] sm:$0xff] %v6800_v60  ;;  %v6803_v63 = vpop.f32.mrb[29].mxu1 }
 0x1e0   : > { %v1081_v52 = vmul.f32 %v6608_v44, %v741_v0  ;;  %v744_v31 = vpop.f32.mrb[44].mxu0  ;;  %9055 = vst [vmem:[#allocation47_spill] sm:$0xff] %v6803_v63  ;;  %v6805_v44 = vpop.f32.mrb[30].mxu1 }
 0x1e1   : > { %v6795_v39 = vmul.f32 %v1049_v59, %v6606_v43  ;;  %v6797_v13 = vmul.f32 %v1049_v59, %v741_v0  ;;  %v745_v48 = vadd.f32 %v744_v31, %v6558_v8  ;;  %v746_v20 = vpop.f32.mrb[45].mxu0  ;;  %9056 = vst [vmem:[#allocation48_spill] sm:$0xff] %v6805_v44  ;;  %v6808_v43 = vpop.f32.mrb[31].mxu1 }
 0x1e2   : > { %v747_v30 = vadd.f32 %v746_v20, %v6562_v9  ;;  %5130 = vmatmul.mubr.f32.gmra.mrb[52].mxu1 %v1081_v52  ;;  %9057 = vst [vmem:[#allocation49_spill] sm:$0xff] %v6808_v43 }
 0x1e3   : > { %v1050_v38 = vmul.f32 0.17677669, %v745_v48 }
 0x1e4   : > { %v1082_v37 = vmul.f32 %v6616_v50, %v747_v30  ;;  %v750_v51 = vpop.f32.mrb[46].mxu0 }
 0x1e5   : > { %v6811_v59 = vmul.f32 %v1050_v38, %v6614_v49  ;;  %v6813_v31 = vmul.f32 %v1050_v38, %v747_v30  ;;  %v751_v0 = vadd.f32 %v750_v51, %v6558_v8  ;;  %v752_v60 = vpop.f32.mrb[47].mxu0 }
 0x1e6   : > { %v753_v52 = vadd.f32 %v752_v60, %v6562_v9  ;;  %5132 = vmatprep.mubr.f32.mxu1 %v1082_v37 }
 0x1e7   : > { %v1051_v20 = vmul.f32 0.17677669, %v751_v0 }
 0x1e8   : > { %v1083_v48 = vmul.f32 %v6624_v56, %v753_v52  ;;  %v756_v44 = vpop.f32.mrb[48].mxu0 }
 0x1e9   : > { %v6819_v50 = vmul.f32 %v1051_v20, %v6622_v55  ;;  %v6821_v63 = vmul.f32 %v1051_v20, %v753_v52  ;;  %v757_v49 = vadd.f32 %v756_v44, %v6558_v8  ;;  %v758_v43 = vpop.f32.mrb[49].mxu0 }
 0x1ea   : > { %v759_v38 = vadd.f32 %v758_v43, %v6562_v9  ;;  %5133 = vmatmul.mubr.f32.gmra.mrb[54].mxu1 %v1083_v48 }
 0x1eb   : > { %v1052_v51 = vmul.f32 0.17677669, %v757_v49 }
 0x1ec   : > { %v1084_v30 = vmul.f32 %v6632_v62, %v759_v38  ;;  %v762_v60 = vpop.f32.mrb[50].mxu0 }
 0x1ed   : > { %v6827_v37 = vmul.f32 %v1052_v51, %v6630_v61  ;;  %v6829_v56 = vmul.f32 %v1052_v51, %v759_v38  ;;  %v763_v55 = vadd.f32 %v762_v60, %v6558_v8  ;;  %v764_v0 = vpop.f32.mrb[51].mxu0 }
 0x1ee   : > { %v765_v52 = vadd.f32 %v764_v0, %v6562_v9  ;;  %5135 = vmatprep.mubr.f32.mxu1 %v1084_v30 }
 0x1ef   : > { %v1053_v44 = vmul.f32 0.17677669, %v763_v55 }
 0x1f0   : > { %v1085_v20 = vmul.f32 %v6640_v10, %v765_v52  ;;  %v768_v43 = vpop.f32.mrb[52].mxu0 }
 0x1f1   : > { %v6835_v48 = vmul.f32 %v1053_v44, %v6638_v6  ;;  %v6837_v62 = vmul.f32 %v1053_v44, %v765_v52  ;;  %v769_v61 = vadd.f32 %v768_v43, %v6558_v8  ;;  %v770_v49 = vpop.f32.mrb[53].mxu0 }
 0x1f2   : > { %v771_v38 = vadd.f32 %v770_v49, %v6562_v9  ;;  %5136 = vmatmul.mubr.f32.gmra.mrb[56].mxu1 %v1085_v20 }
 0x1f3   : > { %v1054_v51 = vmul.f32 0.17677669, %v769_v61 }
 0x1f4   : > { %v1086_v60 = vmul.f32 %v6648_v18, %v771_v38  ;;  %v774_v0 = vpop.f32.mrb[54].mxu0 }
 0x1f5   : > { %v1102_v30 = vmul.f32 %v1054_v51, %v6646_v17  ;;  %v6843_v55 = vmul.f32 %v1054_v51, %v771_v38  ;;  %v775_v10 = vadd.f32 %v774_v0, %v6558_v8  ;;  %v776_v6 = vpop.f32.mrb[55].mxu0 }
 0x1f6   : > { %v777_v52 = vadd.f32 %v776_v6, %v6562_v9  ;;  %5138 = vmatprep.mubr.f32.mxu1 %v1086_v60 }
 0x1f7   : > { %v1055_v44 = vmul.f32 0.17677669, %v775_v10 }
 0x1f8   : > { %v1087_v43 = vmul.f32 %v6656_v28, %v777_v52  ;;  %v780_v41 = vpop.f32.mrb[56].mxu0 }
 0x1f9   : > { %v1103_v20 = vmul.f32 %v1055_v44, %v6654_v27  ;;  %v6849_v61 = vmul.f32 %v1055_v44, %v777_v52  ;;  %v781_v18 = vadd.f32 %v780_v41, %v6558_v8  ;;  %v782_v49 = vpop.f32.mrb[57].mxu0 }
 0x1fa   : > { %v783_v17 = vadd.f32 %v782_v49, %v6562_v9  ;;  %5139 = vmatmul.mubr.f32.gmra.mrb[58].mxu1 %v1087_v43 }
 0x1fb   : > { %v1056_v38 = vmul.f32 0.17677669, %v781_v18 }
 0x1fc   : > { %v1088_v51 = vmul.f32 %v6664_v36, %v783_v17  ;;  %v786_v0 = vpop.f32.mrb[58].mxu0 }
 0x1fd   : > { %v1104_v60 = vmul.f32 %v1056_v38, %v6662_v35  ;;  %v1120_v10 = vmul.f32 %v1056_v38, %v783_v17  ;;  %v787_v28 = vadd.f32 %v786_v0, %v6558_v8  ;;  %v788_v6 = vpop.f32.mrb[59].mxu0 }
 0x1fe   : > { %v789_v27 = vadd.f32 %v788_v6, %v6562_v9  ;;  %5141 = vmatprep.mubr.f32.mxu1 %v1088_v51 }
 0x1ff   : > { %v1057_v52 = vmul.f32 0.17677669, %v787_v28 }
 0x200   : > { %v1089_v41 = vmul.f32 %v6672_v46, %v789_v27  ;;  %v792_v44 = vpop.f32.mrb[60].mxu0 }
 0x201   : > { %v1105_v49 = vmul.f32 %v1057_v52, %v6670_v45  ;;  %v1121_v43 = vmul.f32 %v1057_v52, %v789_v27  ;;  %v793_v18 = vadd.f32 %v792_v44, %v6558_v8  ;;  %v794_v36 = vpop.f32.mrb[61].mxu0 }
 0x202   : > { %v795_v32 = vadd.f32 %v794_v36, %v6562_v9  ;;  %5142 = vmatmul.mubr.f32.gmra.mrb[60].mxu1 %v1089_v41 }
 0x203   : > { %v1058_v35 = vmul.f32 0.17677669, %v793_v18 }
 0x204   : > { %v1090_v17 = vmul.f32 %v6680_v54, %v795_v32  ;;  %v798_v38 = vpop.f32.mrb[62].mxu0 }
 0x205   : > { %v1106_v0 = vmul.f32 %v1058_v35, %v6678_v53  ;;  %v1122_v51 = vmul.f32 %v1058_v35, %v795_v32  ;;  %v799_v28 = vadd.f32 %v798_v38, %v6558_v8  ;;  %v800_v46 = vpop.f32.mrb[63].mxu0 }
 0x206   : > { %v801_v6 = vadd.f32 %v800_v46, %v6562_v9  ;;  %5144 = vmatprep.mubr.f32.mxu1 %v1090_v17 }
 0x207   : > { %v1059_v45 = vmul.f32 0.17677669, %v799_v28 }
 0x208   : > { %v1091_v27 = vmul.f32 %v6692_v3, %v801_v6 }
 0x209   : > { %v1107_v52 = vmul.f32 %v1059_v45, %v6688_v1  ;;  %v1123_v44 = vmul.f32 %v1059_v45, %v801_v6 }
 0x20a   : > { %5145 = vmatmul.mubr.f32.gmra.mrb[62].mxu1 %v1091_v27 }
 0x20b   : > { %5147 = vmatprep.mubr.f32.mxu1 %v6715_v42 }
 0x20e   : > { %5148 = vmatmul.mubr.f32.gmra.mrb[64].mxu1 %v6731_v16 }
 0x20f   : > { %5150 = vmatprep.mubr.f32.mxu1 %v6747_v58 }
 0x212   : > { %5151 = vmatmul.mubr.f32.gmra.mrb[66].mxu1 %v6763_v33 }
 0x213   : > { %5153 = vmatprep.mubr.f32.mxu1 %v6779_v5 }
 0x216   : > { %5154 = vmatmul.mubr.f32.gmra.mrb[68].mxu1 %v6795_v39 }
 0x217   : > { %5156 = vmatprep.mubr.f32.mxu1 %v6811_v59 }
 0x21a   : > { %5157 = vmatmul.mubr.f32.gmra.mrb[70].mxu1 %v6819_v50 }
 0x21b   : > { %5159 = vmatprep.mubr.f32.mxu1 %v6827_v37 }
 0x21e   : > { %5160 = vmatmul.mubr.f32.gmra.mrb[72].mxu1 %v6835_v48 }
 0x21f   : > { %5162 = vmatprep.mubr.f32.mxu1 %v1102_v30 }
 0x222   : > { %5163 = vmatmul.mubr.f32.gmra.mrb[74].mxu1 %v1103_v20 }
 0x223   : > { %5165 = vmatprep.mubr.f32.mxu1 %v1104_v60 }
 0x226   : > { %5166 = vmatmul.mubr.f32.gmra.mrb[76].mxu1 %v1105_v49 }
 0x227   : > { %5168 = vmatprep.mubr.f32.mxu1 %v1106_v0 }
 0x22a   : > { %5169 = vmatmul.mubr.f32.gmra.mrb[78].mxu1 %v1107_v52 }
 0x22b   : > { %5171 = vmatprep.mubr.f32.mxu1 %v6717_v47 }
 0x22e   : > { %5172 = vmatmul.mubr.f32.gmra.mrb[80].mxu1 %v6733_v21 }
 0x22f   : > { %5174 = vmatprep.mubr.f32.mxu1 %v6749_v14 }
 0x232   : > { %5175 = vmatmul.mubr.f32.gmra.mrb[82].mxu1 %v6765_v40 }
 0x233   : > { %5177 = vmatprep.mubr.f32.mxu1 %v6781_v19 }
 0x236   : > { %5178 = vmatmul.mubr.f32.gmra.mrb[84].mxu1 %v6797_v13 }
 0x237   : > { %5180 = vmatprep.mubr.f32.mxu1 %v6813_v31 }
 0x23a   : > { %5181 = vmatmul.mubr.f32.gmra.mrb[86].mxu1 %v6821_v63 }
 0x23b   : > { %5183 = vmatprep.mubr.f32.mxu1 %v6829_v56 }
 0x23e   : > { %5184 = vmatmul.mubr.f32.gmra.mrb[88].mxu1 %v6837_v62 }
 0x23f   : > { %5186 = vmatprep.mubr.f32.mxu1 %v6843_v55 }
 0x242   : > { %5187 = vmatmul.mubr.f32.gmra.mrb[90].mxu1 %v6849_v61 }
 0x243   : > { %5189 = vmatprep.mubr.f32.mxu1 %v1120_v10 }
 0x246   : > { %5190 = vmatmul.mubr.f32.gmra.mrb[92].mxu1 %v1121_v43 }
 0x247   : > { %5192 = vmatprep.mubr.f32.mxu1 %v1122_v51 }
 0x24a   : > { %5193 = vmatmul.mubr.f32.gmra.mrb[94].mxu1 %v1123_v44 }
 0x266   : > { %v5101_v8 = vpop.f32.mrb[32].mxu1 }
 0x267   : > { %v1206_v9 = vpop.f32.mrb[33].mxu1  ;;  %v1529_v39 = vsel %vm1525_vm1, %v5101_v8, -inf }
 0x268   : > { %v1526_v59 = vsel %vm1525_vm1, %v1206_v9, -inf }
 0x26e   : > { %v5104_v53 = vpop.f32.mrb[34].mxu1 }
 0x26f   : > { %v1216_v54 = vpop.f32.mrb[35].mxu1  ;;  %v1535_v41 = vsel %vm1525_vm1, %v5104_v53, -inf }
 0x270   : > { %v1532_v18 = vsel %vm1525_vm1, %v1216_v54, -inf }
 0x276   : > { %v6889_v1 = vpop.f32.mrb[36].mxu1 }
 0x277   : > { %v6891_v3 = vpop.f32.mrb[37].mxu1  ;;  %v1541_v44 = vsel %vm1525_vm1, %v6889_v1, -inf }
 0x27e   : > { %v6893_v42 = vpop.f32.mrb[38].mxu1 }
 0x27f   : > { %v6895_v47 = vpop.f32.mrb[39].mxu1 }
 0x286   : > { %v6897_v16 = vpop.f32.mrb[40].mxu1 }
 0x287   : > { %v6899_v21 = vpop.f32.mrb[41].mxu1 }
 0x28e   : > { %v6901_v58 = vpop.f32.mrb[42].mxu1 }
 0x28f   : > { %v6903_v14 = vpop.f32.mrb[43].mxu1 }
 0x296   : > { %v6905_v33 = vpop.f32.mrb[44].mxu1 }
 0x297   : > { %v6907_v40 = vpop.f32.mrb[45].mxu1 }
 0x29e   : > { %v6909_v32 = vpop.f32.mrb[46].mxu1 }
 0x29f   : > { %v6911_v5 = vpop.f32.mrb[47].mxu1 }
 0x2a5   : > { %v5125_v19 = vpop.f32.mrb[48].mxu1 }
 0x2a6   : > { %v1530_v13 = vsel %vm1525_vm1, %v5125_v19, -inf  ;;  %v1286_v63 = vpop.f32.mrb[49].mxu1 }
 0x2a7   : > { %v1531_v31 = vmax.f32 %v1529_v39, %v1530_v13  ;;  %v1527_v50 = vsel %vm1525_vm1, %v1286_v63, -inf }
 0x2a8   : > { %v1528_v37 = vmax.f32 %v1526_v59, %v1527_v50 }
 0x2a9   : > { %v1623_v56 = vsub.f32 %v5101_v8, %v1531_v31  ;;  %v1639_v48 = vsub.f32 %v5125_v19, %v1531_v31 }
 0x2aa   : > { %v1622_v62 = vsub.f32 %v1206_v9, %v1528_v37  ;;  %v1638_v30 = vsub.f32 %v1286_v63, %v1528_v37 }
 0x2ab   : > { %v1688_v55 = vmul.f32 1.442695, %v1623_v56  ;;  %v1720_v20 = vmul.f32 1.442695, %v1639_v48 }
 0x2ac   : > { %v1686_v61 = vmul.f32 1.442695, %v1622_v62  ;;  %v1718_v60 = vmul.f32 1.442695, %v1638_v30 }
 0x2ad   : > { %5687 = vpow2.f32 %v1688_v55  ;;  %v5128_v10 = vpop.f32.mrb[50].mxu1 }
 0x2ae   : > { %5689 = vpow2.f32 %v1720_v20  ;;  %v1536_v49 = vsel %vm1525_vm1, %v5128_v10, -inf  ;;  %v1296_v43 = vpop.f32.mrb[51].mxu1 }
 0x2af   : > { %5691 = vpow2.f32 %v1686_v61  ;;  %v1537_v36 = vmax.f32 %v1535_v41, %v1536_v49  ;;  %v1533_v35 = vsel %vm1525_vm1, %v1296_v43, -inf }
 0x2b0   : > { %5693 = vpow2.f32 %v1718_v60  ;;  %v1534_v17 = vmax.f32 %v1532_v18, %v1533_v35  ;;  %v1547_v18 = vsel %vm1525_vm1, %v6893_v42, -inf }
 0x2b1   : > { %v1625_v38 = vsub.f32 %v5104_v53, %v1537_v36  ;;  %v1641_v0 = vsub.f32 %v5128_v10, %v1537_v36  ;;  %v1538_v53 = vsel %vm1525_vm1, %v6891_v3, -inf }
 0x2b2   : > { %v1624_v51 = vsub.f32 %v1216_v54, %v1534_v17  ;;  %v1640_v28 = vsub.f32 %v1296_v43, %v1534_v17  ;;  %v1544_v17 = vsel %vm1525_vm1, %v6895_v47, -inf }
 0x2b3   : > { %v1692_v46 = vmul.f32 1.442695, %v1625_v38  ;;  %v1724_v6 = vmul.f32 1.442695, %v1641_v0 }
 0x2b4   : > { %v1690_v45 = vmul.f32 1.442695, %v1624_v51  ;;  %v1722_v27 = vmul.f32 1.442695, %v1640_v28 }
 0x2b5   : > { %5695 = vpow2.f32 %v1692_v46  ;;  %v5131_v52 = vpop.f32.mrb[52].mxu1 }
 0x2b6   : > { %5697 = vpow2.f32 %v1724_v6  ;;  %v1542_v8 = vsel %vm1525_vm1, %v5131_v52, -inf  ;;  %v1306_v9 = vpop.f32.mrb[53].mxu1 }
 0x2b7   : > { %v6924_v19 = vpop.eup %5687  ;;  %5699 = vpow2.f32 %v1690_v45  ;;  %v1543_v54 = vmax.f32 %v1541_v44, %v1542_v8  ;;  %v1539_v39 = vsel %vm1525_vm1, %v1306_v9, -inf }
 0x2b8   : > { %v6929_v13 = vpop.eup %5689  ;;  %v1817_v63 = vsel %vm1525_vm1, %v6924_v19, 0.0  ;;  %5701 = vpow2.f32 %v1722_v27  ;;  %v1540_v59 = vmax.f32 %v1538_v53, %v1539_v39 }
 0x2b9   : > { %v6933_v31 = vpop.eup %5691  ;;  %v1818_v50 = vsel %vm1525_vm1, %v6929_v13, 0.0  ;;  %v1627_v37 = vsub.f32 %v6889_v1, %v1543_v54  ;;  %v1643_v56 = vsub.f32 %v5131_v52, %v1543_v54 }
 0x2ba   : > { %v6938_v48 = vpop.eup %5693  ;;  %v1819_v62 = vadd.f32 %v1818_v50, %v1817_v63  ;;  %v1814_v30 = vsel %vm1525_vm1, %v6933_v31, 0.0  ;;  %v1626_v55 = vsub.f32 %v6891_v3, %v1540_v59  ;;  %v1642_v20 = vsub.f32 %v1306_v9, %v1540_v59 }
 0x2bb   : > { %v1815_v61 = vsel %vm1525_vm1, %v6938_v48, 0.0  ;;  %v1696_v60 = vmul.f32 1.442695, %v1627_v37  ;;  %v1728_v10 = vmul.f32 1.442695, %v1643_v56 }
 0x2bc   : > { %5703 = vrcp.f32 %v1819_v62  ;;  %v1816_v41 = vadd.f32 %v1815_v61, %v1814_v30  ;;  %v1694_v49 = vmul.f32 1.442695, %v1626_v55  ;;  %v1726_v1 = vmul.f32 1.442695, %v1642_v20 }
 0x2bd   : > { %5705 = vpow2.f32 %v1696_v60  ;;  %v5134_v43 = vpop.f32.mrb[54].mxu1  ;;  %v1553_v30 = vsel %vm1525_vm1, %v6897_v16, -inf  ;;  %v1550_v55 = vsel %vm1525_vm1, %v6899_v21, -inf }
 0x2be   : > { %5707 = vrcp.f32 %v1816_v41  ;;  %v1548_v36 = vsel %vm1525_vm1, %v5134_v43, -inf  ;;  %v1316_v35 = vpop.f32.mrb[55].mxu1 }
 0x2bf   : > { %v6948_v3 = vpop.eup %5695  ;;  %5709 = vpow2.f32 %v1728_v10  ;;  %v1549_v38 = vmax.f32 %v1547_v18, %v1548_v36  ;;  %v1545_v0 = vsel %vm1525_vm1, %v1316_v35, -inf }
 0x2c0   : > { %v6953_v51 = vpop.eup %5697  ;;  %v1823_v28 = vsel %vm1525_vm1, %v6948_v3, 0.0  ;;  %5711 = vpow2.f32 %v1694_v49  ;;  %v1546_v46 = vmax.f32 %v1544_v17, %v1545_v0 }
 0x2c1   : > { %v6957_v6 = vpop.eup %5699  ;;  %v1824_v45 = vsel %vm1525_vm1, %v6953_v51, 0.0  ;;  %5713 = vpow2.f32 %v1726_v1  ;;  %v1629_v27 = vsub.f32 %v6893_v42, %v1549_v38  ;;  %v1645_v52 = vsub.f32 %v5134_v43, %v1549_v38 }
 0x2c2   : > { %v6962_v44 = vpop.eup %5701  ;;  %v1825_v8 = vadd.f32 %v1824_v45, %v1823_v28  ;;  %v1820_v9 = vsel %vm1525_vm1, %v6957_v6, 0.0  ;;  %v1628_v53 = vsub.f32 %v6895_v47, %v1546_v46  ;;  %v1644_v54 = vsub.f32 %v1316_v35, %v1546_v46 }
 0x2c3   : > { %v1821_v39 = vsel %vm1525_vm1, %v6962_v44, 0.0  ;;  %v1700_v63 = vmul.f32 1.442695, %v1629_v27  ;;  %v1732_v59 = vmul.f32 1.442695, %v1645_v52 }
 0x2c4   : > { %5715 = vrcp.f32 %v1825_v8  ;;  %v1822_v50 = vadd.f32 %v1821_v39, %v1820_v9  ;;  %v1698_v37 = vmul.f32 1.442695, %v1628_v53  ;;  %v1730_v42 = vmul.f32 1.442695, %v1644_v54 }
 0x2c5   : > { %5717 = vpow2.f32 %v1700_v63  ;;  %v5137_v56 = vpop.f32.mrb[56].mxu1  ;;  %v1556_v39 = vsel %vm1525_vm1, %v6903_v14, -inf }
 0x2c6   : > { %v5704_v62 = vpop.eup %5703  ;;  %5719 = vrcp.f32 %v1822_v50  ;;  %v1554_v47 = vsel %vm1525_vm1, %v5137_v56, -inf  ;;  %v1326_v20 = vpop.f32.mrb[57].mxu1 }
 0x2c7   : > { %v6974_v61 = vpop.eup %5705  ;;  %v1943_v60 = vmul.f32 %v5704_v62, %v6924_v19  ;;  %5721 = vpow2.f32 %v1732_v59  ;;  %v1555_v10 = vmax.f32 %v1553_v30, %v1554_v47  ;;  %v1551_v41 = vsel %vm1525_vm1, %v1326_v20, -inf }
 0x2c8   : > { %v5708_v49 = vpop.eup %5707  ;;  %v1829_v1 = vsel %vm1525_vm1, %v6974_v61, 0.0  ;;  %5723 = vpow2.f32 %v1698_v37  ;;  %v1552_v43 = vmax.f32 %v1550_v55, %v1551_v41  ;;  %v6981_v18 = vmul.f32 %v5704_v62, %v6929_v13 }
 0x2c9   : > { %v6983_v36 = vpop.eup %5709  ;;  %5725 = vpow2.f32 %v1730_v42  ;;  %v1631_v35 = vsub.f32 %v6897_v16, %v1555_v10  ;;  %v1647_v17 = vsub.f32 %v5137_v56, %v1555_v10  ;;  %v1942_v19 = vmul.f32 %v5708_v49, %v6933_v31 }
 0x2ca   : > { %v6987_v38 = vpop.eup %5711  ;;  %v1830_v0 = vsel %vm1525_vm1, %v6983_v36, 0.0  ;;  %v1630_v28 = vsub.f32 %v6899_v21, %v1552_v43  ;;  %v1646_v46 = vsub.f32 %v1326_v20, %v1552_v43  ;;  %v6993_v45 = vmul.f32 %v5708_v49, %v6938_v48 }
 0x2cb   : > { %v6995_v13 = vpop.eup %5713  ;;  %v1831_v27 = vadd.f32 %v1830_v0, %v1829_v1  ;;  %v1826_v16 = vsel %vm1525_vm1, %v6987_v38, 0.0  ;;  %v1704_v52 = vmul.f32 1.442695, %v1631_v35  ;;  %5197 = vmatprep.mubr.msk.f32.mxu0 %vm1525_vm1, %v1942_v19  ;;  %v1736_v8 = vmul.f32 1.442695, %v1647_v17 }
 0x2cc   : > { %v1827_v31 = vsel %vm1525_vm1, %v6995_v13, 0.0  ;;  %5198 = vmatmul.mubr.msk.f32.vlgmr.msra.gmra.mrb[64].mxu0 %vm1525_vm1, %v1943_v60  ;;  %v1559_v21 = vsel %vm1525_vm1, %v6901_v58, -inf  ;;  %v1702_v9 = vmul.f32 1.442695, %v1630_v28  ;;  %v1734_v63 = vmul.f32 1.442695, %v1646_v46 }
 0x2cd   : > { %5727 = vrcp.f32 %v1831_v27  ;;  %v1828_v48 = vadd.f32 %v1827_v31, %v1826_v16  ;;  %v5140_v53 = vpop.f32.mrb[58].mxu1  ;;  %v1565_v16 = vsel %vm1525_vm1, %v6905_v33, -inf }
 0x2ce   : > { %v5716_v54 = vpop.eup %5715  ;;  %5729 = vpow2.f32 %v1704_v52  ;;  %v1560_v59 = vsel %vm1525_vm1, %v5140_v53, -inf  ;;  %v1336_v50 = vpop.f32.mrb[59].mxu1 }
 0x2cf   : > { %v7008_v37 = vpop.eup %5717  ;;  %5731 = vrcp.f32 %v1828_v48  ;;  %v1561_v42 = vmax.f32 %v1559_v21, %v1560_v59  ;;  %v1557_v56 = vsel %vm1525_vm1, %v1336_v50, -inf  ;;  %v1945_v62 = vmul.f32 %v5716_v54, %v6948_v3 }
 0x2d0   : > { %v5720_v30 = vpop.eup %5719  ;;  %v1835_v55 = vsel %vm1525_vm1, %v7008_v37, 0.0  ;;  %5733 = vpow2.f32 %v1736_v8  ;;  %v1558_v47 = vmax.f32 %v1556_v39, %v1557_v56  ;;  %v7015_v20 = vmul.f32 %v5716_v54, %v6953_v51 }
 0x2d1   : > { %v7017_v60 = vpop.eup %5721  ;;  %5735 = vpow2.f32 %v1702_v9  ;;  %v1633_v10 = vsub.f32 %v6901_v58, %v1561_v42  ;;  %v1649_v41 = vsub.f32 %v5140_v53, %v1561_v42  ;;  %v1944_v49 = vmul.f32 %v5720_v30, %v6957_v6 }
 0x2d2   : > { %v7021_v1 = vpop.eup %5723  ;;  %v1836_v3 = vsel %vm1525_vm1, %v7017_v60, 0.0  ;;  %5737 = vpow2.f32 %v1734_v63  ;;  %v1632_v43 = vsub.f32 %v6903_v14, %v1558_v47  ;;  %v1648_v35 = vsub.f32 %v1336_v50, %v1558_v47 }
 0x2d3   : > { %v7026_v17 = vpop.eup %5725  ;;  %v1837_v51 = vadd.f32 %v1836_v3, %v1835_v55  ;;  %v1832_v19 = vsel %vm1525_vm1, %v7021_v1, 0.0  ;;  %v1708_v0 = vmul.f32 1.442695, %v1633_v10  ;;  %5200 = vmatprep.mubr.msk.f32.mxu0 %vm1525_vm1, %v1944_v49  ;;  %v1740_v6 = vmul.f32 1.442695, %v1649_v41 }
 0x2d4   : > { %v1833_v58 = vsel %vm1525_vm1, %v7026_v17, 0.0  ;;  %5201 = vmatmul.mubr.msk.f32.gmra.mrb[66].mxu0 %vm1525_vm1, %v1945_v62  ;;  %v7035_v28 = vmul.f32 %v5720_v30, %v6962_v44  ;;  %v1706_v46 = vmul.f32 1.442695, %v1632_v43  ;;  %v1738_v52 = vmul.f32 1.442695, %v1648_v35 }
 0x2d5   : > { %5739 = vrcp.f32 %v1837_v51  ;;  %v1834_v14 = vadd.f32 %v1833_v58, %v1832_v19  ;;  %v5143_v27 = vpop.f32.mrb[60].mxu1  ;;  %v1562_v48 = vsel %vm1525_vm1, %v6907_v40, -inf }
 0x2d6   : > { %5741 = vpow2.f32 %v1708_v0  ;;  %v1566_v31 = vsel %vm1525_vm1, %v5143_v27, -inf  ;;  %v1346_v8 = vpop.f32.mrb[61].mxu1 }
 0x2d7   : > { %v5728_v21 = vpop.eup %5727  ;;  %5743 = vrcp.f32 %v1834_v14  ;;  %v1567_v9 = vmax.f32 %v1565_v16, %v1566_v31  ;;  %v1563_v44 = vsel %vm1525_vm1, %v1346_v8, -inf  ;;  %v1568_v14 = vsel %vm1525_vm1, %v6911_v5, -inf }
 0x2d8   : > { %v7043_v53 = vpop.eup %5729  ;;  %5745 = vpow2.f32 %v1740_v6  ;;  %v1564_v54 = vmax.f32 %v1562_v48, %v1563_v44  ;;  %v1947_v39 = vmul.f32 %v5728_v21, %v6974_v61  ;;  %v7047_v63 = vmul.f32 %v5728_v21, %v6983_v36 }
 0x2d9   : > { %v5732_v59 = vpop.eup %5731  ;;  %v1841_v50 = vsel %vm1525_vm1, %v7043_v53, 0.0  ;;  %5747 = vpow2.f32 %v1706_v46  ;;  %v1635_v42 = vsub.f32 %v6905_v33, %v1567_v9  ;;  %v1651_v56 = vsub.f32 %v5143_v27, %v1567_v9 }
 0x2da   : > { %v7052_v62 = vpop.eup %5733  ;;  %5749 = vpow2.f32 %v1738_v52  ;;  %v1634_v30 = vsub.f32 %v6907_v40, %v1564_v54  ;;  %v1650_v55 = vsub.f32 %v1346_v8, %v1564_v54  ;;  %v1946_v47 = vmul.f32 %v5732_v59, %v6987_v38 }
 0x2db   : > { %v7056_v61 = vpop.eup %5735  ;;  %v1842_v36 = vsel %vm1525_vm1, %v7052_v62, 0.0  ;;  %v1712_v10 = vmul.f32 1.442695, %v1635_v42  ;;  %v1744_v41 = vmul.f32 1.442695, %v1651_v56  ;;  %v7061_v49 = vmul.f32 %v5732_v59, %v6995_v13 }
 0x2dc   : > { %v7063_v33 = vpop.eup %5737  ;;  %v1843_v3 = vadd.f32 %v1842_v36, %v1841_v50  ;;  %v1838_v43 = vsel %vm1525_vm1, %v7056_v61, 0.0  ;;  %5203 = vmatprep.mubr.msk.f32.mxu0 %vm1525_vm1, %v1946_v47  ;;  %v1571_v40 = vsel %vm1525_vm1, %v6909_v32, -inf  ;;  %v1710_v35 = vmul.f32 1.442695, %v1634_v30 }
 0x2dd   : > { %v1839_v38 = vsel %vm1525_vm1, %v7063_v33, 0.0  ;;  %5751 = vpow2.f32 %v1712_v10  ;;  %5204 = vmatmul.mubr.msk.f32.gmra.mrb[68].mxu0 %vm1525_vm1, %v1947_v39  ;;  %v5146_v13 = vpop.f32.mrb[62].mxu1  ;;  %v1742_v19 = vmul.f32 1.442695, %v1650_v55 }
 0x2de   : > { %5753 = vrcp.f32 %v1843_v3  ;;  %v1840_v51 = vadd.f32 %v1839_v38, %v1838_v43  ;;  %v1572_v0 = vsel %vm1525_vm1, %v5146_v13, -inf  ;;  %v1356_v58 = vpop.f32.mrb[63].mxu1 }
 0x2df   : > { %v5740_v6 = vpop.eup %5739  ;;  %5755 = vpow2.f32 %v1744_v41  ;;  %v1573_v46 = vmax.f32 %v1571_v40, %v1572_v0  ;;  %v1569_v27 = vsel %vm1525_vm1, %v1356_v58, -inf }
 0x2e0   : > { %v7077_v16 = vpop.eup %5741  ;;  %5757 = vrcp.f32 %v1840_v51  ;;  %v1570_v52 = vmax.f32 %v1568_v14, %v1569_v27  ;;  %v1949_v31 = vmul.f32 %v5740_v6, %v7008_v37  ;;  %v7081_v8 = vmul.f32 %v5740_v6, %v7017_v60 }
 0x2e1   : > { %v5744_v21 = vpop.eup %5743  ;;  %v1847_v48 = vsel %vm1525_vm1, %v7077_v16, 0.0  ;;  %5759 = vpow2.f32 %v1710_v35  ;;  %v1637_v9 = vsub.f32 %v6909_v32, %v1573_v46  ;;  %v1653_v44 = vsub.f32 %v5146_v13, %v1573_v46  ;;  %v7086_v54 = vpop.f32.mrb[64].mxu1 }
 0x2e2   : > { %v7088_v39 = vpop.eup %5745  ;;  %5761 = vpow2.f32 %v1742_v19  ;;  %v1636_v59 = vsub.f32 %v6911_v5, %v1570_v52  ;;  %v1652_v50 = vsub.f32 %v1356_v58, %v1570_v52  ;;  %v7091_v37 = vpop.f32.mrb[65].mxu1  ;;  %v1948_v32 = vmul.f32 %v5744_v21, %v7021_v1 }
 0x2e3   : > { %v7093_v60 = vpop.eup %5747  ;;  %v1848_v42 = vsel %vm1525_vm1, %v7088_v39, 0.0  ;;  %v1716_v56 = vmul.f32 1.442695, %v1637_v9  ;;  %v1748_v30 = vmul.f32 1.442695, %v1653_v44  ;;  %v7108_v3 = vmul.f32 %v5744_v21, %v7026_v17 }
 0x2e4   : > { %v7098_v55 = vpop.eup %5749  ;;  %v1849_v47 = vadd.f32 %v1848_v42, %v1847_v48  ;;  %v1844_v36 = vsel %vm1525_vm1, %v7093_v60, 0.0  ;;  %v1714_v10 = vmul.f32 1.442695, %v1636_v59  ;;  %5206 = vmatprep.mubr.msk.f32.mxu0 %vm1525_vm1, %v1948_v32  ;;  %v1746_v43 = vmul.f32 1.442695, %v1652_v50  ;;  %v2686_v48 = vld [vmem:[%s8989_s5 + $0x8] sm:$0xff] }
 0x2e5   : > { %v1845_v5 = vsel %vm1525_vm1, %v7098_v55, 0.0  ;;  %5763 = vpow2.f32 %v1716_v56  ;;  %v7105_v41 = vpop.f32.mrb[66].mxu1  ;;  %5207 = vmatmul.mubr.msk.f32.gmra.mrb[70].mxu0 %vm1525_vm1, %v1949_v31  ;;  %v2687_v42 = vld [vmem:[%s8989_s5 + $0x10] sm:$0xff]  ;;  %v2688_v56 = vld [vmem:[%s8989_s5 + $0x18] sm:$0xff] }
 0x2e6   : > { %5765 = vrcp.f32 %v1849_v47  ;;  %v1846_v1 = vadd.f32 %v1845_v5, %v1844_v36  ;;  %v7111_v40 = vpop.f32.mrb[67].mxu1  ;;  %v5473_v36 = vpack.c.bf16 %v2688_v56, %v2687_v42  ;;  %v2690_v5 = vld [vmem:[%s8989_s5 + $0x28] sm:$0xff] }
 0x2e7   : > { %v7113_v38 = vpop.eup %5751  ;;  %5767 = vpow2.f32 %v1748_v30  ;;  %v2689_v30 = vld [vmem:[%s8989_s5 + $0x20] sm:$0xff] }
 0x2e8   : > { %v5754_v35 = vpop.eup %5753  ;;  %5769 = vrcp.f32 %v1846_v1  ;;  %v1853_v13 = vsel %vm1525_vm1, %v7113_v38, 0.0 }
 0x2e9   : > { %v7117_v51 = vpop.eup %5755  ;;  %5771 = vpow2.f32 %v1714_v10  ;;  %v7119_v17 = vpop.f32.mrb[68].mxu1  ;;  %v1951_v19 = vmul.f32 %v5754_v35, %v7043_v53  ;;  %v7123_v0 = vmul.f32 %v5754_v35, %v7052_v62  ;;  %v2685_v62 = vld [vmem:[%s8989_s5] sm:$0xff] }
 0x2ea   : > { %v5758_v58 = vpop.eup %5757  ;;  %v1854_v6 = vsel %vm1525_vm1, %v7117_v51, 0.0  ;;  %5773 = vpow2.f32 %v1746_v43  ;;  %v7127_v14 = vpop.f32.mrb[69].mxu1 }
 0x2eb   : > { %v7129_v46 = vpop.eup %5759  ;;  %v1855_v27 = vadd.f32 %v1854_v6, %v1853_v13  ;;  %v1950_v52 = vmul.f32 %v5758_v58, %v7056_v61  ;;  %v7133_v31 = vmul.f32 %v5758_v58, %v7063_v33  ;;  %v5469_v33 = vpack.c.bf16 %v2686_v48, %v2685_v62 }
 0x2ec   : > { %v5762_v21 = vpop.eup %5761  ;;  %v1850_v53 = vsel %vm1525_vm1, %v7129_v46, 0.0  ;;  %v5477_v13 = vpack.c.bf16 %v2690_v5, %v2689_v30 }
 0x2ed   : > { %5775 = vrcp.f32 %v1855_v27  ;;  %v1851_v9 = vsel %vm1525_vm1, %v5762_v21, 0.0  ;;  %5209 = vmatprep.mubr.msk.f32.mxu0 %vm1525_vm1, %v1950_v52  ;;  %v7145_v61 = vpop.f32.mrb[70].mxu1  ;;  %5470 = vmatprep.subr.bf16.mxu1 %v5469_v33  ;;  %v2691_v27 = vld [vmem:[%s8989_s5 + $0x30] sm:$0xff]  ;;  %v2692_v52 = vld [vmem:[%s8989_s5 + $0x38] sm:$0xff] }
 0x2ee   : > { %v1852_v44 = vadd.f32 %v1851_v9, %v1850_v53  ;;  %5210 = vmatmul.mubr.msk.f32.gmra.mrb[72].mxu0 %vm1525_vm1, %v1951_v19  ;;  %v7148_v59 = vpop.f32.mrb[71].mxu1  ;;  %5472 = vmatpush3.bf16.msra.mxu1 %v5469_v33  ;;  %v5481_v42 = vpack.c.bf16 %v2692_v52, %v2691_v27  ;;  %v1577_v52 = vsel %vm1525_vm1, %v7086_v54, -inf }
 0x2ef   : > { %v5764_v50 = vpop.eup %5763  ;;  %5474 = vmatprep.subr.bf16.mxu1 %v5473_v36 }
 0x2f0   : > { %v5766_v32 = vpop.eup %5765  ;;  %5777 = vrcp.f32 %v1852_v44  ;;  %v1859_v47 = vsel %vm1525_vm1, %v5764_v50, 0.0 }
 0x2f1   : > { %v5768_v10 = vpop.eup %5767  ;;  %v7163_v1 = vpop.f32.mrb[72].mxu1  ;;  %v1953_v43 = vmul.f32 %v5766_v32, %v7077_v16  ;;  %v7167_v35 = vmul.f32 %v5766_v32, %v7088_v39 }
 0x2f2   : > { %v5770_v19 = vpop.eup %5769  ;;  %v1860_v58 = vsel %vm1525_vm1, %v5768_v10, 0.0  ;;  %v7170_v6 = vpop.f32.mrb[73].mxu1  ;;  %5476 = vmatpush3.bf16.msra.mxu1 %v5473_v36  ;;  %v7233_v12 = vsel %vm1525_vm1, %v7163_v1, -inf }
 0x2f3   : > { %v5772_v53 = vpop.eup %5771  ;;  %v1861_v16 = vadd.f32 %v1860_v58, %v1859_v47  ;;  %v1952_v39 = vmul.f32 %v5770_v19, %v7093_v60  ;;  %v7180_v62 = vmul.f32 %v5770_v19, %v7098_v55  ;;  %5478 = vmatprep.subr.bf16.mxu1 %v5477_v13 }
 0x2f4   : > { %v5774_v48 = vpop.eup %5773  ;;  %v1856_v9 = vsel %vm1525_vm1, %v5772_v53, 0.0 }
 0x2f5   : > { %5779 = vrcp.f32 %v1861_v16  ;;  %v1857_v33 = vsel %vm1525_vm1, %v5774_v48, 0.0  ;;  %5212 = vmatprep.mubr.msk.f32.mxu0 %vm1525_vm1, %v1952_v39  ;;  %v7185_v44 = vpop.f32.mrb[74].mxu1  ;;  %v1583_v39 = vsel %vm1525_vm1, %v7105_v41, -inf }
 0x2f6   : > { %v1858_v56 = vadd.f32 %v1857_v33, %v1856_v9  ;;  %5213 = vmatmul.mubr.msk.f32.gmra.mrb[74].mxu0 %vm1525_vm1, %v1953_v43  ;;  %v7188_v60 = vpop.f32.mrb[75].mxu1  ;;  %5480 = vmatpush3.bf16.msra.mxu1 %v5477_v13  ;;  %v1580_v9 = vsel %vm1525_vm1, %v7111_v40, -inf  ;;  %v1589_v33 = vsel %vm1525_vm1, %v7119_v17, -inf }
 0x2f7   : > { %v5776_v55 = vpop.eup %5775  ;;  %5482 = vmatprep.subr.bf16.mxu1 %v5481_v42 }
 0x2f8   : > { %5781 = vrcp.f32 %v1858_v56  ;;  %v1955_v30 = vmul.f32 %v5776_v55, %v7113_v38  ;;  %v7192_v32 = vmul.f32 %v5776_v55, %v7117_v51 }
 0x2f9   : > { %v7194_v47 = vpop.f32.mrb[76].mxu1 }
 0x2fa   : > { %v5778_v36 = vpop.eup %5777  ;;  %v7196_v5 = vpop.f32.mrb[77].mxu1  ;;  %5484 = vmatpush3.bf16.msra.mxu1 %v5481_v42 }
 0x2fb   : > { %v1954_v19 = vmul.f32 %v5778_v36, %v7129_v46  ;;  %v7199_v58 = vmul.f32 %v5778_v36, %v5762_v21  ;;  %v1574_v46 = vsel %vm1525_vm1, %v7091_v37, -inf  ;;  %v1586_v36 = vsel %vm1525_vm1, %v7127_v14, -inf }
 0x2fd   : > { %5215 = vmatprep.mubr.msk.f32.mxu0 %vm1525_vm1, %v1954_v19  ;;  %v7202_v43 = vpop.f32.mrb[78].mxu1  ;;  %v1595_v19 = vsel %vm1525_vm1, %v7145_v61, -inf }
 0x2fe   : > { %5216 = vmatmul.mubr.msk.f32.gmra.mrb[76].mxu0 %vm1525_vm1, %v1955_v30  ;;  %v7205_v38 = vpop.f32.mrb[79].mxu1 }
 0x2ff   : > { %v5780_v51 = vpop.eup %5779 }
 0x300   : > { %v1957_v13 = vmul.f32 %v5780_v51, %v5764_v50  ;;  %v7207_v27 = vmul.f32 %v5780_v51, %v5768_v10  ;;  %v7229_v51 = vsel %vm1525_vm1, %v7148_v59, -inf }
 0x301   : > { %v5173_v21 = vpop.f32.mrb[80].mxu1 }
 0x302   : > { %v5782_v16 = vpop.eup %5781  ;;  %v1578_v50 = vsel %vm1525_vm1, %v5173_v21, -inf  ;;  %v1446_v10 = vpop.f32.mrb[81].mxu1 }
 0x303   : > { %v1579_v42 = vmax.f32 %v1577_v52, %v1578_v50  ;;  %v1956_v56 = vmul.f32 %v5782_v16, %v5772_v53  ;;  %v1575_v55 = vsel %vm1525_vm1, %v1446_v10, -inf  ;;  %v7221_v30 = vmul.f32 %v5782_v16, %v5774_v48 }
 0x304   : > { %v1576_v34 = vmax.f32 %v1574_v46, %v1575_v55  ;;  %v7237_v53 = vsel %vm1525_vm1, %v7170_v6, -inf  ;;  %v7243_v50 = vsel %vm1525_vm1, %v7185_v44, -inf }
 0x305   : > { %v1655_v48 = vsub.f32 %v7086_v54, %v1579_v42  ;;  %v1671_v52 = vsub.f32 %v5173_v21, %v1579_v42  ;;  %5218 = vmatprep.mubr.msk.f32.mxu0 %vm1525_vm1, %v1956_v56  ;;  %v5176_v16 = vpop.f32.mrb[82].mxu1  ;;  %v7253_v42 = vsel %vm1525_vm1, %v7188_v60, -inf }
 0x306   : > { %v1654_v46 = vsub.f32 %v7091_v37, %v1576_v34  ;;  %v1670_v55 = vsub.f32 %v1446_v10, %v1576_v34  ;;  %5219 = vmatmul.mubr.msk.f32.gmra.mrb[78].mxu0 %vm1525_vm1, %v1957_v13  ;;  %v1584_v29 = vsel %vm1525_vm1, %v5176_v16, -inf  ;;  %v1456_v7 = vpop.f32.mrb[83].mxu1  ;;  %v7257_v13 = vsel %vm1525_vm1, %v7194_v47, -inf }
 0x307   : > { %v1752_v23 = vmul.f32 1.442695, %v1655_v48  ;;  %v1784_v25 = vmul.f32 1.442695, %v1671_v52  ;;  %5221 = vmatprep.mubr.msk.f32.mxu0 %vm1525_vm1, %v6993_v45  ;;  %v1585_v54 = vmax.f32 %v1583_v39, %v1584_v29  ;;  %v1581_v21 = vsel %vm1525_vm1, %v1456_v7, -inf }
 0x308   : > { %v1750_v56 = vmul.f32 1.442695, %v1654_v46  ;;  %v1782_v37 = vmul.f32 1.442695, %v1670_v55  ;;  %v1582_v34 = vmax.f32 %v1580_v9, %v1581_v21  ;;  %v7270_v21 = vsel %vm1525_vm1, %v7196_v5, -inf }
 0x309   : > { %5783 = vpow2.f32 %v1752_v23  ;;  %v1657_v10 = vsub.f32 %v7105_v41, %v1585_v54  ;;  %v1673_v48 = vsub.f32 %v5176_v16, %v1585_v54  ;;  %v5179_v52 = vpop.f32.mrb[84].mxu1 }
 0x30a   : > { %5785 = vpow2.f32 %v1784_v25  ;;  %v1656_v29 = vsub.f32 %v7111_v40, %v1582_v34  ;;  %v1672_v45 = vsub.f32 %v1456_v7, %v1582_v34  ;;  %5222 = vmatmul.mubr.msk.f32.gmra.mrb[80].mxu0 %vm1525_vm1, %v6981_v18  ;;  %v1590_v39 = vsel %vm1525_vm1, %v5179_v52, -inf  ;;  %v1466_v46 = vpop.f32.mrb[85].mxu1 }
 0x30b   : > { %5787 = vpow2.f32 %v1750_v56  ;;  %v1756_v9 = vmul.f32 1.442695, %v1657_v10  ;;  %v1788_v55 = vmul.f32 1.442695, %v1673_v48  ;;  %5224 = vmatprep.mubr.msk.f32.mxu0 %vm1525_vm1, %v7035_v28  ;;  %v1591_v23 = vmax.f32 %v1589_v33, %v1590_v39 }
 0x30c   : > { %5789 = vpow2.f32 %v1782_v37  ;;  %v1754_v41 = vmul.f32 1.442695, %v1656_v29  ;;  %v1786_v16 = vmul.f32 1.442695, %v1672_v45  ;;  %v1587_v25 = vsel %vm1525_vm1, %v1466_v46, -inf }
 0x30d   : > { %5791 = vpow2.f32 %v1756_v9  ;;  %v1659_v7 = vsub.f32 %v7119_v17, %v1591_v23  ;;  %v1675_v40 = vsub.f32 %v5179_v52, %v1591_v23  ;;  %v1588_v18 = vmax.f32 %v1586_v36, %v1587_v25  ;;  %v5182_v54 = vpop.f32.mrb[86].mxu1 }
 0x30e   : > { %v7274_v56 = vsel %vm1525_vm1, %v7202_v43, -inf  ;;  %5793 = vpow2.f32 %v1788_v55  ;;  %5225 = vmatmul.mubr.msk.f32.gmra.mrb[82].mxu0 %vm1525_vm1, %v7015_v20  ;;  %v1596_v28 = vsel %vm1525_vm1, %v5182_v54, -inf  ;;  %v1476_v33 = vpop.f32.mrb[87].mxu1  ;;  %v7285_v52 = vsel %vm1525_vm1, %v7205_v38, -inf }
 0x30f   : > { %5795 = vpow2.f32 %v1754_v41  ;;  %v1760_v17 = vmul.f32 1.442695, %v1659_v7  ;;  %v1792_v37 = vmul.f32 1.442695, %v1675_v40  ;;  %v1658_v36 = vsub.f32 %v7127_v14, %v1588_v18  ;;  %5227 = vmatprep.mubr.msk.f32.mxu0 %vm1525_vm1, %v7061_v49 }
 0x310   : > { %5797 = vpow2.f32 %v1786_v16  ;;  %v1674_v34 = vsub.f32 %v1466_v46, %v1588_v18  ;;  %v1597_v10 = vmax.f32 %v1595_v19, %v1596_v28  ;;  %v1593_v48 = vsel %vm1525_vm1, %v1476_v33, -inf }
 0x311   : > { %5799 = vpow2.f32 %v1760_v17  ;;  %v1758_v20 = vmul.f32 1.442695, %v1658_v36  ;;  %v1594_v29 = vmax.f32 %v7229_v51, %v1593_v48  ;;  %v5185_v45 = vpop.f32.mrb[88].mxu1 }
 0x312   : > { %5801 = vpow2.f32 %v1792_v37  ;;  %v1790_v39 = vmul.f32 1.442695, %v1674_v34  ;;  %v1661_v14 = vsub.f32 %v7145_v61, %v1597_v10  ;;  %v1677_v9 = vsub.f32 %v5182_v54, %v1597_v10  ;;  %5228 = vmatmul.mubr.msk.f32.gmra.mrb[84].mxu0 %vm1525_vm1, %v7047_v63  ;;  %v7291_v49 = vpop.f32.mrb[89].mxu1 }
 0x313   : > { %v7293_v19 = vpop.eup %5783  ;;  %5803 = vpow2.f32 %v1758_v20  ;;  %v1660_v46 = vsub.f32 %v7148_v59, %v1594_v29  ;;  %v1676_v55 = vsub.f32 %v1476_v33, %v1594_v29  ;;  %5230 = vmatprep.mubr.msk.f32.mxu0 %vm1525_vm1, %v7108_v3  ;;  %v1602_v51 = vsel %vm1525_vm1, %v5185_v45, -inf }
 0x314   : > { %v7299_v23 = vpop.eup %5785  ;;  %v1865_v61 = vsel %vm1525_vm1, %v7293_v19, 0.0  ;;  %5805 = vpow2.f32 %v1790_v39  ;;  %v1764_v63 = vmul.f32 1.442695, %v1661_v14  ;;  %v1796_v41 = vmul.f32 1.442695, %v1677_v9 }
 0x315   : > { %v7303_v16 = vpop.eup %5787  ;;  %v1866_v25 = vsel %vm1525_vm1, %v7299_v23, 0.0  ;;  %v1762_v59 = vmul.f32 1.442695, %v1660_v46  ;;  %v1794_v7 = vmul.f32 1.442695, %v1676_v55  ;;  %v1603_v40 = vmax.f32 %v7233_v12, %v1602_v51  ;;  %v7308_v3 = vpop.f32.mrb[90].mxu1 }
 0x316   : > { %v7310_v18 = vpop.eup %5789  ;;  %v1867_v54 = vadd.f32 %v1866_v25, %v1865_v61  ;;  %v1862_v28 = vsel %vm1525_vm1, %v7303_v16, 0.0  ;;  %5807 = vpow2.f32 %v1764_v63  ;;  %v1599_v33 = vsel %vm1525_vm1, %v7291_v49, -inf  ;;  %5231 = vmatmul.mubr.msk.f32.gmra.mrb[86].mxu0 %vm1525_vm1, %v7081_v8  ;;  %v7318_v17 = vpop.f32.mrb[91].mxu1 }
 0x317   : > { %v7320_v37 = vpop.eup %5791  ;;  %v1863_v12 = vsel %vm1525_vm1, %v7310_v18, 0.0  ;;  %5809 = vpow2.f32 %v1796_v41  ;;  %v1663_v36 = vsub.f32 %v7163_v1, %v1603_v40  ;;  %v1679_v34 = vsub.f32 %v5185_v45, %v1603_v40  ;;  %5233 = vmatprep.mubr.msk.f32.mxu0 %vm1525_vm1, %v7133_v31 }
 0x318   : > { %v7327_v10 = vpop.eup %5793  ;;  %5811 = vrcp.f32 %v1867_v54  ;;  %v1864_v48 = vadd.f32 %v1863_v12, %v1862_v28  ;;  %v1871_v8 = vsel %vm1525_vm1, %v7320_v37, 0.0  ;;  %v1600_v20 = vmax.f32 %v7237_v53, %v1599_v33 }
 0x319   : > { %v7332_v29 = vpop.eup %5795  ;;  %v1872_v39 = vsel %vm1525_vm1, %v7327_v10, 0.0  ;;  %5813 = vpow2.f32 %v1762_v59  ;;  %v1768_v1 = vmul.f32 1.442695, %v1663_v36  ;;  %v1800_v45 = vmul.f32 1.442695, %v1679_v34  ;;  %v7336_v14 = vpop.f32.mrb[92].mxu1 }
 0x31a   : > { %v7338_v31 = vpop.eup %5797  ;;  %5815 = vrcp.f32 %v1864_v48  ;;  %v1873_v9 = vadd.f32 %v1872_v39, %v1871_v8  ;;  %v1868_v46 = vsel %vm1525_vm1, %v7332_v29, 0.0  ;;  %v1662_v55 = vsub.f32 %v7170_v6, %v1600_v20  ;;  %5234 = vmatmul.mubr.msk.f32.gmra.mrb[88].mxu0 %vm1525_vm1, %v7123_v0  ;;  %v7345_v53 = vpop.f32.mrb[93].mxu1 }
 0x31b   : > { %v7347_v51 = vpop.eup %5799  ;;  %v1869_v61 = vsel %vm1525_vm1, %v7338_v31, 0.0  ;;  %5817 = vpow2.f32 %v1794_v7  ;;  %v1678_v63 = vsub.f32 %v7291_v49, %v1600_v20  ;;  %v1608_v41 = vsel %vm1525_vm1, %v7308_v3, -inf  ;;  %5236 = vmatprep.mubr.msk.f32.mxu0 %vm1525_vm1, %v7180_v62 }
 0x31c   : > { %v7356_v6 = vpop.eup %5801  ;;  %5819 = vrcp.f32 %v1873_v9  ;;  %v1870_v0 = vadd.f32 %v1869_v61, %v1868_v46  ;;  %v1877_v25 = vsel %vm1525_vm1, %v7347_v51, 0.0  ;;  %v1766_v59 = vmul.f32 1.442695, %v1662_v55 }
 0x31d   : > { %v7360_v40 = vpop.eup %5803  ;;  %v1878_v7 = vsel %vm1525_vm1, %v7356_v6, 0.0  ;;  %5821 = vpow2.f32 %v1768_v1  ;;  %v1798_v49 = vmul.f32 1.442695, %v1678_v63  ;;  %v1609_v54 = vmax.f32 %v7243_v50, %v1608_v41  ;;  %v7365_v28 = vpop.f32.mrb[94].mxu1 }
 0x31e   : > { %v7367_v62 = vpop.eup %5805  ;;  %5823 = vrcp.f32 %v1870_v0  ;;  %v1879_v33 = vadd.f32 %v1878_v7, %v1877_v25  ;;  %v1874_v12 = vsel %vm1525_vm1, %v7360_v40, 0.0  ;;  %v1605_v36 = vsel %vm1525_vm1, %v7318_v17, -inf  ;;  %5237 = vmatmul.mubr.msk.f32.gmra.mrb[90].mxu0 %vm1525_vm1, %v7167_v35  ;;  %v7375_v34 = vpop.f32.mrb[95].mxu1 }
 0x31f   : > { %v1875_v50 = vsel %vm1525_vm1, %v7367_v62, 0.0  ;;  %5825 = vpow2.f32 %v1800_v45  ;;  %v1665_v48 = vsub.f32 %v7185_v44, %v1609_v54  ;;  %v1681_v8 = vsub.f32 %v7308_v3, %v1609_v54  ;;  %5239 = vmatprep.mubr.msk.f32.mxu0 %vm1525_vm1, %v7199_v58 }
 0x320   : > { %v7383_v20 = vpop.eup %5807  ;;  %5827 = vrcp.f32 %v1879_v33  ;;  %v1876_v39 = vadd.f32 %v1875_v50, %v1874_v12  ;;  %v1606_v1 = vmax.f32 %v7253_v42, %v1605_v36  ;;  %v1614_v35 = vsel %vm1525_vm1, %v7336_v14, -inf }
 0x321   : > { %v7388_v9 = vpop.eup %5809  ;;  %v1883_v45 = vsel %vm1525_vm1, %v7383_v20, 0.0  ;;  %5829 = vpow2.f32 %v1766_v59  ;;  %v1772_v44 = vmul.f32 1.442695, %v1665_v48  ;;  %v1804_v3 = vmul.f32 1.442695, %v1681_v8 }
 0x322   : > { %v7392_v46 = vpop.eup %5811  ;;  %5831 = vrcp.f32 %v1876_v39  ;;  %v1884_v58 = vsel %vm1525_vm1, %v7388_v9, 0.0  ;;  %v1664_v55 = vsub.f32 %v7188_v60, %v1606_v1  ;;  %v1680_v42 = vsub.f32 %v7318_v17, %v1606_v1  ;;  %5240 = vmatmul.mubr.msk.f32.gmra.mrb[92].mxu0 %vm1525_vm1, %v7192_v32 }
 0x323   : > { %v7400_v61 = vpop.eup %5813  ;;  %v1885_v63 = vadd.f32 %v1884_v58, %v1883_v45  ;;  %5833 = vpow2.f32 %v1798_v49  ;;  %v1615_v41 = vmax.f32 %v7257_v13, %v1614_v35  ;;  %v1611_v0 = vsel %vm1525_vm1, %v7345_v53, -inf  ;;  %5242 = vmatprep.mubr.msk.f32.mxu0 %vm1525_vm1, %v7221_v30 }
 0x324   : > { %v7407_v25 = vpop.eup %5815  ;;  %v1880_v60 = vsel %vm1525_vm1, %v7400_v61, 0.0  ;;  %5835 = vpow2.f32 %v1772_v44  ;;  %v1770_v17 = vmul.f32 1.442695, %v1664_v55  ;;  %v1802_v32 = vmul.f32 1.442695, %v1680_v42 }
 0x325   : > { %v7411_v59 = vpop.eup %5817  ;;  %5837 = vrcp.f32 %v1885_v63  ;;  %v1667_v7 = vsub.f32 %v7194_v47, %v1615_v41  ;;  %v1683_v13 = vsub.f32 %v7336_v14, %v1615_v41  ;;  %v1612_v49 = vmax.f32 %v7270_v21, %v1611_v0 }
 0x326   : > { %v7416_v54 = vpop.eup %5819  ;;  %v1881_v30 = vsel %vm1525_vm1, %v7411_v59, 0.0  ;;  %5839 = vpow2.f32 %v1804_v3  ;;  %v1620_v33 = vsel %vm1525_vm1, %v7365_v28, -inf  ;;  %v1617_v12 = vsel %vm1525_vm1, %v7375_v34, -inf  ;;  %5243 = vmatmul.mubr.msk.f32.gmra.mrb[94].mxu0 %vm1525_vm1, %v7207_v27 }
 0x327   : > { %v7426_v47 = vpop.eup %5821  ;;  %v1882_v14 = vadd.f32 %v1881_v30, %v1880_v60  ;;  %5841 = vpow2.f32 %v1770_v17  ;;  %v1776_v21 = vmul.f32 1.442695, %v1667_v7  ;;  %v1808_v36 = vmul.f32 1.442695, %v1683_v13 }
 0x328   : > { %v7428_v50 = vpop.eup %5823  ;;  %v1889_v48 = vsel %vm1525_vm1, %v7426_v47, 0.0  ;;  %5843 = vpow2.f32 %v1802_v32  ;;  %v1666_v8 = vsub.f32 %v7196_v5, %v1612_v49  ;;  %v1682_v39 = vsub.f32 %v7345_v53, %v1612_v49 }
 0x329   : > { %v7434_v1 = vpop.eup %5825  ;;  %5845 = vrcp.f32 %v1882_v14  ;;  %v1621_v27 = vmax.f32 %v7274_v56, %v1620_v33  ;;  %v1618_v35 = vmax.f32 %v7285_v52, %v1617_v12  ;;  %v1974_v45 = vmul.f32 %v7407_v25, %v7303_v16 }
 0x32a   : > { %v7440_v44 = vpop.eup %5827  ;;  %v1890_v3 = vsel %vm1525_vm1, %v7434_v1, 0.0  ;;  %5847 = vpow2.f32 %v1776_v21  ;;  %v1774_v58 = vmul.f32 1.442695, %v1666_v8  ;;  %v1806_v5 = vmul.f32 1.442695, %v1682_v39  ;;  %v2693_v39 = vld [vmem:[%s8989_s5 + $0x40] sm:$0xff] }
 0x32b   : > { %v7444_v55 = vpop.eup %5829  ;;  %v1891_v53 = vadd.f32 %v1890_v3, %v1889_v48  ;;  %5849 = vpow2.f32 %v1808_v36  ;;  %v1669_v42 = vsub.f32 %v7202_v43, %v1621_v27  ;;  %v1685_v56 = vsub.f32 %v7365_v28, %v1621_v27  ;;  %5245 = vmatprep.mubr.msk.f32.mxu0 %vm1525_vm1, %v1974_v45 }
 0x32c   : > { %v5832_v52 = vpop.eup %5831  ;;  %v1886_v16 = vsel %vm1525_vm1, %v7444_v55, 0.0  ;;  %5851 = vpow2.f32 %v1774_v58  ;;  %v1668_v63 = vsub.f32 %v7205_v38, %v1618_v35  ;;  %v1684_v41 = vsub.f32 %v7375_v34, %v1618_v35  ;;  %v2696_v35 = vld [vmem:[%s8989_s5 + $0x58] sm:$0xff] }
 0x32d   : > { %v7453_v0 = vpop.eup %5833  ;;  %5853 = vrcp.f32 %v1891_v53  ;;  %v1780_v60 = vmul.f32 1.442695, %v1669_v42  ;;  %v1812_v17 = vmul.f32 1.442695, %v1685_v56  ;;  %v1975_v43 = vmul.f32 %v7392_v46, %v7293_v19 }
 0x32e   : > { %v7457_v28 = vpop.eup %5835  ;;  %v1887_v32 = vsel %vm1525_vm1, %v7453_v0, 0.0  ;;  %5855 = vpow2.f32 %v1806_v5  ;;  %v1778_v7 = vmul.f32 1.442695, %v1668_v63  ;;  %v1810_v13 = vmul.f32 1.442695, %v1684_v41 }
 0x32f   : > { %v5838_v49 = vpop.eup %5837  ;;  %v1888_v38 = vadd.f32 %v1887_v32, %v1886_v16  ;;  %v1895_v34 = vsel %vm1525_vm1, %v7457_v28, 0.0  ;;  %5857 = vpow2.f32 %v1780_v60  ;;  %5246 = vmatmul.mubr.msk.f32.gmra.mrb[96].mxu0 %vm1525_vm1, %v1975_v43  ;;  %v1976_v30 = vmul.f32 %v7428_v50, %v7332_v29 }
 0x330   : > { %v7466_v19 = vpop.eup %5839  ;;  %5859 = vpow2.f32 %v1812_v17  ;;  %v1977_v33 = vmul.f32 %v7416_v54, %v7320_v37  ;;  %v1978_v12 = vmul.f32 %v5832_v52, %v7360_v40  ;;  %v1979_v14 = vmul.f32 %v7440_v44, %v7347_v51 }
 0x331   : > { %v7473_v21 = vpop.eup %5841  ;;  %5861 = vrcp.f32 %v1888_v38  ;;  %v1896_v36 = vsel %vm1525_vm1, %v7466_v19, 0.0  ;;  %5248 = vmatprep.mubr.msk.f32.mxu0 %vm1525_vm1, %v1976_v30  ;;  %v1981_v29 = vmul.f32 %v5838_v49, %v7383_v20  ;;  %v7481_v48 = vmul.f32 %v7407_v25, %v7310_v18 }
 0x332   : > { %v7483_v37 = vpop.eup %5843  ;;  %v1897_v40 = vadd.f32 %v1896_v36, %v1895_v34  ;;  %v1892_v51 = vsel %vm1525_vm1, %v7473_v21, 0.0  ;;  %5863 = vpow2.f32 %v1778_v7  ;;  %v7489_v8 = vmul.f32 %v7392_v46, %v7299_v23  ;;  %v2694_v23 = vld [vmem:[%s8989_s5 + $0x48] sm:$0xff]  ;;  %v2695_v46 = vld [vmem:[%s8989_s5 + $0x50] sm:$0xff] }
 0x333   : > { %v5846_v20 = vpop.eup %5845  ;;  %v1893_v18 = vsel %vm1525_vm1, %v7483_v37, 0.0  ;;  %5865 = vpow2.f32 %v1810_v13  ;;  %5249 = vmatmul.mubr.msk.f32.gmra.mrb[98].mxu0 %vm1525_vm1, %v1977_v33  ;;  %v7499_v25 = vmul.f32 %v7428_v50, %v7338_v31  ;;  %v7503_v27 = vmul.f32 %v7416_v54, %v7327_v10 }
 0x334   : > { %v5848_v45 = vpop.eup %5847  ;;  %5867 = vrcp.f32 %v1897_v40  ;;  %v1894_v31 = vadd.f32 %v1893_v18, %v1892_v51  ;;  %5251 = vmatprep.mubr.msk.f32.mxu0 %vm1525_vm1, %v1978_v12  ;;  %v1980_v10 = vmul.f32 %v5846_v20, %v7400_v61  ;;  %v7517_v54 = vmul.f32 %v5832_v52, %v7367_v62  ;;  %v2697_v51 = vld [vmem:[%s8989_s5 + $0x60] sm:$0xff] }
 0x335   : > { %v5850_v50 = vpop.eup %5849  ;;  %v1901_v3 = vsel %vm1525_vm1, %v5848_v45, 0.0  ;;  %v7522_v58 = vmul.f32 %v7440_v44, %v7356_v6  ;;  %v7525_v5 = vmul.f32 %v5846_v20, %v7411_v59  ;;  %v7528_v53 = vmul.f32 %v5838_v49, %v7388_v9 }
 0x336   : > { %v5852_v42 = vpop.eup %5851  ;;  %5869 = vrcp.f32 %v1894_v31  ;;  %v1902_v61 = vsel %vm1525_vm1, %v5850_v50, 0.0  ;;  %v5485_v56 = vpack.c.bf16 %v2694_v23, %v2693_v39  ;;  %v5489_v62 = vpack.c.bf16 %v2696_v35, %v2695_v46  ;;  %v2698_v39 = vld [vmem:[%s8989_s5 + $0x68] sm:$0xff] }
 0x337   : > { %v5854_v52 = vpop.eup %5853  ;;  %v1903_v16 = vadd.f32 %v1902_v61, %v1901_v3  ;;  %v1898_v63 = vsel %vm1525_vm1, %v5852_v42, 0.0  ;;  %5252 = vmatmul.mubr.msk.f32.gmra.mrb[100].mxu0 %vm1525_vm1, %v1979_v14  ;;  %v5493_v20 = vpack.c.bf16 %v2698_v39, %v2697_v51 }
 0x338   : > { %v5856_v6 = vpop.eup %5855  ;;  %5254 = vmatprep.mubr.msk.f32.mxu0 %vm1525_vm1, %v1980_v10  ;;  %v1983_v59 = vmul.f32 %v5854_v52, %v7426_v47  ;;  %v7536_v9 = vmul.f32 %v5854_v52, %v7434_v1  ;;  %5486 = vmatprep.subr.bf16.mxu1 %v5485_v56 }
 0x339   : > { %v5858_v44 = vpop.eup %5857  ;;  %5871 = vrcp.f32 %v1903_v16  ;;  %v1899_v41 = vsel %vm1525_vm1, %v5856_v6, 0.0  ;;  %5488 = vmatpush3.bf16.msra.mxu1 %v5485_v56 }
 0x33a   : > { %v5860_v60 = vpop.eup %5859  ;;  %v1900_v17 = vadd.f32 %v1899_v41, %v1898_v63  ;;  %v1907_v43 = vsel %vm1525_vm1, %v5858_v44, 0.0  ;;  %5490 = vmatprep.subr.bf16.mxu1 %v5489_v62 }
 0x33b   : > { %v5862_v32 = vpop.eup %5861  ;;  %v1908_v7 = vsel %vm1525_vm1, %v5860_v60, 0.0  ;;  %5255 = vmatmul.mubr.msk.f32.gmra.mrb[102].mxu0 %vm1525_vm1, %v1981_v29 }
 0x33c   : > { %v5864_v47 = vpop.eup %5863  ;;  %5873 = vrcp.f32 %v1900_v17  ;;  %v1909_v1 = vadd.f32 %v1908_v7, %v1907_v43  ;;  %v1982_v13 = vmul.f32 %v5862_v32, %v7444_v55  ;;  %v1998_v49 = vmul.f32 %v5862_v32, %v7453_v0 }
 0x33d   : > { %v5866_v38 = vpop.eup %5865  ;;  %v1904_v34 = vsel %vm1525_vm1, %v5864_v47, 0.0  ;;  %5492 = vmatpush3.bf16.msra.mxu1 %v5489_v62 }
 0x33e   : > { %v5868_v30 = vpop.eup %5867  ;;  %5875 = vrcp.f32 %v1909_v1  ;;  %v1905_v33 = vsel %vm1525_vm1, %v5866_v38, 0.0  ;;  %5257 = vmatprep.mubr.msk.f32.mxu0 %vm1525_vm1, %v1982_v13  ;;  %5494 = vmatprep.subr.bf16.mxu1 %v5493_v20 }
 0x33f   : > { %v1906_v12 = vadd.f32 %v1905_v33, %v1904_v34  ;;  %5258 = vmatmul.mubr.msk.f32.gmra.mrb[104].mxu0 %vm1525_vm1, %v1983_v59  ;;  %v1985_v14 = vmul.f32 %v5868_v30, %v7457_v28  ;;  %v2001_v36 = vmul.f32 %v5868_v30, %v7466_v19  ;;  %v541_v59 = vsub.s32 2, %v6549_v4  ;;  %v9059_v30 = vld [vmem:[#allocation37_spill] sm:$0xff] }
 0x340   : > { %v5870_v55 = vpop.eup %5869 }
 0x341   : > { %5877 = vrcp.f32 %v1906_v12  ;;  %v1984_v0 = vmul.f32 %v5870_v55, %v7473_v21  ;;  %v2000_v29 = vmul.f32 %v5870_v55, %v7483_v37  ;;  %5496 = vmatpush3.bf16.msra.mxu1 %v5493_v20  ;;  %v9063_v20 = vld [vmem:[#allocation39_spill] sm:$0xff] }
 0x343   : > { %v5872_v40 = vpop.eup %5871  ;;  %5260 = vmatprep.mubr.msk.f32.mxu0 %vm1525_vm1, %v1984_v0 }
 0x344   : > { %5261 = vmatmul.mubr.msk.f32.gmra.mrb[106].mxu0 %vm1525_vm1, %v1985_v14  ;;  %v1987_v28 = vmul.f32 %v5872_v40, %v5848_v45  ;;  %v2003_v19 = vmul.f32 %v5872_v40, %v5850_v50  ;;  %v2699_v45 = vld [vmem:[%s8989_s5 + $0x70] sm:$0xff]  ;;  %v2700_v50 = vld [vmem:[%s8989_s5 + $0x78] sm:$0xff]  ;;  %v9061_v40 = vld [vmem:[#allocation38_spill] sm:$0xff] }
 0x346   : > { %v5874_v18 = vpop.eup %5873 }
 0x347   : > { %v1986_v21 = vmul.f32 %v5874_v18, %v5852_v42  ;;  %v2002_v37 = vmul.f32 %v5874_v18, %v5856_v6  ;;  %v5497_v42 = vpack.c.bf16 %v2700_v50, %v2699_v45  ;;  %v9065_v50 = vld [vmem:[#allocation40_spill] sm:$0xff] }
 0x348   : > { %v5876_v23 = vpop.eup %5875 }
 0x349   : > { %5263 = vmatprep.mubr.msk.f32.mxu0 %vm1525_vm1, %v1986_v21  ;;  %v1989_v46 = vmul.f32 %v5876_v23, %v5858_v44  ;;  %v2005_v35 = vmul.f32 %v5876_v23, %v5860_v60  ;;  %5498 = vmatprep.subr.bf16.mxu1 %v5497_v42 }
 0x34a   : > { %5264 = vmatmul.mubr.msk.f32.gmra.mrb[108].mxu0 %vm1525_vm1, %v1987_v28  ;;  %5500 = vmatpush3.bf16.msra.mxu1 %v5497_v42  ;;  %v9062_v28 = vld [vmem:[#allocation26_spill] sm:$0xff] }
 0x34b   : > { %v5878_v31 = vpop.eup %5877 }
 0x34c   : > { %v1988_v10 = vmul.f32 %v5878_v31, %v5864_v47  ;;  %v2004_v3 = vmul.f32 %v5878_v31, %v5866_v38 }
 0x34e   : > { %5266 = vmatprep.mubr.msk.f32.mxu0 %vm1525_vm1, %v1988_v10 }
 0x34f   : > { %5267 = vmatmul.mubr.msk.f32.gmra.mrb[110].mxu0 %vm1525_vm1, %v1989_v46 }
 0x350   : > { %5269 = vmatprep.mubr.msk.f32.mxu0 %vm1525_vm1, %v7481_v48  ;;  %v9058_v48 = vmov 0.0  }
 0x353   : > { %5270 = vmatmul.mubr.msk.f32.gmra.mrb[112].mxu0 %vm1525_vm1, %v7489_v8 }
 0x354   : > { %5272 = vmatprep.mubr.msk.f32.mxu0 %vm1525_vm1, %v7499_v25 }
 0x357   : > { %5273 = vmatmul.mubr.msk.f32.gmra.mrb[114].mxu0 %vm1525_vm1, %v7503_v27 }
 0x358   : > { %5275 = vmatprep.mubr.msk.f32.mxu0 %vm1525_vm1, %v7517_v54 }
 0x35b   : > { %5276 = vmatmul.mubr.msk.f32.gmra.mrb[116].mxu0 %vm1525_vm1, %v7522_v58 }
 0x35c   : > { %5278 = vmatprep.mubr.msk.f32.mxu0 %vm1525_vm1, %v7525_v5 }
 0x35f   : > { %5279 = vmatmul.mubr.msk.f32.gmra.mrb[118].mxu0 %vm1525_vm1, %v7528_v53 }
 0x360   : > { %5281 = vmatprep.mubr.msk.f32.mxu0 %vm1525_vm1, %v1998_v49 }
 0x363   : > { %5282 = vmatmul.mubr.msk.f32.gmra.mrb[120].mxu0 %vm1525_vm1, %v7536_v9  ;;  %v6007_v9 = vld [vmem:[%s8988_s4] sm:$0x7] }
 0x364   : > { %5284 = vmatprep.mubr.msk.f32.mxu0 %vm1525_vm1, %v2000_v29  ;;  %v7612_v44 = vrot.slane %v6007_v9, %v541_v59  ;;  %v9060_v29 = vld [vmem:[#allocation25_spill] sm:$0xff] }
 0x366   : > { %v7620_v17 = vadd.f32 %v6682_v57, %v7612_v44  ;;  %v7624_v43 = vadd.f32 %v6752_v24, %v7612_v44  ;;  %v7628_v32 = vadd.f32 %v6690_v2, %v7612_v44  ;;  %v7632_v7 = vadd.f32 %v6755_v22, %v7612_v44 }
 0x367   : > { %5285 = vmatmul.mubr.msk.f32.gmra.mrb[122].mxu0 %vm1525_vm1, %v2001_v36  ;;  %v7640_v24 = vadd.f32 %v6694_v11, %v7612_v44  ;;  %v7644_v2 = vadd.f32 %v6757_v26, %v7612_v44  ;;  %v7648_v34 = vadd.f32 %v6696_v15, %v7612_v44  ;;  %v7652_v33 = vadd.f32 %v9059_v30, %v7612_v44 }
 0x368   : > { %5287 = vmatprep.mubr.msk.f32.mxu0 %vm1525_vm1, %v2002_v37  ;;  %v7660_v15 = vadd.f32 %v9060_v29, %v7612_v44  ;;  %v7664_v51 = vadd.f32 %v9061_v40, %v7612_v44  ;;  %v7672_v18 = vadd.f32 %v9063_v20, %v7612_v44  ;;  %v7684_v42 = vadd.f32 %v9065_v50, %v7612_v44 }
 0x36b   : > { %5288 = vmatmul.mubr.msk.f32.gmra.mrb[124].mxu0 %vm1525_vm1, %v2003_v19  ;;  %v7668_v19 = vadd.f32 %v9062_v28, %v7612_v44  ;;  %v9072_v28 = vld [vmem:[#allocation31_spill] sm:$0xff] }
 0x36c   : > { %5290 = vmatprep.mubr.msk.f32.mxu0 %vm1525_vm1, %v2004_v3  ;;  %v9064_v3 = vld [vmem:[#allocation27_spill] sm:$0xff]  ;;  %v7722_v20 = vadd.f32 %v9072_v28, %v7612_v44 }
 0x36d   : > { %v7680_v45 = vadd.f32 %v9064_v3, %v7612_v44 }
 0x36f   : > { %5291 = vmatmul.mubr.msk.f32.gmra.mrb[126].mxu0 %vm1525_vm1, %v2005_v35 }
 0x370   : > { %3497 = vmatprep.mubr.f32.mxu0 %v9058_v48 }
 0x39f   : > { %v5199_v8 = vpop.f32.mrb[64].mxu0 }
 0x3a0   : > { %v2269_v25 = vpop.f32.mrb[65].mxu0  ;;  %v2589_v1 = vmul.f32 %v5199_v8, %v7620_v17 }
 0x3a1   : > { %v2588_v57 = vmul.f32 %v2269_v25, %v7628_v32  ;;  %v9066_v25 = vld [vmem:[#allocation28_spill] sm:$0xff] }
 0x3a7   : > { %v5202_v27 = vpop.f32.mrb[66].mxu0 }
 0x3a8   : > { %v2279_v54 = vpop.f32.mrb[67].mxu0  ;;  %v2591_v36 = vmul.f32 %v5202_v27, %v7640_v24  ;;  %v7688_v27 = vadd.f32 %v9066_v25, %v7612_v44 }
 0x3a9   : > { %v2590_v0 = vmul.f32 %v2279_v54, %v7648_v34  ;;  %v9067_v54 = vld [vmem:[#allocation41_spill] sm:$0xff] }
 0x3b0   : > { %v5205_v58 = vpop.f32.mrb[68].mxu0 }
 0x3b1   : > { %v2289_v5 = vpop.f32.mrb[69].mxu0  ;;  %v2593_v23 = vmul.f32 %v5205_v58, %v7660_v15  ;;  %v7692_v58 = vadd.f32 %v9067_v54, %v7612_v44 }
 0x3b2   : > { %v2592_v31 = vmul.f32 %v2289_v5, %v7668_v19 }
 0x3b8   : > { %v5208_v53 = vpop.f32.mrb[70].mxu0 }
 0x3b9   : > { %v2299_v61 = vpop.f32.mrb[71].mxu0  ;;  %v2595_v9 = vmul.f32 %v5208_v53, %v7680_v45  ;;  %v9070_v53 = vld [vmem:[#allocation30_spill] sm:$0xff] }
 0x3c1   : > { %v7596_v56 = vpop.f32.mrb[72].mxu0 }
 0x3c2   : > { %v7598_v62 = vpop.f32.mrb[73].mxu0 }
 0x3c9   : > { %v7600_v52 = vpop.f32.mrb[74].mxu0 }
 0x3ca   : > { %v7602_v16 = vpop.f32.mrb[75].mxu0  ;;  %v2599_v3 = vmul.f32 %v7600_v52, %v7722_v20  ;;  %v9078_v52 = vld [vmem:[#allocation34_spill] sm:$0xff] }
 0x3d1   : > { %v7604_v63 = vpop.f32.mrb[76].mxu0 }
 0x3d2   : > { %v7606_v6 = vpop.f32.mrb[77].mxu0 }
 0x3d9   : > { %v7614_v41 = vpop.f32.mrb[78].mxu0 }
 0x3da   : > { %v7616_v60 = vpop.f32.mrb[79].mxu0 }
 0x3dd   : > { %v5223_v47 = vpop.f32.mrb[80].mxu0 }
 0x3de   : > { %v2605_v13 = vmul.f32 %v5223_v47, %v7624_v43  ;;  %v2349_v49 = vpop.f32.mrb[81].mxu0 }
 0x3df   : > { %v2604_v38 = vmul.f32 %v2349_v49, %v7632_v7 }
 0x3e0   : > { %v2653_v22 = vadd.f32 %v2605_v13, %v2589_v1  ;;  %v2594_v13 = vmul.f32 %v2299_v61, %v7688_v27 }
 0x3e1   : > { %v2652_v12 = vadd.f32 %v2604_v38, %v2588_v57  ;;  %v5226_v14 = vpop.f32.mrb[82].mxu0  ;;  %v9068_v57 = vld [vmem:[#allocation29_spill] sm:$0xff] }
 0x3e2   : > { %v2607_v11 = vmul.f32 %v5226_v14, %v7644_v2  ;;  %v2359_v55 = vpop.f32.mrb[83].mxu0  ;;  %v7700_v38 = vadd.f32 %v9068_v57, %v7612_v44  ;;  %v7708_v14 = vadd.f32 %v9070_v53, %v7612_v44 }
 0x3e3   : > { %v2606_v26 = vmul.f32 %v2359_v55, %v7652_v33  ;;  %5325 = vmatprep.mubr.f32.mxu1 %v2652_v12 }
 0x3e4   : > { %v2655_v39 = vadd.f32 %v2607_v11, %v2591_v36  ;;  %5326 = vmatmul.mubr.f32.vlgmr.msra.gmra.mrb[96].mxu1 %v2653_v22  ;;  %v9069_v22 = vld [vmem:[#allocation42_spill] sm:$0xff]  ;;  %v9071_v36 = vld [vmem:[#allocation43_spill] sm:$0xff]  ;;  %v2596_v40 = vmul.f32 %v7598_v62, %v7708_v14 }
 0x3e5   : > { %v2654_v21 = vadd.f32 %v2606_v26, %v2590_v0  ;;  %v5229_v37 = vpop.f32.mrb[84].mxu0  ;;  %v7704_v30 = vadd.f32 %v9069_v22, %v7612_v44  ;;  %v7712_v61 = vadd.f32 %v9071_v36, %v7612_v44  ;;  %v2597_v0 = vmul.f32 %v7596_v56, %v7700_v38  ;;  %v9074_v56 = vld [vmem:[#allocation32_spill] sm:$0xff] }
 0x3e6   : > { %v2609_v46 = vmul.f32 %v5229_v37, %v7664_v51  ;;  %v2369_v35 = vpop.f32.mrb[85].mxu0 }
 0x3e7   : > { %v2608_v10 = vmul.f32 %v2369_v35, %v7672_v18  ;;  %5328 = vmatprep.mubr.f32.mxu1 %v2654_v21  ;;  %v9073_v21 = vld [vmem:[#allocation44_spill] sm:$0xff]  ;;  %v9075_v35 = vld [vmem:[#allocation45_spill] sm:$0xff] }
 0x3e8   : > { %v2657_v8 = vadd.f32 %v2609_v46, %v2593_v23  ;;  %5329 = vmatmul.mubr.f32.gmra.mrb[98].mxu1 %v2655_v39  ;;  %v7726_v37 = vadd.f32 %v9073_v21, %v7612_v44  ;;  %v7730_v46 = vadd.f32 %v9074_v56, %v7612_v44  ;;  %v7734_v62 = vadd.f32 %v9075_v35, %v7612_v44  ;;  %v9083_v21 = vld [vmem:[#allocation49_spill] sm:$0xff] }
 0x3e9   : > { %v2656_v5 = vadd.f32 %v2608_v10, %v2592_v31  ;;  %v5232_v59 = vpop.f32.mrb[86].mxu0 }
 0x3ea   : > { %v2611_v47 = vmul.f32 %v5232_v59, %v7684_v42  ;;  %v2379_v1 = vpop.f32.mrb[87].mxu0  ;;  %v2598_v25 = vmul.f32 %v7602_v16, %v7730_v46 }
 0x3eb   : > { %v2610_v49 = vmul.f32 %v2379_v1, %v7692_v58  ;;  %5331 = vmatprep.mubr.f32.mxu1 %v2656_v5  ;;  %v9076_v5 = vld [vmem:[#allocation33_spill] sm:$0xff] }
 0x3ec   : > { %v2659_v12 = vadd.f32 %v2611_v47, %v2595_v9  ;;  %5332 = vmatmul.mubr.f32.gmra.mrb[100].mxu1 %v2657_v8  ;;  %v7744_v59 = vadd.f32 %v9076_v5, %v7612_v44  ;;  %v9077_v9 = vld [vmem:[#allocation46_spill] sm:$0xff] }
 0x3ed   : > { %v2658_v11 = vadd.f32 %v2610_v49, %v2594_v13  ;;  %v5235_v55 = vpop.f32.mrb[88].mxu0  ;;  %v7748_v47 = vadd.f32 %v9077_v9, %v7612_v44  ;;  %v7752_v13 = vadd.f32 %v9078_v52, %v7612_v44  ;;  %v9079_v49 = vld [vmem:[#allocation47_spill] sm:$0xff] }
 0x3ee   : > { %v2613_v26 = vmul.f32 %v5235_v55, %v7704_v30  ;;  %v2389_v29 = vpop.f32.mrb[89].mxu0  ;;  %v7756_v16 = vadd.f32 %v9079_v49, %v7612_v44 }
 0x3ef   : > { %v2612_v39 = vmul.f32 %v2389_v29, %v7712_v61  ;;  %5334 = vmatprep.mubr.f32.mxu1 %v2658_v11  ;;  %v2600_v11 = vmul.f32 %v7606_v6, %v7752_v13  ;;  %v9081_v29 = vld [vmem:[#allocation48_spill] sm:$0xff]  ;;  %v7778_v6 = vadd.f32 %v9083_v21, %v7612_v44 }
 0x3f0   : > { %v2661_v23 = vadd.f32 %v2613_v26, %v2597_v0  ;;  %5335 = vmatmul.mubr.f32.gmra.mrb[102].mxu1 %v2659_v12  ;;  %v2601_v12 = vmul.f32 %v7604_v63, %v7744_v59  ;;  %v9080_v0 = vld [vmem:[#allocation35_spill] sm:$0xff]  ;;  %v9082_v63 = vld [vmem:[#allocation36_spill] sm:$0xff] }
 0x3f1   : > { %v2660_v31 = vadd.f32 %v2612_v39, %v2596_v40  ;;  %v5238_v10 = vpop.f32.mrb[90].mxu0  ;;  %v7766_v26 = vadd.f32 %v9080_v0, %v7612_v44  ;;  %v7770_v40 = vadd.f32 %v9081_v29, %v7612_v44  ;;  %v7774_v28 = vadd.f32 %v9082_v63, %v7612_v44 }
 0x3f2   : > { %v2615_v50 = vmul.f32 %v5238_v10, %v7726_v37  ;;  %v2399_v8 = vpop.f32.mrb[91].mxu0 }
 0x3f3   : > { %v2614_v54 = vmul.f32 %v2399_v8, %v7734_v62  ;;  %5337 = vmatprep.mubr.f32.mxu1 %v2660_v31  ;;  %v2603_v35 = vmul.f32 %v7614_v41, %v7766_v26 }
 0x3f4   : > { %v2663_v1 = vadd.f32 %v2615_v50, %v2599_v3  ;;  %5338 = vmatmul.mubr.f32.gmra.mrb[104].mxu1 %v2661_v23  ;;  %v2602_v3 = vmul.f32 %v7616_v60, %v7774_v28 }
 0x3f5   : > { %v2662_v57 = vadd.f32 %v2614_v54, %v2598_v25  ;;  %v5241_v22 = vpop.f32.mrb[92].mxu0 }
 0x3f6   : > { %v2617_v53 = vmul.f32 %v5241_v22, %v7748_v47  ;;  %v2409_v36 = vpop.f32.mrb[93].mxu0 }
 0x3f7   : > { %v2616_v55 = vmul.f32 %v2409_v36, %v7756_v16  ;;  %5340 = vmatprep.mubr.f32.mxu1 %v2662_v57 }
 0x3f8   : > { %v2665_v39 = vadd.f32 %v2617_v53, %v2601_v12  ;;  %5341 = vmatmul.mubr.f32.gmra.mrb[106].mxu1 %v2663_v1 }
 0x3f9   : > { %v2664_v23 = vadd.f32 %v2616_v55, %v2600_v11  ;;  %v5244_v56 = vpop.f32.mrb[94].mxu0 }
 0x3fa   : > { %v2619_v31 = vmul.f32 %v5244_v56, %v7770_v40  ;;  %v2419_v10 = vpop.f32.mrb[95].mxu0 }
 0x3fb   : > { %v2618_v50 = vmul.f32 %v2419_v10, %v7778_v6  ;;  %5343 = vmatprep.mubr.f32.mxu1 %v2664_v23 }
 0x3fc   : > { %v2667_v8 = vadd.f32 %v2619_v31, %v2603_v35  ;;  %5344 = vmatmul.mubr.f32.gmra.mrb[108].mxu1 %v2665_v39 }
 0x3fd   : > { %v2666_v25 = vadd.f32 %v2618_v50, %v2602_v3 }
 0x3ff   : > { %5346 = vmatprep.mubr.f32.mxu1 %v2666_v25 }
 0x400   : > { %5347 = vmatmul.mubr.f32.gmra.mrb[110].mxu1 %v2667_v8 }
 0x402   : > { %v5247_v44 = vpop.f32.mrb[96].mxu0 }
 0x403   : > { %v2429_v54 = vpop.f32.mrb[97].mxu0  ;;  %v2621_v29 = vmul.f32 %v5247_v44, %v7620_v17 }
 0x404   : > { %v2620_v21 = vmul.f32 %v2429_v54, %v7628_v32 }
 0x406   : > { %v5250_v5 = vpop.f32.mrb[98].mxu0 }
 0x407   : > { %v2439_v9 = vpop.f32.mrb[99].mxu0  ;;  %v2623_v10 = vmul.f32 %v5250_v5, %v7640_v24 }
 0x408   : > { %v2622_v8 = vmul.f32 %v2439_v9, %v7648_v34 }
 0x40a   : > { %v5253_v1 = vpop.f32.mrb[100].mxu0 }
 0x40b   : > { %v2449_v41 = vpop.f32.mrb[101].mxu0  ;;  %v2625_v32 = vmul.f32 %v5253_v1, %v7660_v15 }
 0x40e   : > { %v5256_v52 = vpop.f32.mrb[102].mxu0 }
 0x40f   : > { %v2459_v49 = vpop.f32.mrb[103].mxu0 }
 0x412   : > { %v5259_v57 = vpop.f32.mrb[104].mxu0 }
 0x413   : > { %v2469_v22 = vpop.f32.mrb[105].mxu0 }
 0x417   : > { %v5262_v12 = vpop.f32.mrb[106].mxu0 }
 0x418   : > { %v2479_v60 = vpop.f32.mrb[107].mxu0 }
 0x41d   : > { %v7786_v53 = vpop.f32.mrb[108].mxu0 }
 0x41e   : > { %v7788_v36 = vpop.f32.mrb[109].mxu0 }
 0x422   : > { %v7790_v11 = vpop.f32.mrb[110].mxu0 }
 0x423   : > { %v7792_v55 = vpop.f32.mrb[111].mxu0 }
 0x426   : > { %v5271_v0 = vpop.f32.mrb[112].mxu0 }
 0x427   : > { %v2637_v39 = vmul.f32 %v5271_v0, %v7624_v43  ;;  %v2509_v63 = vpop.f32.mrb[113].mxu0  ;;  %v2624_v0 = vmul.f32 %v2449_v41, %v7668_v19 }
 0x428   : > { %v2636_v23 = vmul.f32 %v2509_v63, %v7632_v7 }
 0x429   : > { %v2669_v56 = vadd.f32 %v2637_v39, %v2621_v29  ;;  %v2626_v39 = vmul.f32 %v2459_v49, %v7688_v27 }
 0x42a   : > { %v2668_v35 = vadd.f32 %v2636_v23, %v2620_v21  ;;  %v5274_v31 = vpop.f32.mrb[114].mxu0  ;;  %v2628_v21 = vmul.f32 %v2469_v22, %v7708_v14 }
 0x42b   : > { %v2639_v3 = vmul.f32 %v5274_v31, %v7644_v2  ;;  %v2519_v50 = vpop.f32.mrb[115].mxu0 }
 0x42c   : > { %v2638_v25 = vmul.f32 %v2519_v50, %v7652_v33  ;;  %5349 = vmatprep.mubr.f32.mxu1 %v2668_v35  ;;  %v2627_v33 = vmul.f32 %v5256_v52, %v7680_v45 }
 0x42d   : > { %v2671_v17 = vadd.f32 %v2639_v3, %v2623_v10  ;;  %5350 = vmatmul.mubr.f32.gmra.mrb[112].mxu1 %v2669_v56  ;;  %v2630_v56 = vmul.f32 %v2479_v60, %v7730_v46  ;;  %v2635_v60 = vmul.f32 %v7790_v11, %v7766_v26  ;;  %v7833_v26 = vld [vmem:[%s8993_s9] ss:$0 sm:$0xff] }
 0x42e   : > { %v2670_v43 = vadd.f32 %v2638_v25, %v2622_v8  ;;  %v5277_v44 = vpop.f32.mrb[116].mxu0 }
 0x42f   : > { %v2641_v7 = vmul.f32 %v5277_v44, %v7664_v51  ;;  %v2529_v54 = vpop.f32.mrb[117].mxu0  ;;  %v6010_v44 = vld [vmem:[%s6423_s18 + $0x8] sm:$0xff] }
 0x430   : > { %v2640_v24 = vmul.f32 %v2529_v54, %v7672_v18  ;;  %5352 = vmatprep.mubr.f32.mxu1 %v2670_v43  ;;  %v2629_v18 = vmul.f32 %v5259_v57, %v7700_v38 }
 0x431   : > { %v2673_v2 = vadd.f32 %v2641_v7, %v2625_v32  ;;  %5353 = vmatmul.mubr.f32.gmra.mrb[114].mxu1 %v2671_v17  ;;  %v6009_v17 = vld [vmem:[%s6423_s18 + $0x10] sm:$0xff] }
 0x432   : > { %v2672_v34 = vadd.f32 %v2640_v24, %v2624_v0  ;;  %v5280_v5 = vpop.f32.mrb[118].mxu0 }
 0x433   : > { %v2643_v9 = vmul.f32 %v5280_v5, %v7684_v42  ;;  %v2539_v29 = vpop.f32.mrb[119].mxu0  ;;  %v6012_v5 = vld [vmem:[%s6423_s18 + $0x20] sm:$0xff] }
 0x434   : > { %v2642_v15 = vmul.f32 %v2539_v29, %v7692_v58  ;;  %5355 = vmatprep.mubr.f32.mxu1 %v2672_v34  ;;  %v2631_v58 = vmul.f32 %v5262_v12, %v7722_v20  ;;  %v2632_v20 = vmul.f32 %v7788_v36, %v7752_v13 }
 0x435   : > { %v2675_v51 = vadd.f32 %v2643_v9, %v2627_v33  ;;  %5356 = vmatmul.mubr.f32.gmra.mrb[116].mxu1 %v2673_v2  ;;  %v6011_v2 = vld [vmem:[%s6423_s18 + $0x18] sm:$0xff] }
 0x436   : > { %v2674_v19 = vadd.f32 %v2642_v15, %v2626_v39  ;;  %v5283_v1 = vpop.f32.mrb[120].mxu0 }
 0x437   : > { %v2645_v41 = vmul.f32 %v5283_v1, %v7704_v30  ;;  %v2549_v63 = vpop.f32.mrb[121].mxu0  ;;  %v6014_v1 = vld [vmem:[%s6423_s18 + $0x30] sm:$0xff] }
 0x438   : > { %v2644_v45 = vmul.f32 %v2549_v63, %v7712_v61  ;;  %5358 = vmatprep.mubr.f32.mxu1 %v2674_v19  ;;  %v2633_v61 = vmul.f32 %v7786_v53, %v7744_v59 }
 0x439   : > { %v2677_v42 = vadd.f32 %v2645_v41, %v2629_v18  ;;  %5359 = vmatmul.mubr.f32.gmra.mrb[118].mxu1 %v2675_v51  ;;  %v6013_v51 = vld [vmem:[%s6423_s18 + $0x28] sm:$0xff] }
 0x43a   : > { %v2676_v27 = vadd.f32 %v2644_v45, %v2628_v21  ;;  %v5286_v52 = vpop.f32.mrb[122].mxu0 }
 0x43b   : > { %v2647_v49 = vmul.f32 %v5286_v52, %v7726_v37  ;;  %v2559_v23 = vpop.f32.mrb[123].mxu0  ;;  %v6016_v52 = vld [vmem:[%s6423_s18 + $0x40] sm:$0xff] }
 0x43c   : > { %v2646_v38 = vmul.f32 %v2559_v23, %v7734_v62  ;;  %5361 = vmatprep.mubr.f32.mxu1 %v2676_v27 }
 0x43d   : > { %v2679_v30 = vadd.f32 %v2647_v49, %v2631_v58  ;;  %5362 = vmatmul.mubr.f32.gmra.mrb[120].mxu1 %v2677_v42  ;;  %v6015_v42 = vld [vmem:[%s6423_s18 + $0x38] sm:$0xff] }
 0x43e   : > { %v2678_v14 = vadd.f32 %v2646_v38, %v2630_v56  ;;  %v5289_v57 = vpop.f32.mrb[124].mxu0 }
 0x43f   : > { %v2649_v22 = vmul.f32 %v5289_v57, %v7748_v47  ;;  %v2569_v35 = vpop.f32.mrb[125].mxu0  ;;  %v2634_v47 = vmul.f32 %v7792_v55, %v7774_v28  ;;  %v6008_v55 = vld [vmem:[%s6423_s18] sm:$0xff]  ;;  %v6018_v57 = vld [vmem:[%s6423_s18 + $0x50] sm:$0xff] }
 0x440   : > { %v2648_v37 = vmul.f32 %v2569_v35, %v7756_v16  ;;  %5364 = vmatprep.mubr.f32.mxu1 %v2678_v14 }
 0x441   : > { %v2681_v46 = vadd.f32 %v2649_v22, %v2633_v61  ;;  %5365 = vmatmul.mubr.f32.gmra.mrb[122].mxu1 %v2679_v30  ;;  %v6017_v30 = vld [vmem:[%s6423_s18 + $0x48] sm:$0xff] }
 0x442   : > { %v2680_v62 = vadd.f32 %v2648_v37, %v2632_v20  ;;  %v5292_v12 = vpop.f32.mrb[126].mxu0 }
 0x443   : > { %v2651_v31 = vmul.f32 %v5292_v12, %v7770_v40  ;;  %v2579_v59 = vpop.f32.mrb[127].mxu0  ;;  %v6020_v12 = vld [vmem:[%s6423_s18 + $0x60] sm:$0xff] }
 0x444   : > { %v2650_v53 = vmul.f32 %v2579_v59, %v7778_v6  ;;  %5367 = vmatprep.mubr.f32.mxu1 %v2680_v62 }
 0x445   : > { %v2683_v13 = vadd.f32 %v2651_v31, %v2635_v60  ;;  %5368 = vmatmul.mubr.f32.gmra.mrb[124].mxu1 %v2681_v46  ;;  %v6019_v46 = vld [vmem:[%s6423_s18 + $0x58] sm:$0xff] }
 0x446   : > { %v2682_v16 = vadd.f32 %v2650_v53, %v2634_v47  ;;  %v6021_v53 = vld [vmem:[%s6423_s18 + $0x68] sm:$0xff] }
 0x448   : > { %5370 = vmatprep.mubr.f32.mxu1 %v2682_v16  ;;  %v6022_v16 = vld [vmem:[%s6423_s18 + $0x70] sm:$0xff] }
 0x449   : > { %5371 = vmatmul.mubr.f32.gmra.mrb[126].mxu1 %v2683_v13 }
 0x4b7   : > { %v5327_v40 = vpop.f32.mrb[96].mxu1 }
 0x4b8   : > { %v2771_v36 = vpop.f32.mrb[97].mxu1  ;;  %v2777_v28 = vadd.f32 %v5327_v40, %v7833_v26 }
 0x4b9   : > { %v2772_v11 = vadd.f32 %v7833_v26, %v2771_v36  ;;  %v6023_v36 = vld [vmem:[%s6423_s18 + $0x78] sm:$0xff] }
 0x4ba   : > { %v7847_v32 = vadd.f32 %v6010_v44, %v2777_v28  ;;  %v3390_v28 = vld [vmem:[#allocation7 + $0x8] sm:$0xff] }
 0x4bb   : > { %v5330_v6 = vpop.f32.mrb[98].mxu1  ;;  %v7838_v10 = vadd.f32 %v6008_v55, %v2772_v11  ;;  %v3389_v55 = vld [vmem:[#allocation7] sm:$0xff] }
 0x4bc   : > { %v2781_v3 = vpop.f32.mrb[99].mxu1  ;;  %v2787_v8 = vadd.f32 %v5330_v6, %v7833_v26  ;;  %v3392_v6 = vld [vmem:[#allocation7 + $0x18] sm:$0xff] }
 0x4bd   : > { %v2782_v50 = vadd.f32 %v7833_v26, %v2781_v3  ;;  %2962 = vadd.xlane.f32.xlu0 %v7838_v10  ;;  %v5501_v3 = vpack.c.bf16 %v3392_v6, %v3390_v28 }
 0x4be   : > { %v7854_v34 = vadd.f32 %v6011_v2, %v2787_v8 }
 0x4bf   : > { %v5333_v25 = vpop.f32.mrb[100].mxu1  ;;  %v7844_v43 = vadd.f32 %v6009_v17, %v2782_v50  ;;  %v3391_v50 = vld [vmem:[#allocation7 + $0x10] sm:$0xff]  ;;  %5502 = vmatprep.subr.bf16.mxu0 %v5501_v3  ;;  %v6031_v3 = vld [vmem:[%s6423_s18 + $0xb8] sm:$0xff] }
 0x4c0   : > { %v2791_v7 = vpop.f32.mrb[101].mxu1  ;;  %v2797_v0 = vadd.f32 %v5333_v25, %v7833_v26  ;;  %v5503_v8 = vpack.c.bf16 %v3391_v50, %v3389_v55 }
 0x4c1   : > { %v2792_v54 = vadd.f32 %v7833_v26, %v2791_v7  ;;  %2966 = vadd.xlane.f32.xlu1 %v7844_v43  ;;  %2964 = vadd.xlane.f32.xlu0 %v7847_v32  ;;  %v3394_v7 = vld [vmem:[#allocation7 + $0x28] sm:$0xff] }
 0x4c2   : > { %v7864_v19 = vadd.f32 %v6013_v51, %v2797_v0  ;;  %5504 = vmatpush1.bf16.msra.mxu0 %v5503_v8  ;;  %v3393_v0 = vld [vmem:[#allocation7 + $0x20] sm:$0xff] }
 0x4c3   : > { %v5336_v24 = vpop.f32.mrb[102].mxu1  ;;  %v7857_v33 = vadd.f32 %v6012_v5, %v2792_v54  ;;  %v3396_v54 = vld [vmem:[#allocation7 + $0x38] sm:$0xff]  ;;  %v3395_v5 = vld [vmem:[#allocation7 + $0x30] sm:$0xff]  ;;  %v6025_v51 = vld [vmem:[%s6423_s18 + $0x80] sm:$0xff] }
 0x4c4   : > { %v2801_v9 = vpop.f32.mrb[103].mxu1  ;;  %v2807_v39 = vadd.f32 %v5336_v24, %v7833_v26  ;;  %v5505_v2 = vpack.c.bf16 %v3396_v54, %v3394_v7  ;;  %v3398_v54 = vld [vmem:[#allocation7 + $0x48] sm:$0xff] }
 0x4c5   : > { %v2802_v29 = vadd.f32 %v7833_v26, %v2801_v9  ;;  %2968 = vadd.xlane.f32.xlu1 %v7854_v34  ;;  %2970 = vadd.xlane.f32.xlu0 %v7857_v33  ;;  %v6024_v9 = vld [vmem:[%s6423_s18 + $0x88] sm:$0xff] }
 0x4c6   : > { %v7874_v27 = vadd.f32 %v6015_v42, %v2807_v39  ;;  %v5507_v39 = vpack.c.bf16 %v3395_v5, %v3393_v0  ;;  %5506 = vmatprep.subr.bf16.mxu0 %v5505_v2  ;;  %v3400_v0 = vld [vmem:[#allocation7 + $0x58] sm:$0xff] }
 0x4c7   : > { %v5339_v15 = vpop.f32.mrb[104].mxu1  ;;  %v7867_v18 = vadd.f32 %v6014_v1, %v2802_v29  ;;  %v5509_v5 = vpack.c.bf16 %v3400_v0, %v3398_v54  ;;  %v3405_v54 = vld [vmem:[#allocation7 + $0x80] sm:$0xff] }
 0x4c8   : > { %v2811_v41 = vpop.f32.mrb[105].mxu1  ;;  %v2817_v21 = vadd.f32 %v5339_v15, %v7833_v26  ;;  %5508 = vmatpush1.bf16.msra.mxu0 %v5507_v39 }
 0x4c9   : > { %v2812_v63 = vadd.f32 %v7833_v26, %v2811_v41  ;;  %2972 = vadd.xlane.f32.xlu1 %v7864_v19  ;;  %2974 = vadd.xlane.f32.xlu0 %v7867_v18 }
 0x4ca   : > { %v7884_v14 = vadd.f32 %v6017_v30, %v2817_v21  ;;  %5510 = vmatprep.subr.bf16.mxu0 %v5509_v5 }
 0x4cb   : > { %v5342_v45 = vpop.f32.mrb[106].mxu1  ;;  %v7877_v58 = vadd.f32 %v6016_v52, %v2812_v63 }
 0x4cc   : > { %v2821_v49 = vpop.f32.mrb[107].mxu1  ;;  %v2827_v56 = vadd.f32 %v5342_v45, %v7833_v26  ;;  %v6026_v45 = vld [vmem:[%s6423_s18 + $0x98] sm:$0xff] }
 0x4cd   : > { %v2822_v23 = vadd.f32 %v7833_v26, %v2821_v49  ;;  %2976 = vadd.xlane.f32.xlu1 %v7874_v27  ;;  %2978 = vadd.xlane.f32.xlu0 %v7877_v58  ;;  %v6027_v49 = vld [vmem:[%s6423_s18 + $0x90] sm:$0xff] }
 0x4ce   : > { %v7894_v62 = vadd.f32 %v6019_v46, %v2827_v56 }
 0x4cf   : > { %v5345_v38 = vpop.f32.mrb[108].mxu1  ;;  %v7887_v61 = vadd.f32 %v6018_v57, %v2822_v23 }
 0x4d0   : > { %v2831_v22 = vpop.f32.mrb[109].mxu1  ;;  %v2837_v20 = vadd.f32 %v5345_v38, %v7833_v26 }
 0x4d1   : > { %v2832_v35 = vadd.f32 %v7833_v26, %v2831_v22  ;;  %2980 = vadd.xlane.f32.xlu1 %v7884_v14  ;;  %2982 = vadd.xlane.f32.xlu0 %v7887_v61  ;;  %v6028_v22 = vld [vmem:[%s6423_s18 + $0xa0] sm:$0xff] }
 0x4d2   : > { %v7904_v13 = vadd.f32 %v6021_v53, %v2837_v20 }
 0x4d3   : > { %v5348_v37 = vpop.f32.mrb[110].mxu1  ;;  %v7897_v60 = vadd.f32 %v6020_v12, %v2832_v35  ;;  %v6029_v12 = vld [vmem:[%s6423_s18 + $0xa8] sm:$0xff] }
 0x4d4   : > { %v2841_v31 = vpop.f32.mrb[111].mxu1  ;;  %v2847_v47 = vadd.f32 %v5348_v37, %v7833_v26 }
 0x4d5   : > { %v2842_v59 = vadd.f32 %v7833_v26, %v2841_v31  ;;  %2984 = vadd.xlane.f32.xlu1 %v7894_v62  ;;  %2986 = vadd.xlane.f32.xlu0 %v7897_v60 }
 0x4d6   : > { %v7912_v11 = vadd.f32 %v6023_v36, %v2847_v47 }
 0x4d7   : > { %v7907_v40 = vadd.f32 %v6022_v16, %v2842_v59  ;;  %v6030_v16 = vld [vmem:[%s6423_s18 + $0xb0] sm:$0xff] }
 0x4d9   : > { %2988 = vadd.xlane.f32.xlu1 %v7904_v13  ;;  %2990 = vadd.xlane.f32.xlu0 %v7907_v40 }
 0x4dd   : > { %2992 = vadd.xlane.f32.xlu1 %v7912_v11 }
 0x500   : > { %v5351_v25 = vpop.f32.mrb[112].mxu1 }
 0x501   : > { %v2857_v17 = vadd.f32 %v5351_v25, %v7833_v26  ;;  %v2851_v44 = vpop.f32.mrb[113].mxu1 }
 0x502   : > { %v2852_v24 = vadd.f32 %v7833_v26, %v2851_v44  ;;  %v6032_v44 = vld [vmem:[%s6423_s18 + $0xc0] sm:$0xff] }
 0x503   : > { %v7918_v29 = vadd.f32 %v6024_v9, %v2857_v17  ;;  %v3399_v9 = vld [vmem:[#allocation7 + $0x50] sm:$0xff] }
 0x504   : > { %v5354_v15 = vpop.f32.mrb[114].mxu1  ;;  %v7921_v1 = vadd.f32 %v6025_v51, %v2852_v24  ;;  %v3397_v24 = vld [vmem:[#allocation7 + $0x40] sm:$0xff]  ;;  %v6033_v51 = vld [vmem:[%s6423_s18 + $0xc8] sm:$0xff] }
 0x505   : > { %v2867_v41 = vadd.f32 %v5354_v15, %v7833_v26  ;;  %2996 = vadd.xlane.f32.xlu1 %v7918_v29  ;;  %v2861_v63 = vpop.f32.mrb[115].mxu1  ;;  %v5511_v39 = vpack.c.bf16 %v3399_v9, %v3397_v24  ;;  %v3407_v24 = vld [vmem:[#allocation7 + $0x90] sm:$0xff]  ;;  %v3409_v9 = vld [vmem:[#allocation7 + $0xa0] sm:$0xff] }
 0x506   : > { %v2862_v21 = vadd.f32 %v7833_v26, %v2861_v63  ;;  %2994 = vadd.xlane.f32.xlu0 %v7921_v1 }
 0x507   : > { %v7928_v42 = vadd.f32 %v6026_v45, %v2867_v41  ;;  %5512 = vmatpush1.bf16.msra.mxu0 %v5511_v39 }
 0x508   : > { %v5357_v52 = vpop.f32.mrb[116].mxu1  ;;  %v7931_v23 = vadd.f32 %v6027_v49, %v2862_v21  ;;  %v6034_v21 = vld [vmem:[%s6423_s18 + $0xd0] sm:$0xff]  ;;  %v6035_v49 = vld [vmem:[%s6423_s18 + $0xd8] sm:$0xff] }
 0x509   : > { %3000 = vadd.xlane.f32.xlu1 %v7928_v42  ;;  %v2871_v56 = vpop.f32.mrb[117].mxu1  ;;  %v2877_v30 = vadd.f32 %v5357_v52, %v7833_v26 }
 0x50a   : > { %v2872_v38 = vadd.f32 %v7833_v26, %v2871_v56  ;;  %2998 = vadd.xlane.f32.xlu0 %v7931_v23 }
 0x50b   : > { %v7943_v31 = vadd.f32 %v6029_v12, %v2877_v30  ;;  %v6036_v30 = vld [vmem:[%s6423_s18 + $0xe0] sm:$0xff]  ;;  %v3403_v12 = vld [vmem:[#allocation7 + $0x70] sm:$0xff] }
 0x50c   : > { %v5360_v57 = vpop.f32.mrb[118].mxu1  ;;  %v7938_v35 = vadd.f32 %v6028_v22, %v2872_v38  ;;  %v3402_v22 = vld [vmem:[#allocation7 + $0x68] sm:$0xff] }
 0x50d   : > { %v2881_v20 = vpop.f32.mrb[119].mxu1  ;;  %v2887_v47 = vadd.f32 %v5360_v57, %v7833_v26 }
 0x50e   : > { %3002 = vadd.xlane.f32.xlu1 %v7938_v35  ;;  %v2882_v37 = vadd.f32 %v7833_v26, %v2881_v20  ;;  %v3404_v20 = vld [vmem:[#allocation7 + $0x78] sm:$0xff] }
 0x50f   : > { %v7953_v50 = vadd.f32 %v6031_v3, %v2887_v47  ;;  %v6039_v3 = vld [vmem:[%s6423_s18 + $0xf8] sm:$0xff] }
 0x510   : > { %v5363_v46 = vpop.f32.mrb[120].mxu1  ;;  %v7948_v36 = vadd.f32 %v6030_v16, %v2882_v37  ;;  %v3401_v37 = vld [vmem:[#allocation7 + $0x60] sm:$0xff] }
 0x511   : > { %v2891_v59 = vpop.f32.mrb[121].mxu1  ;;  %v2897_v25 = vadd.f32 %v5363_v46, %v7833_v26  ;;  %v5513_v46 = vpack.c.bf16 %v3404_v20, %v3402_v22  ;;  %v3413_v22 = vld [vmem:[#allocation7 + $0xc0] sm:$0xff] }
 0x512   : > { %3004 = vadd.xlane.f32.xlu1 %v7943_v31  ;;  %v2892_v6 = vadd.f32 %v7833_v26, %v2891_v59  ;;  %v5515_v59 = vpack.c.bf16 %v3403_v12, %v3401_v37 }
 0x513   : > { %v7963_v41 = vadd.f32 %v6033_v51, %v2897_v25  ;;  %5514 = vmatprep.subr.bf16.mxu0 %v5513_v46  ;;  %v3406_v25 = vld [vmem:[#allocation7 + $0x88] sm:$0xff]  ;;  %v3411_v51 = vld [vmem:[#allocation7 + $0xb0] sm:$0xff] }
 0x514   : > { %v5366_v53 = vpop.f32.mrb[122].mxu1  ;;  %v7958_v7 = vadd.f32 %v6032_v44, %v2892_v6  ;;  %5516 = vmatpush1.bf16.msra.mxu0 %v5515_v59  ;;  %v6038_v6 = vld [vmem:[%s6423_s18 + $0xf0] sm:$0xff]  ;;  %v3408_v44 = vld [vmem:[#allocation7 + $0x98] sm:$0xff] }
 0x515   : > { %v2901_v28 = vpop.f32.mrb[123].mxu1  ;;  %v2907_v63 = vadd.f32 %v5366_v53, %v7833_v26  ;;  %v6037_v53 = vld [vmem:[%s6423_s18 + $0xe8] sm:$0xff]  ;;  %v5517_v0 = vpack.c.bf16 %v3408_v44, %v3406_v25  ;;  %v3415_v59 = vld [vmem:[#allocation7 + $0xd0] sm:$0xff] }
 0x516   : > { %3006 = vadd.xlane.f32.xlu1 %v7948_v36  ;;  %v2902_v15 = vadd.f32 %v7833_v26, %v2901_v28 }
 0x517   : > { %v7973_v56 = vadd.f32 %v6035_v49, %v2907_v63  ;;  %5518 = vmatprep.subr.bf16.mxu0 %v5517_v0  ;;  %v5523_v63 = vpack.c.bf16 %v3411_v51, %v3409_v9 }
 0x518   : > { %v5369_v55 = vpop.f32.mrb[124].mxu1  ;;  %v7968_v45 = vadd.f32 %v6034_v21, %v2902_v15 }
 0x519   : > { %v2911_v8 = vpop.f32.mrb[125].mxu1  ;;  %v2917_v38 = vadd.f32 %v5369_v55, %v7833_v26 }
 0x51a   : > { %3008 = vadd.xlane.f32.xlu1 %v7953_v50  ;;  %v2912_v52 = vadd.f32 %v7833_v26, %v2911_v8 }
 0x51b   : > { %v7983_v16 = vadd.f32 %v6037_v53, %v2917_v38  ;;  %v3414_v38 = vld [vmem:[#allocation7 + $0xc8] sm:$0xff] }
 0x51c   : > { %v5372_v17 = vpop.f32.mrb[126].mxu1  ;;  %v7978_v57 = vadd.f32 %v6036_v30, %v2912_v52  ;;  %v3416_v30 = vld [vmem:[#allocation7 + $0xd8] sm:$0xff] }
 0x51d   : > { %v2921_v2 = vpop.f32.mrb[127].mxu1  ;;  %v2927_v28 = vadd.f32 %v5372_v17, %v7833_v26  ;;  %v3412_v17 = vld [vmem:[#allocation7 + $0xb8] sm:$0xff]  ;;  %v5525_v12 = vpack.c.bf16 %v3416_v30, %v3414_v38 }
 0x51e   : > { %3010 = vadd.xlane.f32.xlu1 %v7958_v7  ;;  %v2922_v47 = vadd.f32 %v7833_v26, %v2921_v2  ;;  %v5519_v2 = vpack.c.bf16 %v3407_v24, %v3405_v54  ;;  %v3410_v26 = vld [vmem:[#allocation7 + $0xa8] sm:$0xff] }
 0x51f   : > { %v7992_v8 = vadd.f32 %v6039_v3, %v2927_v28  ;;  %v5521_v15 = vpack.c.bf16 %v3412_v17, %v3410_v26 }
 0x520   : > { %v7988_v55 = vadd.f32 %v6038_v6, %v2922_v47  ;;  %5520 = vmatpush1.bf16.msra.mxu0 %v5519_v2  ;;  %v5527_v47 = vpack.c.bf16 %v3415_v59, %v3413_v22 }
 0x521   : > { %5522 = vmatprep.subr.bf16.mxu0 %v5521_v15 }
 0x522   : > { %3012 = vadd.xlane.f32.xlu1 %v7963_v41 }
 0x524   : > { %5524 = vmatpush1.bf16.msra.mxu0 %v5523_v63 }
 0x525   : > { %5526 = vmatprep.subr.bf16.mxu0 %v5525_v12 }
 0x526   : > { %3014 = vadd.xlane.f32.xlu1 %v7968_v45 }
 0x528   : > { %5528 = vmatpush1.bf16.msra.mxu0 %v5527_v47 }
 0x52a   : > { %3016 = vadd.xlane.f32.xlu1 %v7973_v56 }
 0x52e   : > { %3018 = vadd.xlane.f32.xlu1 %v7978_v57 }
 0x532   : > { %3020 = vadd.xlane.f32.xlu1 %v7983_v16 }
 0x536   : > { %3022 = vadd.xlane.f32.xlu1 %v7988_v55 }
 0x53a   : > { %3024 = vadd.xlane.f32.xlu1 %v7992_v8 }
 0x54a   : > { %v2963_v5 = vpop.xlane.xlu0 %2962 }
 0x54b   : > { %v3027_v39 = vmul.f32 0.0078125, %v2963_v5 }
 0x54d   : > { %v7996_v21 = vsub.f32 %v7838_v10, %v3027_v39 }
 0x54e   : > { %v2967_v52 = vpop.xlane.xlu1 %2966  ;;  %v2965_v49 = vpop.xlane.xlu0 %2964 }
 0x54f   : > { %v3029_v20 = vmul.f32 0.0078125, %v2967_v52  ;;  %v3028_v37 = vmul.f32 0.0078125, %v2965_v49  ;;  %v3091_v46 = vmul.f32 %v7996_v21, %v7996_v21 }
 0x551   : > { %3123 = vadd.xlane.f32.xlu0 %v3091_v46  ;;  %v8001_v53 = vsub.f32 %v7847_v32, %v3028_v37  ;;  %v8006_v3 = vsub.f32 %v7844_v43, %v3029_v20 }
 0x552   : > { %v2969_v10 = vpop.xlane.xlu1 %2968  ;;  %v2971_v25 = vpop.xlane.xlu0 %2970 }
 0x553   : > { %v3030_v28 = vmul.f32 0.0078125, %v2969_v10  ;;  %v3092_v6 = vmul.f32 %v8001_v53, %v8001_v53  ;;  %v3031_v54 = vmul.f32 0.0078125, %v2971_v25  ;;  %v3093_v0 = vmul.f32 %v8006_v3, %v8006_v3  ;;  %v3417_v25 = vld [vmem:[#allocation7 + $0xe0] sm:$0xff] }
 0x555   : > { %3125 = vadd.xlane.f32.xlu0 %v3092_v6  ;;  %v8011_v32 = vsub.f32 %v7854_v34, %v3030_v28  ;;  %v8016_v26 = vsub.f32 %v7857_v33, %v3031_v54  ;;  %v3418_v28 = vld [vmem:[#allocation7 + $0xe8] sm:$0xff]  ;;  %v3420_v6 = vld [vmem:[#allocation7 + $0xf8] sm:$0xff] }
 0x556   : > { %v2973_v44 = vpop.xlane.xlu1 %2972  ;;  %v2975_v43 = vpop.xlane.xlu0 %2974 }
 0x557   : > { %v3032_v2 = vmul.f32 0.0078125, %v2973_v44  ;;  %v3094_v5 = vmul.f32 %v8011_v32, %v8011_v32  ;;  %v3033_v9 = vmul.f32 0.0078125, %v2975_v43  ;;  %v3095_v39 = vmul.f32 %v8016_v26, %v8016_v26 }
 0x559   : > { %3127 = vadd.xlane.f32.xlu0 %v3093_v0  ;;  %v8021_v15 = vsub.f32 %v7864_v19, %v3032_v2  ;;  %v8026_v33 = vsub.f32 %v7867_v18, %v3033_v9  ;;  %v5529_v0 = vpack.c.bf16 %v3420_v6, %v3418_v28 }
 0x55a   : > { %v2977_v24 = vpop.xlane.xlu1 %2976  ;;  %v2979_v63 = vpop.xlane.xlu0 %2978 }
 0x55b   : > { %v3034_v51 = vmul.f32 0.0078125, %v2977_v24  ;;  %v3096_v52 = vmul.f32 %v8021_v15, %v8021_v15  ;;  %v3035_v49 = vmul.f32 0.0078125, %v2979_v63  ;;  %v3097_v22 = vmul.f32 %v8026_v33, %v8026_v33  ;;  %v3419_v24 = vld [vmem:[#allocation7 + $0xf0] sm:$0xff]  ;;  %5530 = vmatprep.subr.bf16.mxu0 %v5529_v0 }
 0x55c   : > { %v5531_v2 = vpack.c.bf16 %v3419_v24, %v3417_v25 }
 0x55d   : > { %3129 = vadd.xlane.f32.xlu0 %v3094_v5  ;;  %v8031_v19 = vsub.f32 %v7874_v27, %v3034_v51  ;;  %v8037_v46 = vsub.f32 %v7877_v58, %v3035_v49 }
 0x55e   : > { %v2981_v17 = vpop.xlane.xlu1 %2980  ;;  %v2983_v12 = vpop.xlane.xlu0 %2982  ;;  %5532 = vmatpush1.bf16.msra.mxu0 %v5531_v2 }
 0x55f   : > { %v3036_v18 = vmul.f32 0.0078125, %v2981_v17  ;;  %v3098_v47 = vmul.f32 %v8031_v19, %v8031_v19  ;;  %v3099_v58 = vmul.f32 %v8037_v46, %v8037_v46 }
 0x561   : > { %3131 = vadd.xlane.f32.xlu0 %v3095_v39  ;;  %v8051_v54 = vsub.f32 %v7884_v14, %v3036_v18 }
 0x562   : > { %v2985_v34 = vpop.xlane.xlu1 %2984 }
 0x563   : > { %v3038_v5 = vmul.f32 0.0078125, %v2985_v34  ;;  %v3100_v43 = vmul.f32 %v8051_v54, %v8051_v54 }
 0x565   : > { %3133 = vadd.xlane.f32.xlu0 %v3096_v52  ;;  %v8061_v39 = vsub.f32 %v7894_v62, %v3038_v5 }
 0x566   : > { %v2989_v38 = vpop.xlane.xlu1 %2988 }
 0x567   : > { %v3040_v30 = vmul.f32 0.0078125, %v2989_v38  ;;  %v3102_v34 = vmul.f32 %v8061_v39, %v8061_v39 }
 0x569   : > { %3135 = vadd.xlane.f32.xlu0 %v3097_v22  ;;  %v8034_v20 = vsub.f32 %v7904_v13, %v3040_v30  ;;  %v3037_v13 = vmul.f32 0.0078125, %v2983_v12 }
 0x56a   : > { %v2993_v37 = vpop.xlane.xlu1 %2992 }
 0x56b   : > { %v3042_v59 = vmul.f32 0.0078125, %v2993_v37  ;;  %v3104_v10 = vmul.f32 %v8034_v20, %v8034_v20  ;;  %v8056_v17 = vsub.f32 %v7887_v61, %v3037_v13 }
 0x56d   : > { %3137 = vadd.xlane.f32.xlu0 %v3098_v47  ;;  %3149 = vadd.xlane.f32.xlu1 %v3104_v10  ;;  %v8044_v27 = vsub.f32 %v7912_v11, %v3042_v59  ;;  %v2987_v11 = vpop.xlane.xlu0 %2986  ;;  %v3101_v14 = vmul.f32 %v8056_v17, %v8056_v17 }
 0x56e   : > { %v3039_v9 = vmul.f32 0.0078125, %v2987_v11 }
 0x56f   : > { %v3106_v44 = vmul.f32 %v8044_v27, %v8044_v27 }
 0x570   : > { %v8066_v52 = vsub.f32 %v7897_v60, %v3039_v9 }
 0x571   : > { %3139 = vadd.xlane.f32.xlu0 %v3099_v58  ;;  %3153 = vadd.xlane.f32.xlu1 %v3106_v44  ;;  %v2991_v51 = vpop.xlane.xlu0 %2990 }
 0x572   : > { %v3041_v63 = vmul.f32 0.0078125, %v2991_v51  ;;  %v3103_v61 = vmul.f32 %v8066_v52, %v8066_v52 }
 0x574   : > { %v8071_v49 = vsub.f32 %v7907_v40, %v3041_v63 }
 0x575   : > { %3141 = vadd.xlane.f32.xlu0 %v3100_v43 }
 0x576   : > { %v3105_v62 = vmul.f32 %v8071_v49, %v8071_v49 }
 0x579   : > { %3143 = vadd.xlane.f32.xlu0 %v3101_v14 }
 0x57d   : > { %3145 = vadd.xlane.f32.xlu0 %v3102_v34 }
 0x581   : > { %3147 = vadd.xlane.f32.xlu0 %v3103_v61 }
 0x585   : > { %3151 = vadd.xlane.f32.xlu0 %v3105_v62 }
 0x592   : > { %v2997_v38 = vpop.xlane.xlu1 %2996 }
 0x593   : > { %v3044_v30 = vmul.f32 0.0078125, %v2997_v38  ;;  %v2995_v22 = vpop.xlane.xlu0 %2994 }
 0x594   : > { %v3043_v37 = vmul.f32 0.0078125, %v2995_v22 }
 0x595   : > { %v8076_v18 = vsub.f32 %v7918_v29, %v3044_v30 }
 0x596   : > { %v3001_v60 = vpop.xlane.xlu1 %3000  ;;  %v8079_v12 = vsub.f32 %v7921_v1, %v3043_v37 }
 0x597   : > { %v3046_v59 = vmul.f32 0.0078125, %v3001_v60  ;;  %v2999_v47 = vpop.xlane.xlu0 %2998  ;;  %v3108_v40 = vmul.f32 %v8076_v18, %v8076_v18 }
 0x598   : > { %v3045_v10 = vmul.f32 0.0078125, %v2999_v47  ;;  %v3107_v13 = vmul.f32 %v8079_v12, %v8079_v12 }
 0x599   : > { %3157 = vadd.xlane.f32.xlu1 %v3108_v40  ;;  %v8086_v28 = vsub.f32 %v7928_v42, %v3046_v59 }
 0x59a   : > { %3155 = vadd.xlane.f32.xlu0 %v3107_v13  ;;  %v8089_v29 = vsub.f32 %v7931_v23, %v3045_v10 }
 0x59b   : > { %v3003_v6 = vpop.xlane.xlu1 %3002  ;;  %v3110_v1 = vmul.f32 %v8086_v28, %v8086_v28 }
 0x59c   : > { %v3047_v25 = vmul.f32 0.0078125, %v3003_v6  ;;  %v3109_v58 = vmul.f32 %v8089_v29, %v8089_v29 }
 0x59d   : > { %3161 = vadd.xlane.f32.xlu1 %v3110_v1 }
 0x59e   : > { %3159 = vadd.xlane.f32.xlu0 %v3109_v58  ;;  %v8096_v44 = vsub.f32 %v7938_v35, %v3047_v25 }
 0x59f   : > { %v3005_v0 = vpop.xlane.xlu1 %3004 }
 0x5a0   : > { %v3048_v42 = vmul.f32 0.0078125, %v3005_v0  ;;  %v3111_v24 = vmul.f32 %v8096_v44, %v8096_v44 }
 0x5a2   : > { %3163 = vadd.xlane.f32.xlu0 %v3111_v24  ;;  %v8101_v23 = vsub.f32 %v7943_v31, %v3048_v42 }
 0x5a3   : > { %v3007_v2 = vpop.xlane.xlu1 %3006 }
 0x5a4   : > { %v3049_v11 = vmul.f32 0.0078125, %v3007_v2  ;;  %v3112_v5 = vmul.f32 %v8101_v23, %v8101_v23 }
 0x5a6   : > { %3165 = vadd.xlane.f32.xlu1 %v3112_v5  ;;  %v8106_v43 = vsub.f32 %v7948_v36, %v3049_v11 }
 0x5a7   : > { %v3009_v35 = vpop.xlane.xlu1 %3008 }
 0x5a8   : > { %v3050_v9 = vmul.f32 0.0078125, %v3009_v35  ;;  %v3113_v14 = vmul.f32 %v8106_v43, %v8106_v43 }
 0x5aa   : > { %3167 = vadd.xlane.f32.xlu0 %v3113_v14  ;;  %v8111_v51 = vsub.f32 %v7953_v50, %v3050_v9 }
 0x5ab   : > { %v3011_v31 = vpop.xlane.xlu1 %3010 }
 0x5ac   : > { %v3051_v63 = vmul.f32 0.0078125, %v3011_v31  ;;  %v3114_v34 = vmul.f32 %v8111_v51, %v8111_v51 }
 0x5ae   : > { %3169 = vadd.xlane.f32.xlu1 %v3114_v34  ;;  %v8116_v61 = vsub.f32 %v7958_v7, %v3051_v63 }
 0x5af   : > { %v3013_v36 = vpop.xlane.xlu1 %3012 }
 0x5b0   : > { %v3052_v62 = vmul.f32 0.0078125, %v3013_v36  ;;  %v3115_v38 = vmul.f32 %v8116_v61, %v8116_v61 }
 0x5b2   : > { %v8121_v30 = vsub.f32 %v7963_v41, %v3052_v62  ;;  %3171 = vadd.xlane.f32.xlu0 %v3115_v38 }
 0x5b3   : > { %v3015_v50 = vpop.xlane.xlu1 %3014 }
 0x5b4   : > { %v3053_v22 = vmul.f32 0.0078125, %v3015_v50  ;;  %v3116_v37 = vmul.f32 %v8121_v30, %v8121_v30 }
 0x5b6   : > { %v8126_v60 = vsub.f32 %v7968_v45, %v3053_v22  ;;  %3173 = vadd.xlane.f32.xlu1 %v3116_v37  ;;  %v8158_v37 = vld [vmem:[%s8993_s9 + $0x1] ss:$0 sm:$0xff] }
 0x5b7   : > { %v3017_v7 = vpop.xlane.xlu1 %3016 }
 0x5b8   : > { %v3054_v59 = vmul.f32 0.0078125, %v3017_v7  ;;  %v3117_v47 = vmul.f32 %v8126_v60, %v8126_v60 }
 0x5ba   : > { %v8131_v40 = vsub.f32 %v7973_v56, %v3054_v59  ;;  %3175 = vadd.xlane.f32.xlu0 %v3117_v47 }
 0x5bb   : > { %v3019_v41 = vpop.xlane.xlu1 %3018 }
 0x5bc   : > { %v3055_v10 = vmul.f32 0.0078125, %v3019_v41  ;;  %v3118_v13 = vmul.f32 %v8131_v40, %v8131_v40  ;;  %v8164_v41 = vld [vmem:[%s8993_s9 + $0x2] ss:$0 sm:$0xff] }
 0x5be   : > { %v8136_v6 = vsub.f32 %v7978_v57, %v3055_v10  ;;  %3177 = vadd.xlane.f32.xlu1 %v3118_v13 }
 0x5bf   : > { %v3021_v45 = vpop.xlane.xlu1 %3020 }
 0x5c0   : > { %v3056_v1 = vmul.f32 0.0078125, %v3021_v45  ;;  %v3119_v25 = vmul.f32 %v8136_v6, %v8136_v6 }
 0x5c2   : > { %v8141_v58 = vsub.f32 %v7983_v16, %v3056_v1  ;;  %3179 = vadd.xlane.f32.xlu0 %v3119_v25 }
 0x5c3   : > { %v3023_v56 = vpop.xlane.xlu1 %3022 }
 0x5c4   : > { %v3057_v0 = vmul.f32 0.0078125, %v3023_v56  ;;  %v3120_v42 = vmul.f32 %v8141_v58, %v8141_v58 }
 0x5c6   : > { %v8146_v24 = vsub.f32 %v7988_v55, %v3057_v0  ;;  %3181 = vadd.xlane.f32.xlu1 %v3120_v42 }
 0x5c7   : > { %v3025_v57 = vpop.xlane.xlu1 %3024 }
 0x5c8   : > { %v3058_v2 = vmul.f32 0.0078125, %v3025_v57  ;;  %v3121_v11 = vmul.f32 %v8146_v24, %v8146_v24 }
 0x5ca   : > { %v8151_v5 = vsub.f32 %v7992_v8, %v3058_v2  ;;  %3183 = vadd.xlane.f32.xlu0 %v3121_v11 }
 0x5cc   : > { %v3122_v16 = vmul.f32 %v8151_v5, %v8151_v5 }
 0x5ce   : > { %3185 = vadd.xlane.f32.xlu1 %v3122_v16 }
 0x5de   : > { %v3124_v35 = vpop.xlane.xlu0 %3123 }
 0x5df   : > { %v3187_v9 = vmul.f32 0.0078125, %v3124_v35 }
 0x5e1   : > { %v3219_v14 = vadd.f32 1e-05, %v3187_v9 }
 0x5e2   : > { %v3126_v31 = vpop.xlane.xlu0 %3125 }
 0x5e3   : > { %5879 = vrsqrt.f32 %v3219_v14  ;;  %v3188_v55 = vmul.f32 0.0078125, %v3126_v31  ;;  %v3754_v31 = vld [vmem:[#allocation8] sm:$0xff] }
 0x5e5   : > { %v3220_v63 = vadd.f32 1e-05, %v3188_v55  ;;  %v3755_v55 = vld [vmem:[#allocation8 + $0x8] sm:$0xff] }
 0x5e6   : > { %v3128_v34 = vpop.xlane.xlu0 %3127 }
 0x5e7   : > { %5881 = vrsqrt.f32 %v3220_v63  ;;  %v3189_v36 = vmul.f32 0.0078125, %v3128_v34  ;;  %v3756_v63 = vld [vmem:[#allocation8 + $0x10] sm:$0xff] }
 0x5e9   : > { %v3221_v62 = vadd.f32 1e-05, %v3189_v36 }
 0x5ea   : > { %v3130_v38 = vpop.xlane.xlu0 %3129 }
 0x5eb   : > { %5883 = vrsqrt.f32 %v3221_v62  ;;  %v3190_v8 = vmul.f32 0.0078125, %v3130_v38  ;;  %v5534_v38 = vpack.c.bf16 %v3755_v55, %v3754_v31 }
 0x5ed   : > { %v5880_v50 = vpop.eup %5879  ;;  %v3222_v22 = vadd.f32 1e-05, %v3190_v8  ;;  %v3757_v8 = vld [vmem:[#allocation8 + $0x18] sm:$0xff] }
 0x5ee   : > { %v3283_v7 = vmul.f32 %v5880_v50, %v7996_v21  ;;  %v3132_v59 = vpop.xlane.xlu0 %3131 }
 0x5ef   : > { %5885 = vrsqrt.f32 %v3222_v22  ;;  %v3191_v47 = vmul.f32 0.0078125, %v3132_v59 }
 0x5f0   : > { %v3320_v10 = vmul.f32 %v8158_v37, %v3283_v7  ;;  %v5537_v7 = vpack.c.bf16 %v3757_v8, %v3756_v63 }
 0x5f1   : > { %v5882_v13 = vpop.eup %5881  ;;  %v3223_v45 = vadd.f32 1e-05, %v3191_v47 }
 0x5f2   : > { %v3134_v1 = vpop.xlane.xlu0 %3133  ;;  %v8168_v25 = vadd.f32 %v8164_v41, %v3320_v10  ;;  %v3284_v56 = vmul.f32 %v5882_v13, %v8001_v53  ;;  %v3759_v10 = vld [vmem:[#allocation8 + $0x28] sm:$0xff] }
 0x5f3   : > { %5887 = vrsqrt.f32 %v3223_v45  ;;  %v3192_v21 = vmul.f32 0.0078125, %v3134_v1 }
 0x5f4   : > { %3498 = vmatmul.mubr.f32.vlgmr.msra.gmra.mrb[128].mxu0 %v8168_v25  ;;  %v3321_v0 = vmul.f32 %v8158_v37, %v3284_v56 }
 0x5f5   : > { %v5884_v42 = vpop.eup %5883  ;;  %v3224_v57 = vadd.f32 1e-05, %v3192_v21  ;;  %3503 = vmatprep.mubr.f32.mxu0 %v9058_v48 }
 0x5f6   : > { %v3136_v2 = vpop.xlane.xlu0 %3135  ;;  %v8175_v11 = vadd.f32 %v8164_v41, %v3321_v0  ;;  %v3285_v16 = vmul.f32 %v5884_v42, %v8006_v3  ;;  %v6188_v3 = vmov 0.0|0.0  }
 0x5f7   : > { %5889 = vrsqrt.f32 %v3224_v57  ;;  %v3193_v35 = vmul.f32 0.0078125, %v3136_v2  ;;  %5533 = vmatprep.subr.bf16.mxu1 %v6188_v3  ;;  %v3760_v2 = vld [vmem:[#allocation8 + $0x30] sm:$0xff] }
 0x5f8   : > { %3504 = vmatmul.mubr.f32.gmra.mrb[130].mxu0 %v8175_v11  ;;  %v3322_v53 = vmul.f32 %v8158_v37, %v3285_v16  ;;  %5535 = vmatpush1.bf16.msra.mxu1 %v5534_v38  ;;  %v3761_v16 = vld [vmem:[#allocation8 + $0x38] sm:$0xff] }
 0x5f9   : > { %v5886_v9 = vpop.eup %5885  ;;  %v3225_v14 = vadd.f32 1e-05, %v3193_v35  ;;  %3509 = vmatprep.mubr.f32.mxu0 %v9058_v48  ;;  %5536 = vmatprep.subr.bf16.mxu1 %v6188_v3  ;;  %v5543_v31 = vpack.c.bf16 %v3761_v16, %v3760_v2 }
 0x5fa   : > { %v3138_v34 = vpop.xlane.xlu0 %3137  ;;  %v8182_v36 = vadd.f32 %v8164_v41, %v3322_v53  ;;  %v3286_v62 = vmul.f32 %v5886_v9, %v8011_v32  ;;  %v3758_v32 = vld [vmem:[#allocation8 + $0x20] sm:$0xff]  ;;  %v3150_v38 = vpop.xlane.xlu1 %3149 }
 0x5fb   : > { %5891 = vrsqrt.f32 %v3225_v14  ;;  %v3194_v50 = vmul.f32 0.0078125, %v3138_v34  ;;  %v5540_v0 = vpack.c.bf16 %v3759_v10, %v3758_v32  ;;  %v3762_v34 = vld [vmem:[#allocation8 + $0x40] sm:$0xff]  ;;  %v3200_v32 = vmul.f32 0.0078125, %v3150_v38 }
 0x5fc   : > { %3510 = vmatmul.mubr.f32.gmra.mrb[132].mxu0 %v8182_v36  ;;  %v3323_v22 = vmul.f32 %v8158_v37, %v3286_v62  ;;  %5538 = vmatpush1.bf16.msra.mxu1 %v5537_v7  ;;  %v3763_v62 = vld [vmem:[#allocation8 + $0x48] sm:$0xff] }
 0x5fd   : > { %v5888_v59 = vpop.eup %5887  ;;  %v3226_v47 = vadd.f32 1e-05, %v3194_v50  ;;  %3515 = vmatprep.mubr.f32.mxu0 %v9058_v48  ;;  %5539 = vmatprep.subr.bf16.mxu1 %v6188_v3  ;;  %v3232_v16 = vadd.f32 1e-05, %v3200_v32 }
 0x5fe   : > { %v3140_v13 = vpop.xlane.xlu0 %3139  ;;  %v8191_v45 = vadd.f32 %v8164_v41, %v3323_v22  ;;  %v3287_v1 = vmul.f32 %v5888_v59, %v8016_v26  ;;  %v5546_v59 = vpack.c.bf16 %v3763_v62, %v3762_v34 }
 0x5ff   : > { %5893 = vrsqrt.f32 %v3226_v47  ;;  %v3195_v56 = vmul.f32 0.0078125, %v3140_v13  ;;  %v3764_v13 = vld [vmem:[#allocation8 + $0x50] sm:$0xff] }
 0x600   : > { %3516 = vmatmul.mubr.f32.gmra.mrb[134].mxu0 %v8191_v45  ;;  %v3324_v21 = vmul.f32 %v8158_v37, %v3287_v1  ;;  %5541 = vmatpush1.bf16.msra.mxu1 %v5540_v0  ;;  %v3765_v1 = vld [vmem:[#allocation8 + $0x58] sm:$0xff] }
 0x601   : > { %v5890_v42 = vpop.eup %5889  ;;  %v3227_v57 = vadd.f32 1e-05, %v3195_v56  ;;  %3521 = vmatprep.mubr.f32.mxu0 %v9058_v48  ;;  %5542 = vmatprep.subr.bf16.mxu1 %v6188_v3 }
 0x602   : > { %v3142_v35 = vpop.xlane.xlu0 %3141  ;;  %v8199_v53 = vadd.f32 %v8164_v41, %v3324_v21  ;;  %v3288_v26 = vmul.f32 %v5890_v42, %v8021_v15 }
 0x603   : > { %5895 = vrsqrt.f32 %v3227_v57  ;;  %v3196_v9 = vmul.f32 0.0078125, %v3142_v35  ;;  %v5549_v57 = vpack.c.bf16 %v3765_v1, %v3764_v13 }
 0x604   : > { %3522 = vmatmul.mubr.f32.gmra.mrb[136].mxu0 %v8199_v53  ;;  %v3325_v14 = vmul.f32 %v8158_v37, %v3288_v26  ;;  %5544 = vmatpush1.bf16.msra.mxu1 %v5543_v31  ;;  %v3766_v26 = vld [vmem:[#allocation8 + $0x60] sm:$0xff] }
 0x605   : > { %v5892_v55 = vpop.eup %5891  ;;  %v3228_v63 = vadd.f32 1e-05, %v3196_v9  ;;  %3527 = vmatprep.mubr.f32.mxu0 %v9058_v48  ;;  %5545 = vmatprep.subr.bf16.mxu1 %v6188_v3  ;;  %v3767_v9 = vld [vmem:[#allocation8 + $0x68] sm:$0xff] }
 0x606   : > { %v3144_v8 = vpop.xlane.xlu0 %3143  ;;  %v8207_v15 = vadd.f32 %v8164_v41, %v3325_v14  ;;  %v3289_v50 = vmul.f32 %v5892_v55, %v8026_v33  ;;  %v3154_v14 = vpop.xlane.xlu1 %3153  ;;  %v5552_v62 = vpack.c.bf16 %v3767_v9, %v3766_v26  ;;  %v3772_v26 = vld [vmem:[#allocation8 + $0x90] sm:$0xff]  ;;  %v3773_v9 = vld [vmem:[#allocation8 + $0x98] sm:$0xff] }
 0x607   : > { %5897 = vrsqrt.f32 %v3228_v63  ;;  %v3197_v22 = vmul.f32 0.0078125, %v3144_v8  ;;  %v3202_v8 = vmul.f32 0.0078125, %v3154_v14 }
 0x608   : > { %3528 = vmatmul.mubr.f32.gmra.mrb[138].mxu0 %v8207_v15  ;;  %v3326_v7 = vmul.f32 %v8158_v37, %v3289_v50  ;;  %5547 = vmatpush1.bf16.msra.mxu1 %v5546_v59 }
 0x609   : > { %v5894_v47 = vpop.eup %5893  ;;  %v3229_v10 = vadd.f32 1e-05, %v3197_v22  ;;  %3533 = vmatprep.mubr.f32.mxu0 %v9058_v48  ;;  %5548 = vmatprep.subr.bf16.mxu1 %v6188_v3  ;;  %v3768_v22 = vld [vmem:[#allocation8 + $0x70] sm:$0xff] }
 0x60a   : > { %v3146_v56 = vpop.xlane.xlu0 %3145  ;;  %v8215_v33 = vadd.f32 %v8164_v41, %v3326_v7  ;;  %v3290_v21 = vmul.f32 %v5894_v47, %v8031_v19  ;;  %v3769_v7 = vld [vmem:[#allocation8 + $0x78] sm:$0xff] }
 0x60b   : > { %5899 = vrsqrt.f32 %v3229_v10  ;;  %v3198_v0 = vmul.f32 0.0078125, %v3146_v56  ;;  %v5555_v13 = vpack.c.bf16 %v3769_v7, %v3768_v22  ;;  %v3234_v56 = vadd.f32 1e-05, %v3202_v8 }
 0x60c   : > { %3534 = vmatmul.mubr.f32.gmra.mrb[140].mxu0 %v8215_v33  ;;  %v3327_v42 = vmul.f32 %v8158_v37, %v3290_v21  ;;  %5550 = vmatpush1.bf16.msra.mxu1 %v5549_v57 }
 0x60d   : > { %v5896_v2 = vpop.eup %5895  ;;  %v3230_v35 = vadd.f32 1e-05, %v3198_v0  ;;  %3539 = vmatprep.mubr.f32.mxu0 %v9058_v48  ;;  %5551 = vmatprep.subr.bf16.mxu1 %v6188_v3  ;;  %v3770_v0 = vld [vmem:[#allocation8 + $0x80] sm:$0xff] }
 0x60e   : > { %v3148_v31 = vpop.xlane.xlu0 %3147  ;;  %v8223_v19 = vadd.f32 %v8164_v41, %v3327_v42  ;;  %v3291_v55 = vmul.f32 %v5896_v2, %v8037_v46  ;;  %v3771_v42 = vld [vmem:[#allocation8 + $0x88] sm:$0xff] }
 0x60f   : > { %5901 = vrsqrt.f32 %v3230_v35  ;;  %v3199_v63 = vmul.f32 0.0078125, %v3148_v31 }
 0x610   : > { %3540 = vmatmul.mubr.f32.gmra.mrb[142].mxu0 %v8223_v19  ;;  %v3328_v34 = vmul.f32 %v8158_v37, %v3291_v55  ;;  %5903 = vrsqrt.f32 %v3232_v16  ;;  %5553 = vmatpush1.bf16.msra.mxu1 %v5552_v62  ;;  %v5558_v16 = vpack.c.bf16 %v3771_v42, %v3770_v0  ;;  %v3774_v62 = vld [vmem:[#allocation8 + $0xa0] sm:$0xff] }
 0x611   : > { %v5898_v38 = vpop.eup %5897  ;;  %v3231_v50 = vadd.f32 1e-05, %v3199_v63  ;;  %3545 = vmatprep.mubr.f32.mxu0 %v9058_v48  ;;  %5554 = vmatprep.subr.bf16.mxu1 %v6188_v3  ;;  %v5561_v63 = vpack.c.bf16 %v3773_v9, %v3772_v26 }
 0x612   : > { %v3152_v59 = vpop.xlane.xlu0 %3151  ;;  %v8231_v46 = vadd.f32 %v8164_v41, %v3328_v34  ;;  %v3292_v47 = vmul.f32 %v5898_v38, %v8051_v54  ;;  %v3775_v38 = vld [vmem:[#allocation8 + $0xa8] sm:$0xff] }
 0x613   : > { %5905 = vrsqrt.f32 %v3231_v50  ;;  %v3201_v32 = vmul.f32 0.0078125, %v3152_v59  ;;  %v5564_v7 = vpack.c.bf16 %v3775_v38, %v3774_v62 }
 0x614   : > { %3546 = vmatmul.mubr.f32.gmra.mrb[144].mxu0 %v8231_v46  ;;  %v3329_v10 = vmul.f32 %v8158_v37, %v3292_v47  ;;  %5556 = vmatpush1.bf16.msra.mxu1 %v5555_v13  ;;  %v3776_v47 = vld [vmem:[#allocation8 + $0xb0] sm:$0xff] }
 0x615   : > { %v5900_v1 = vpop.eup %5899  ;;  %v3233_v21 = vadd.f32 1e-05, %v3201_v32  ;;  %3551 = vmatprep.mubr.f32.mxu0 %v9058_v48  ;;  %5557 = vmatprep.subr.bf16.mxu1 %v6188_v3  ;;  %v3777_v32 = vld [vmem:[#allocation8 + $0xb8] sm:$0xff] }
 0x616   : > { %v8239_v57 = vadd.f32 %v8164_v41, %v3329_v10  ;;  %v3293_v54 = vmul.f32 %v5900_v1, %v8056_v17  ;;  %v5567_v1 = vpack.c.bf16 %v3777_v32, %v3776_v47 }
 0x617   : > { %5907 = vrsqrt.f32 %v3233_v21  ;;  %v3779_v21 = vld [vmem:[#allocation8 + $0xc8] sm:$0xff] }
 0x618   : > { %3552 = vmatmul.mubr.f32.gmra.mrb[146].mxu0 %v8239_v57  ;;  %v3330_v2 = vmul.f32 %v8158_v37, %v3293_v54  ;;  %5909 = vrsqrt.f32 %v3234_v56  ;;  %5559 = vmatpush1.bf16.msra.mxu1 %v5558_v16  ;;  %v3778_v56 = vld [vmem:[#allocation8 + $0xc0] sm:$0xff] }
 0x619   : > { %v5902_v35 = vpop.eup %5901  ;;  %3557 = vmatprep.mubr.f32.mxu0 %v9058_v48  ;;  %5560 = vmatprep.subr.bf16.mxu1 %v6188_v3  ;;  %v5570_v26 = vpack.c.bf16 %v3779_v21, %v3778_v56 }
 0x61a   : > { %v8247_v14 = vadd.f32 %v8164_v41, %v3330_v2  ;;  %v3294_v17 = vmul.f32 %v5902_v35, %v8061_v39  ;;  %v5904_v31 = vpop.eup %5903 }
 0x61b   : > { %v3296_v39 = vmul.f32 %v5904_v31, %v8034_v20  ;;  %v3781_v31 = vld [vmem:[#allocation8 + $0xd8] sm:$0xff] }
 0x61c   : > { %3558 = vmatmul.mubr.f32.gmra.mrb[148].mxu0 %v8247_v14  ;;  %v3331_v55 = vmul.f32 %v8158_v37, %v3294_v17  ;;  %5562 = vmatpush1.bf16.msra.mxu1 %v5561_v63  ;;  %v3780_v17 = vld [vmem:[#allocation8 + $0xd0] sm:$0xff] }
 0x61d   : > { %v5906_v34 = vpop.eup %5905  ;;  %3563 = vmatprep.mubr.f32.mxu0 %v9058_v48  ;;  %5563 = vmatprep.subr.bf16.mxu1 %v6188_v3 }
 0x61e   : > { %v8255_v8 = vadd.f32 %v8164_v41, %v3331_v55  ;;  %v3295_v50 = vmul.f32 %v5906_v34, %v8066_v52  ;;  %v3333_v52 = vmul.f32 %v8158_v37, %v3296_v39  ;;  %v5573_v39 = vpack.c.bf16 %v3781_v31, %v3780_v17 }
 0x620   : > { %3564 = vmatmul.mubr.f32.gmra.mrb[150].mxu0 %v8255_v8  ;;  %v3332_v22 = vmul.f32 %v8158_v37, %v3295_v50  ;;  %5565 = vmatpush1.bf16.msra.mxu1 %v5564_v7  ;;  %v8272_v42 = vadd.f32 %v8164_v41, %v3333_v52  ;;  %v3783_v7 = vld [vmem:[#allocation8 + $0xe8] sm:$0xff] }
 0x621   : > { %v5908_v59 = vpop.eup %5907  ;;  %3569 = vmatprep.mubr.f32.mxu0 %v9058_v48  ;;  %5566 = vmatprep.subr.bf16.mxu1 %v6188_v3 }
 0x622   : > { %v8264_v10 = vadd.f32 %v8164_v41, %v3332_v22  ;;  %v3297_v20 = vmul.f32 %v5908_v59, %v8071_v49  ;;  %v5910_v13 = vpop.eup %5909  ;;  %v3782_v22 = vld [vmem:[#allocation8 + $0xe0] sm:$0xff] }
 0x623   : > { %v3298_v2 = vmul.f32 %v5910_v13, %v8044_v27  ;;  %v5576_v13 = vpack.c.bf16 %v3783_v7, %v3782_v22 }
 0x624   : > { %3570 = vmatmul.mubr.f32.gmra.mrb[152].mxu0 %v8264_v10  ;;  %v3334_v54 = vmul.f32 %v8158_v37, %v3297_v20  ;;  %5568 = vmatpush1.bf16.msra.mxu1 %v5567_v1 }
 0x625   : > { %3575 = vmatprep.mubr.f32.mxu0 %v9058_v48  ;;  %5569 = vmatprep.subr.bf16.mxu1 %v6188_v3  ;;  %v3335_v27 = vmul.f32 %v8158_v37, %v3298_v2 }
 0x626   : > { %v3158_v0 = vpop.xlane.xlu1 %3157  ;;  %v8280_v34 = vadd.f32 %v8164_v41, %v3334_v54 }
 0x627   : > { %v3204_v49 = vmul.f32 0.0078125, %v3158_v0  ;;  %v3156_v16 = vpop.xlane.xlu0 %3155  ;;  %v8287_v32 = vadd.f32 %v8164_v41, %v3335_v27 }
 0x628   : > { %v3203_v35 = vmul.f32 0.0078125, %v3156_v16  ;;  %3576 = vmatmul.mubr.f32.gmra.mrb[154].mxu0 %v8272_v42  ;;  %5571 = vmatpush1.bf16.msra.mxu1 %v5570_v26 }
 0x629   : > { %v3236_v9 = vadd.f32 1e-05, %v3204_v49  ;;  %3581 = vmatprep.mubr.f32.mxu0 %v9058_v48  ;;  %5572 = vmatprep.subr.bf16.mxu1 %v6188_v3 }
 0x62a   : > { %v3235_v55 = vadd.f32 1e-05, %v3203_v35  ;;  %v3162_v63 = vpop.xlane.xlu1 %3161 }
 0x62b   : > { %5911 = vrsqrt.f32 %v3236_v9  ;;  %v3206_v62 = vmul.f32 0.0078125, %v3162_v63  ;;  %v3160_v38 = vpop.xlane.xlu0 %3159 }
 0x62c   : > { %5913 = vrsqrt.f32 %v3235_v55  ;;  %v3205_v50 = vmul.f32 0.0078125, %v3160_v38  ;;  %3582 = vmatmul.mubr.f32.gmra.mrb[156].mxu0 %v8280_v34  ;;  %5574 = vmatpush1.bf16.msra.mxu1 %v5573_v39 }
 0x62d   : > { %3587 = vmatprep.mubr.f32.mxu0 %v9058_v48  ;;  %v3238_v59 = vadd.f32 1e-05, %v3206_v62  ;;  %5575 = vmatprep.subr.bf16.mxu1 %v6188_v3 }
 0x62e   : > { %v3237_v47 = vadd.f32 1e-05, %v3205_v50 }
 0x62f   : > { %v3164_v52 = vpop.xlane.xlu0 %3163 }
 0x630   : > { %5915 = vrsqrt.f32 %v3237_v47  ;;  %v3207_v20 = vmul.f32 0.0078125, %v3164_v52  ;;  %3588 = vmatmul.mubr.f32.gmra.mrb[158].mxu0 %v8287_v32  ;;  %5577 = vmatpush1.bf16.msra.mxu1 %v5576_v13 }
 0x631   : > { %3593 = vmatprep.mubr.f32.mxu0 %v9058_v48  ;;  %5917 = vrsqrt.f32 %v3238_v59  ;;  %5578 = vmatprep.subr.bf16.mxu1 %v6188_v3 }
 0x632   : > { %v3239_v1 = vadd.f32 1e-05, %v3207_v20 }
 0x633   : > { %v3166_v56 = vpop.xlane.xlu1 %3165 }
 0x634   : > { %v3208_v21 = vmul.f32 0.0078125, %v3166_v56  ;;  %5919 = vrsqrt.f32 %v3239_v1 }
 0x635   : > { %v5912_v0 = vpop.eup %5911 }
 0x636   : > { %v5914_v54 = vpop.eup %5913  ;;  %v3240_v2 = vadd.f32 1e-05, %v3208_v21  ;;  %v3300_v35 = vmul.f32 %v5912_v0, %v8076_v18 }
 0x637   : > { %v3168_v49 = vpop.xlane.xlu0 %3167  ;;  %v3299_v16 = vmul.f32 %v5914_v54, %v8079_v12 }
 0x638   : > { %v3209_v26 = vmul.f32 0.0078125, %v3168_v49  ;;  %5921 = vrsqrt.f32 %v3240_v2  ;;  %v3337_v3 = vmul.f32 %v8158_v37, %v3300_v35 }
 0x639   : > { %v3336_v9 = vmul.f32 %v8158_v37, %v3299_v16 }
 0x63a   : > { %v5916_v17 = vpop.eup %5915  ;;  %v3241_v31 = vadd.f32 1e-05, %v3209_v26  ;;  %v8304_v50 = vadd.f32 %v8164_v41, %v3337_v3 }
 0x63b   : > { %v3170_v55 = vpop.xlane.xlu1 %3169  ;;  %v8297_v63 = vadd.f32 %v8164_v41, %v3336_v9  ;;  %v3301_v27 = vmul.f32 %v5916_v17, %v8089_v29  ;;  %v5918_v62 = vpop.eup %5917 }
 0x63c   : > { %v3210_v38 = vmul.f32 0.0078125, %v3170_v55  ;;  %5923 = vrsqrt.f32 %v3241_v31  ;;  %v3302_v22 = vmul.f32 %v5918_v62, %v8086_v28  ;;  %v3784_v31 = vld [vmem:[#allocation8 + $0xf0] sm:$0xff]  ;;  %v3785_v55 = vld [vmem:[#allocation8 + $0xf8] sm:$0xff] }
 0x63d   : > { %3594 = vmatmul.mubr.f32.gmra.mrb[160].mxu0 %v8297_v63  ;;  %v3338_v39 = vmul.f32 %v8158_v37, %v3301_v27  ;;  %v5579_v27 = vpack.c.bf16 %v3785_v55, %v3784_v31 }
 0x63e   : > { %v3242_v18 = vadd.f32 1e-05, %v3210_v38  ;;  %3599 = vmatprep.mubr.f32.mxu0 %v9058_v48  ;;  %v5920_v7 = vpop.eup %5919  ;;  %v3339_v20 = vmul.f32 %v8158_v37, %v3302_v22 }
 0x63f   : > { %v3172_v12 = vpop.xlane.xlu0 %3171  ;;  %v8311_v52 = vadd.f32 %v8164_v41, %v3338_v39  ;;  %v3303_v13 = vmul.f32 %v5920_v7, %v8096_v44  ;;  %5580 = vmatpush1.bf16.msra.mxu1 %v5579_v27 }
 0x640   : > { %v3211_v59 = vmul.f32 0.0078125, %v3172_v12  ;;  %5925 = vrsqrt.f32 %v3242_v18  ;;  %v8318_v0 = vadd.f32 %v8164_v41, %v3339_v20 }
 0x641   : > { %3600 = vmatmul.mubr.f32.gmra.mrb[162].mxu0 %v8304_v50  ;;  %v3340_v54 = vmul.f32 %v8158_v37, %v3303_v13 }
 0x642   : > { %v3243_v29 = vadd.f32 1e-05, %v3211_v59  ;;  %3605 = vmatprep.mubr.f32.mxu0 %v9058_v48  ;;  %v5922_v1 = vpop.eup %5921 }
 0x643   : > { %v3174_v47 = vpop.xlane.xlu1 %3173  ;;  %v3304_v2 = vmul.f32 %v5922_v1, %v8101_v23  ;;  %v8325_v26 = vadd.f32 %v8164_v41, %v3340_v54 }
 0x644   : > { %v3212_v56 = vmul.f32 0.0078125, %v3174_v47  ;;  %5927 = vrsqrt.f32 %v3243_v29 }
 0x645   : > { %3606 = vmatmul.mubr.f32.gmra.mrb[164].mxu0 %v8311_v52  ;;  %v3341_v9 = vmul.f32 %v8158_v37, %v3304_v2 }
 0x646   : > { %v3244_v28 = vadd.f32 1e-05, %v3212_v56  ;;  %3611 = vmatprep.mubr.f32.mxu0 %v9058_v48  ;;  %v5924_v49 = vpop.eup %5923 }
 0x647   : > { %v3176_v21 = vpop.xlane.xlu0 %3175  ;;  %v3305_v17 = vmul.f32 %v5924_v49, %v8106_v43  ;;  %v8332_v18 = vadd.f32 %v8164_v41, %v3341_v9 }
 0x648   : > { %v3213_v16 = vmul.f32 0.0078125, %v3176_v21  ;;  %5929 = vrsqrt.f32 %v3244_v28 }
 0x649   : > { %3612 = vmatmul.mubr.f32.gmra.mrb[166].mxu0 %v8318_v0  ;;  %v3342_v12 = vmul.f32 %v8158_v37, %v3305_v17 }
 0x64a   : > { %v3245_v44 = vadd.f32 1e-05, %v3213_v16  ;;  %3617 = vmatprep.mubr.f32.mxu0 %v9058_v48  ;;  %v5926_v3 = vpop.eup %5925 }
 0x64b   : > { %v3178_v35 = vpop.xlane.xlu1 %3177  ;;  %v3306_v43 = vmul.f32 %v5926_v3, %v8111_v51  ;;  %v8339_v29 = vadd.f32 %v8164_v41, %v3342_v12 }
 0x64c   : > { %v3214_v23 = vmul.f32 0.0078125, %v3178_v35  ;;  %5931 = vrsqrt.f32 %v3245_v44 }
 0x64d   : > { %3618 = vmatmul.mubr.f32.gmra.mrb[168].mxu0 %v8325_v26  ;;  %v3343_v47 = vmul.f32 %v8158_v37, %v3306_v43 }
 0x64e   : > { %v3246_v62 = vadd.f32 1e-05, %v3214_v23  ;;  %3623 = vmatprep.mubr.f32.mxu0 %v9058_v48  ;;  %v5928_v39 = vpop.eup %5927 }
 0x64f   : > { %v3180_v38 = vpop.xlane.xlu0 %3179  ;;  %v3307_v20 = vmul.f32 %v5928_v39, %v8116_v61  ;;  %v8346_v28 = vadd.f32 %v8164_v41, %v3343_v47 }
 0x650   : > { %v3215_v22 = vmul.f32 0.0078125, %v3180_v38  ;;  %5933 = vrsqrt.f32 %v3246_v62 }
 0x651   : > { %3624 = vmatmul.mubr.f32.gmra.mrb[170].mxu0 %v8332_v18  ;;  %v3344_v21 = vmul.f32 %v8158_v37, %v3307_v20 }
 0x652   : > { %v3247_v7 = vadd.f32 1e-05, %v3215_v22  ;;  %3629 = vmatprep.mubr.f32.mxu0 %v9058_v48  ;;  %v5930_v13 = vpop.eup %5929 }
 0x653   : > { %v3182_v59 = vpop.xlane.xlu1 %3181  ;;  %v3308_v54 = vmul.f32 %v5930_v13, %v8121_v30  ;;  %v8353_v44 = vadd.f32 %v8164_v41, %v3344_v21 }
 0x654   : > { %v3216_v1 = vmul.f32 0.0078125, %v3182_v59  ;;  %5935 = vrsqrt.f32 %v3247_v7 }
 0x655   : > { %3630 = vmatmul.mubr.f32.gmra.mrb[172].mxu0 %v8339_v29  ;;  %v3345_v35 = vmul.f32 %v8158_v37, %v3308_v54  ;;  %v9086_v54 = vsub.s32 1, %v6549_v4 }
 0x656   : > { %v3248_v51 = vadd.f32 1e-05, %v3216_v1  ;;  %3635 = vmatprep.mubr.f32.mxu0 %v9058_v48  ;;  %v5932_v2 = vpop.eup %5931 }
 0x657   : > { %v3184_v56 = vpop.xlane.xlu0 %3183  ;;  %v3309_v9 = vmul.f32 %v5932_v2, %v8126_v60  ;;  %v8360_v55 = vadd.f32 %v8164_v41, %v3345_v35 }
 0x658   : > { %v3217_v49 = vmul.f32 0.0078125, %v3184_v56  ;;  %5937 = vrsqrt.f32 %v3248_v51  ;;  %v9085_v56 = vsub.s32 0, %v6549_v4 }
 0x659   : > { %3636 = vmatmul.mubr.f32.gmra.mrb[174].mxu0 %v8346_v28  ;;  %v3346_v3 = vmul.f32 %v8158_v37, %v3309_v9 }
 0x65a   : > { %v3249_v61 = vadd.f32 1e-05, %v3217_v49  ;;  %3641 = vmatprep.mubr.f32.mxu0 %v9058_v48  ;;  %v5934_v17 = vpop.eup %5933 }
 0x65b   : > { %v3186_v16 = vpop.xlane.xlu1 %3185  ;;  %v3310_v23 = vmul.f32 %v5934_v17, %v8131_v40  ;;  %v8367_v60 = vadd.f32 %v8164_v41, %v3346_v3 }
 0x65c   : > { %v3218_v31 = vmul.f32 0.0078125, %v3186_v16  ;;  %5939 = vrsqrt.f32 %v3249_v61 }
 0x65d   : > { %3642 = vmatmul.mubr.f32.gmra.mrb[176].mxu0 %v8353_v44  ;;  %v3347_v62 = vmul.f32 %v8158_v37, %v3310_v23 }
 0x65e   : > { %v3250_v30 = vadd.f32 1e-05, %v3218_v31  ;;  %3647 = vmatprep.mubr.f32.mxu0 %v9058_v48  ;;  %v5936_v27 = vpop.eup %5935 }
 0x65f   : > { %v3311_v38 = vmul.f32 %v5936_v27, %v8136_v6  ;;  %v8374_v40 = vadd.f32 %v8164_v41, %v3347_v62 }
 0x660   : > { %5941 = vrsqrt.f32 %v3250_v30 }
 0x661   : > { %3648 = vmatmul.mubr.f32.gmra.mrb[178].mxu0 %v8360_v55  ;;  %v3348_v43 = vmul.f32 %v8158_v37, %v3311_v38 }
 0x662   : > { %3653 = vmatprep.mubr.f32.mxu0 %v9058_v48  ;;  %v5938_v12 = vpop.eup %5937 }
 0x663   : > { %v3312_v39 = vmul.f32 %v5938_v12, %v8141_v58  ;;  %v8381_v7 = vadd.f32 %v8164_v41, %v3348_v43 }
 0x665   : > { %3654 = vmatmul.mubr.f32.gmra.mrb[180].mxu0 %v8367_v60  ;;  %v3349_v6 = vmul.f32 %v8158_v37, %v3312_v39 }
 0x666   : > { %3659 = vmatprep.mubr.f32.mxu0 %v9058_v48  ;;  %v5940_v22 = vpop.eup %5939 }
 0x667   : > { %v3313_v59 = vmul.f32 %v5940_v22, %v8146_v24  ;;  %v8388_v20 = vadd.f32 %v8164_v41, %v3349_v6 }
 0x669   : > { %3660 = vmatmul.mubr.f32.gmra.mrb[182].mxu0 %v8374_v40  ;;  %v3350_v58 = vmul.f32 %v8158_v37, %v3313_v59 }
 0x66a   : > { %3665 = vmatprep.mubr.f32.mxu0 %v9058_v48  ;;  %v5942_v47 = vpop.eup %5941 }
 0x66b   : > { %v3314_v13 = vmul.f32 %v5942_v47, %v8151_v5  ;;  %v8395_v1 = vadd.f32 %v8164_v41, %v3350_v58  ;;  %v3421_v5 = vld [vmem:[%s9084_s30] sm:$0x3] }
 0x66c   : > { %v8409_v21 = vrot.slane %v3421_v5, %v9085_v56 }
 0x66d   : > { %3666 = vmatmul.mubr.f32.gmra.mrb[184].mxu0 %v8381_v7  ;;  %v3351_v24 = vmul.f32 %v8158_v37, %v3314_v13  ;;  %v8413_v37 = vrot.slane %v3421_v5, %v9086_v54 }
 0x66e   : > { %3671 = vmatprep.mubr.f32.mxu0 %v9058_v48 }
 0x66f   : > { %v8401_v51 = vadd.f32 %v8164_v41, %v3351_v24 }
 0x671   : > { %3672 = vmatmul.mubr.f32.gmra.mrb[186].mxu0 %v8388_v20 }
 0x672   : > { %3677 = vmatprep.mubr.f32.mxu0 %v9058_v48 }
 0x675   : > { %3678 = vmatmul.mubr.f32.gmra.mrb[188].mxu0 %v8395_v1 }
 0x676   : > { %3683 = vmatprep.mubr.f32.mxu0 %v9058_v48 }
 0x679   : > { %3684 = vmatmul.mubr.f32.gmra.mrb[190].mxu0 %v8401_v51 }
 0x6c7   : > { %v3499_v2 = vpop.f32.mrb[128].mxu0 }
 0x6c8   : > { %v3500_v48 = vadd.f32 %v3499_v2, %v8409_v21  ;;  %v3501_v49 = vpop.f32.mrb[129].mxu0 }
 0x6c9   : > { %v3502_v41 = vadd.f32 %v3501_v49, %v8413_v37 }
 0x6ca   : > { %v3690_v35 = vmax.f32 %v3500_v48, 0.0 }
 0x6cb   : > { %v3691_v61 = vmax.f32 %v3502_v41, 0.0  ;;  %v3505_v16 = vpop.f32.mrb[130].mxu0 }
 0x6cc   : > { %v3506_v9 = vadd.f32 %v3505_v16, %v8409_v21  ;;  %v3507_v17 = vpop.f32.mrb[131].mxu0 }
 0x6cd   : > { %v3508_v31 = vadd.f32 %v3507_v17, %v8413_v37  ;;  %3855 = vmatprep.mubr.f32.mxu1 %v3691_v61 }
 0x6ce   : > { %3856 = vmatmul.mubr.f32.vlgmr.msra.gmra.mrb[128].mxu1 %v3690_v35  ;;  %v3692_v3 = vmax.f32 %v3506_v9, 0.0 }
 0x6cf   : > { %v3693_v30 = vmax.f32 %v3508_v31, 0.0  ;;  %v3511_v4 = vpop.f32.mrb[132].mxu0 }
 0x6d0   : > { %v3512_v23 = vadd.f32 %v3511_v4, %v8409_v21  ;;  %v3513_v27 = vpop.f32.mrb[133].mxu0 }
 0x6d1   : > { %v3514_v62 = vadd.f32 %v3513_v27, %v8413_v37  ;;  %3860 = vmatprep.mubr.f32.mxu1 %v3693_v30 }
 0x6d2   : > { %3861 = vmatmul.mubr.f32.gmra.mrb[130].mxu1 %v3692_v3  ;;  %v3694_v43 = vmax.f32 %v3512_v23, 0.0 }
 0x6d3   : > { %v3695_v38 = vmax.f32 %v3514_v62, 0.0  ;;  %v3517_v12 = vpop.f32.mrb[134].mxu0 }
 0x6d4   : > { %v3518_v39 = vadd.f32 %v3517_v12, %v8409_v21  ;;  %v3519_v22 = vpop.f32.mrb[135].mxu0 }
 0x6d5   : > { %v3520_v6 = vadd.f32 %v3519_v22, %v8413_v37  ;;  %3865 = vmatprep.mubr.f32.mxu1 %v3695_v38 }
 0x6d6   : > { %3866 = vmatmul.mubr.f32.gmra.mrb[132].mxu1 %v3694_v43  ;;  %v3696_v58 = vmax.f32 %v3518_v39, 0.0 }
 0x6d7   : > { %v3697_v59 = vmax.f32 %v3520_v6, 0.0  ;;  %v3523_v47 = vpop.f32.mrb[136].mxu0 }
 0x6d8   : > { %v3524_v13 = vadd.f32 %v3523_v47, %v8409_v21  ;;  %v3525_v24 = vpop.f32.mrb[137].mxu0 }
 0x6d9   : > { %v3526_v5 = vadd.f32 %v3525_v24, %v8413_v37  ;;  %3870 = vmatprep.mubr.f32.mxu1 %v3697_v59 }
 0x6da   : > { %3871 = vmatmul.mubr.f32.gmra.mrb[134].mxu1 %v3696_v58  ;;  %v3698_v2 = vmax.f32 %v3524_v13, 0.0 }
 0x6db   : > { %v3699_v56 = vmax.f32 %v3526_v5, 0.0  ;;  %v3529_v54 = vpop.f32.mrb[138].mxu0 }
 0x6dc   : > { %v3530_v48 = vadd.f32 %v3529_v54, %v8409_v21  ;;  %v3531_v49 = vpop.f32.mrb[139].mxu0 }
 0x6dd   : > { %v3532_v41 = vadd.f32 %v3531_v49, %v8413_v37  ;;  %3875 = vmatprep.mubr.f32.mxu1 %v3699_v56 }
 0x6de   : > { %3876 = vmatmul.mubr.f32.gmra.mrb[136].mxu1 %v3698_v2  ;;  %v3700_v35 = vmax.f32 %v3530_v48, 0.0 }
 0x6df   : > { %v3701_v61 = vmax.f32 %v3532_v41, 0.0  ;;  %v3535_v16 = vpop.f32.mrb[140].mxu0 }
 0x6e0   : > { %v3536_v9 = vadd.f32 %v3535_v16, %v8409_v21  ;;  %v3537_v17 = vpop.f32.mrb[141].mxu0 }
 0x6e1   : > { %v3538_v31 = vadd.f32 %v3537_v17, %v8413_v37  ;;  %3880 = vmatprep.mubr.f32.mxu1 %v3701_v61 }
 0x6e2   : > { %3881 = vmatmul.mubr.f32.gmra.mrb[138].mxu1 %v3700_v35  ;;  %v3702_v3 = vmax.f32 %v3536_v9, 0.0 }
 0x6e3   : > { %v3703_v30 = vmax.f32 %v3538_v31, 0.0  ;;  %v3541_v4 = vpop.f32.mrb[142].mxu0 }
 0x6e4   : > { %v3542_v23 = vadd.f32 %v3541_v4, %v8409_v21  ;;  %v3543_v27 = vpop.f32.mrb[143].mxu0 }
 0x6e5   : > { %v3544_v62 = vadd.f32 %v3543_v27, %v8413_v37  ;;  %3885 = vmatprep.mubr.f32.mxu1 %v3703_v30 }
 0x6e6   : > { %3886 = vmatmul.mubr.f32.gmra.mrb[140].mxu1 %v3702_v3  ;;  %v3704_v43 = vmax.f32 %v3542_v23, 0.0 }
 0x6e7   : > { %v3705_v38 = vmax.f32 %v3544_v62, 0.0  ;;  %v3547_v12 = vpop.f32.mrb[144].mxu0 }
 0x6e8   : > { %v3548_v39 = vadd.f32 %v3547_v12, %v8409_v21  ;;  %v3549_v22 = vpop.f32.mrb[145].mxu0 }
 0x6e9   : > { %v3550_v6 = vadd.f32 %v3549_v22, %v8413_v37  ;;  %3890 = vmatprep.mubr.f32.mxu1 %v3705_v38 }
 0x6ea   : > { %3891 = vmatmul.mubr.f32.gmra.mrb[142].mxu1 %v3704_v43  ;;  %v3706_v58 = vmax.f32 %v3548_v39, 0.0 }
 0x6eb   : > { %v3707_v59 = vmax.f32 %v3550_v6, 0.0  ;;  %v3553_v47 = vpop.f32.mrb[146].mxu0 }
 0x6ec   : > { %v3554_v13 = vadd.f32 %v3553_v47, %v8409_v21  ;;  %v3555_v24 = vpop.f32.mrb[147].mxu0 }
 0x6ed   : > { %v3556_v5 = vadd.f32 %v3555_v24, %v8413_v37  ;;  %3895 = vmatprep.mubr.f32.mxu1 %v3707_v59 }
 0x6ee   : > { %3896 = vmatmul.mubr.f32.gmra.mrb[144].mxu1 %v3706_v58  ;;  %v3708_v2 = vmax.f32 %v3554_v13, 0.0 }
 0x6ef   : > { %v3709_v56 = vmax.f32 %v3556_v5, 0.0  ;;  %v3559_v54 = vpop.f32.mrb[148].mxu0 }
 0x6f0   : > { %v3560_v48 = vadd.f32 %v3559_v54, %v8409_v21  ;;  %v3561_v49 = vpop.f32.mrb[149].mxu0 }
 0x6f1   : > { %v3562_v41 = vadd.f32 %v3561_v49, %v8413_v37  ;;  %3900 = vmatprep.mubr.f32.mxu1 %v3709_v56 }
 0x6f2   : > { %3901 = vmatmul.mubr.f32.gmra.mrb[146].mxu1 %v3708_v2  ;;  %v3710_v35 = vmax.f32 %v3560_v48, 0.0 }
 0x6f3   : > { %v3711_v61 = vmax.f32 %v3562_v41, 0.0  ;;  %v3565_v16 = vpop.f32.mrb[150].mxu0 }
 0x6f4   : > { %v3566_v9 = vadd.f32 %v3565_v16, %v8409_v21  ;;  %v3567_v17 = vpop.f32.mrb[151].mxu0 }
 0x6f5   : > { %v3568_v31 = vadd.f32 %v3567_v17, %v8413_v37  ;;  %3905 = vmatprep.mubr.f32.mxu1 %v3711_v61 }
 0x6f6   : > { %3906 = vmatmul.mubr.f32.gmra.mrb[148].mxu1 %v3710_v35  ;;  %v3712_v3 = vmax.f32 %v3566_v9, 0.0 }
 0x6f7   : > { %v3713_v30 = vmax.f32 %v3568_v31, 0.0  ;;  %v3571_v4 = vpop.f32.mrb[152].mxu0 }
 0x6f8   : > { %v3572_v23 = vadd.f32 %v3571_v4, %v8409_v21  ;;  %v3573_v27 = vpop.f32.mrb[153].mxu0 }
 0x6f9   : > { %v3574_v62 = vadd.f32 %v3573_v27, %v8413_v37  ;;  %3910 = vmatprep.mubr.f32.mxu1 %v3713_v30 }
 0x6fa   : > { %3911 = vmatmul.mubr.f32.gmra.mrb[150].mxu1 %v3712_v3  ;;  %v3714_v43 = vmax.f32 %v3572_v23, 0.0 }
 0x6fb   : > { %v3715_v38 = vmax.f32 %v3574_v62, 0.0  ;;  %v3577_v12 = vpop.f32.mrb[154].mxu0 }
 0x6fc   : > { %v3578_v39 = vadd.f32 %v3577_v12, %v8409_v21  ;;  %v3579_v22 = vpop.f32.mrb[155].mxu0 }
 0x6fd   : > { %v3580_v6 = vadd.f32 %v3579_v22, %v8413_v37  ;;  %3915 = vmatprep.mubr.f32.mxu1 %v3715_v38 }
 0x6fe   : > { %3916 = vmatmul.mubr.f32.gmra.mrb[152].mxu1 %v3714_v43  ;;  %v3716_v58 = vmax.f32 %v3578_v39, 0.0 }
 0x6ff   : > { %v3717_v59 = vmax.f32 %v3580_v6, 0.0  ;;  %v3583_v47 = vpop.f32.mrb[156].mxu0 }
 0x700   : > { %v3584_v13 = vadd.f32 %v3583_v47, %v8409_v21  ;;  %v3585_v24 = vpop.f32.mrb[157].mxu0 }
 0x701   : > { %v3586_v5 = vadd.f32 %v3585_v24, %v8413_v37  ;;  %3920 = vmatprep.mubr.f32.mxu1 %v3717_v59 }
 0x702   : > { %3921 = vmatmul.mubr.f32.gmra.mrb[154].mxu1 %v3716_v58  ;;  %v3718_v2 = vmax.f32 %v3584_v13, 0.0 }
 0x703   : > { %v3719_v56 = vmax.f32 %v3586_v5, 0.0  ;;  %v3589_v54 = vpop.f32.mrb[158].mxu0 }
 0x704   : > { %v3590_v48 = vadd.f32 %v3589_v54, %v8409_v21  ;;  %v3591_v49 = vpop.f32.mrb[159].mxu0 }
 0x705   : > { %v3592_v41 = vadd.f32 %v3591_v49, %v8413_v37  ;;  %3925 = vmatprep.mubr.f32.mxu1 %v3719_v56 }
 0x706   : > { %3926 = vmatmul.mubr.f32.gmra.mrb[156].mxu1 %v3718_v2  ;;  %v3720_v16 = vmax.f32 %v3590_v48, 0.0 }
 0x707   : > { %v3721_v61 = vmax.f32 %v3592_v41, 0.0 }
 0x709   : > { %3930 = vmatprep.mubr.f32.mxu1 %v3721_v61 }
 0x70a   : > { %3931 = vmatmul.mubr.f32.gmra.mrb[158].mxu1 %v3720_v16 }
 0x710   : > { %v3595_v35 = vpop.f32.mrb[160].mxu0 }
 0x711   : > { %v3596_v9 = vadd.f32 %v3595_v35, %v8409_v21  ;;  %v3597_v17 = vpop.f32.mrb[161].mxu0 }
 0x712   : > { %v3598_v31 = vadd.f32 %v3597_v17, %v8413_v37 }
 0x713   : > { %v3722_v3 = vmax.f32 %v3596_v9, 0.0 }
 0x714   : > { %v3723_v30 = vmax.f32 %v3598_v31, 0.0  ;;  %v3601_v4 = vpop.f32.mrb[162].mxu0 }
 0x715   : > { %v3602_v23 = vadd.f32 %v3601_v4, %v8409_v21  ;;  %v3603_v27 = vpop.f32.mrb[163].mxu0 }
 0x716   : > { %v3604_v62 = vadd.f32 %v3603_v27, %v8413_v37  ;;  %3935 = vmatprep.mubr.f32.mxu1 %v3723_v30 }
 0x717   : > { %3936 = vmatmul.mubr.f32.gmra.mrb[160].mxu1 %v3722_v3  ;;  %v3724_v43 = vmax.f32 %v3602_v23, 0.0 }
 0x718   : > { %v3725_v38 = vmax.f32 %v3604_v62, 0.0  ;;  %v3607_v12 = vpop.f32.mrb[164].mxu0 }
 0x719   : > { %v3608_v39 = vadd.f32 %v3607_v12, %v8409_v21  ;;  %v3609_v22 = vpop.f32.mrb[165].mxu0 }
 0x71a   : > { %v3610_v6 = vadd.f32 %v3609_v22, %v8413_v37  ;;  %3940 = vmatprep.mubr.f32.mxu1 %v3725_v38 }
 0x71b   : > { %3941 = vmatmul.mubr.f32.gmra.mrb[162].mxu1 %v3724_v43  ;;  %v3726_v58 = vmax.f32 %v3608_v39, 0.0 }
 0x71c   : > { %v3727_v59 = vmax.f32 %v3610_v6, 0.0  ;;  %v3613_v47 = vpop.f32.mrb[166].mxu0 }
 0x71d   : > { %v3614_v13 = vadd.f32 %v3613_v47, %v8409_v21  ;;  %v3615_v24 = vpop.f32.mrb[167].mxu0 }
 0x71e   : > { %v3616_v5 = vadd.f32 %v3615_v24, %v8413_v37  ;;  %3945 = vmatprep.mubr.f32.mxu1 %v3727_v59 }
 0x71f   : > { %3946 = vmatmul.mubr.f32.gmra.mrb[164].mxu1 %v3726_v58  ;;  %v3728_v2 = vmax.f32 %v3614_v13, 0.0 }
 0x720   : > { %v3729_v56 = vmax.f32 %v3616_v5, 0.0  ;;  %v3619_v54 = vpop.f32.mrb[168].mxu0 }
 0x721   : > { %v3620_v48 = vadd.f32 %v3619_v54, %v8409_v21  ;;  %v3621_v49 = vpop.f32.mrb[169].mxu0 }
 0x722   : > { %v3622_v41 = vadd.f32 %v3621_v49, %v8413_v37  ;;  %3950 = vmatprep.mubr.f32.mxu1 %v3729_v56 }
 0x723   : > { %3951 = vmatmul.mubr.f32.gmra.mrb[166].mxu1 %v3728_v2  ;;  %v3730_v35 = vmax.f32 %v3620_v48, 0.0 }
 0x724   : > { %v3731_v61 = vmax.f32 %v3622_v41, 0.0  ;;  %v3625_v16 = vpop.f32.mrb[170].mxu0 }
 0x725   : > { %v3626_v9 = vadd.f32 %v3625_v16, %v8409_v21  ;;  %v3627_v17 = vpop.f32.mrb[171].mxu0 }
 0x726   : > { %v3628_v31 = vadd.f32 %v3627_v17, %v8413_v37  ;;  %3955 = vmatprep.mubr.f32.mxu1 %v3731_v61 }
 0x727   : > { %3956 = vmatmul.mubr.f32.gmra.mrb[168].mxu1 %v3730_v35  ;;  %v3732_v3 = vmax.f32 %v3626_v9, 0.0 }
 0x728   : > { %v3733_v30 = vmax.f32 %v3628_v31, 0.0  ;;  %v3631_v4 = vpop.f32.mrb[172].mxu0 }
 0x729   : > { %v3632_v23 = vadd.f32 %v3631_v4, %v8409_v21  ;;  %v3633_v27 = vpop.f32.mrb[173].mxu0 }
 0x72a   : > { %v3634_v62 = vadd.f32 %v3633_v27, %v8413_v37  ;;  %3960 = vmatprep.mubr.f32.mxu1 %v3733_v30 }
 0x72b   : > { %3961 = vmatmul.mubr.f32.gmra.mrb[170].mxu1 %v3732_v3  ;;  %v3734_v43 = vmax.f32 %v3632_v23, 0.0 }
 0x72c   : > { %v3735_v38 = vmax.f32 %v3634_v62, 0.0  ;;  %v3637_v12 = vpop.f32.mrb[174].mxu0 }
 0x72d   : > { %v3638_v39 = vadd.f32 %v3637_v12, %v8409_v21  ;;  %v3639_v22 = vpop.f32.mrb[175].mxu0 }
 0x72e   : > { %v3640_v6 = vadd.f32 %v3639_v22, %v8413_v37  ;;  %3965 = vmatprep.mubr.f32.mxu1 %v3735_v38 }
 0x72f   : > { %3966 = vmatmul.mubr.f32.gmra.mrb[172].mxu1 %v3734_v43  ;;  %v3736_v58 = vmax.f32 %v3638_v39, 0.0 }
 0x730   : > { %v3737_v59 = vmax.f32 %v3640_v6, 0.0  ;;  %v3643_v47 = vpop.f32.mrb[176].mxu0 }
 0x731   : > { %v3644_v13 = vadd.f32 %v3643_v47, %v8409_v21  ;;  %v3645_v24 = vpop.f32.mrb[177].mxu0 }
 0x732   : > { %v3646_v5 = vadd.f32 %v3645_v24, %v8413_v37  ;;  %3970 = vmatprep.mubr.f32.mxu1 %v3737_v59 }
 0x733   : > { %3971 = vmatmul.mubr.f32.gmra.mrb[174].mxu1 %v3736_v58  ;;  %v3738_v2 = vmax.f32 %v3644_v13, 0.0 }
 0x734   : > { %v3739_v56 = vmax.f32 %v3646_v5, 0.0  ;;  %v3649_v54 = vpop.f32.mrb[178].mxu0 }
 0x735   : > { %v3650_v48 = vadd.f32 %v3649_v54, %v8409_v21  ;;  %v3651_v49 = vpop.f32.mrb[179].mxu0 }
 0x736   : > { %v3652_v41 = vadd.f32 %v3651_v49, %v8413_v37  ;;  %3975 = vmatprep.mubr.f32.mxu1 %v3739_v56 }
 0x737   : > { %3976 = vmatmul.mubr.f32.gmra.mrb[176].mxu1 %v3738_v2  ;;  %v3740_v35 = vmax.f32 %v3650_v48, 0.0 }
 0x738   : > { %v3741_v61 = vmax.f32 %v3652_v41, 0.0  ;;  %v3655_v16 = vpop.f32.mrb[180].mxu0 }
 0x739   : > { %v3656_v9 = vadd.f32 %v3655_v16, %v8409_v21  ;;  %v3657_v17 = vpop.f32.mrb[181].mxu0 }
 0x73a   : > { %v3658_v31 = vadd.f32 %v3657_v17, %v8413_v37  ;;  %3980 = vmatprep.mubr.f32.mxu1 %v3741_v61 }
 0x73b   : > { %3981 = vmatmul.mubr.f32.gmra.mrb[178].mxu1 %v3740_v35  ;;  %v3742_v3 = vmax.f32 %v3656_v9, 0.0 }
 0x73c   : > { %v3743_v30 = vmax.f32 %v3658_v31, 0.0  ;;  %v3661_v4 = vpop.f32.mrb[182].mxu0 }
 0x73d   : > { %v3662_v23 = vadd.f32 %v3661_v4, %v8409_v21  ;;  %v3663_v27 = vpop.f32.mrb[183].mxu0 }
 0x73e   : > { %v3664_v62 = vadd.f32 %v3663_v27, %v8413_v37  ;;  %3985 = vmatprep.mubr.f32.mxu1 %v3743_v30 }
 0x73f   : > { %3986 = vmatmul.mubr.f32.gmra.mrb[180].mxu1 %v3742_v3  ;;  %v3744_v43 = vmax.f32 %v3662_v23, 0.0  ;;  %v8482_v3 = vld [vmem:[%s8993_s9 + $0x3] ss:$0 sm:$0xff] }
 0x740   : > { %v3745_v38 = vmax.f32 %v3664_v62, 0.0  ;;  %v3667_v12 = vpop.f32.mrb[184].mxu0 }
 0x741   : > { %v3668_v39 = vadd.f32 %v3667_v12, %v8409_v21  ;;  %v3669_v22 = vpop.f32.mrb[185].mxu0 }
 0x742   : > { %v3670_v6 = vadd.f32 %v3669_v22, %v8413_v37  ;;  %3990 = vmatprep.mubr.f32.mxu1 %v3745_v38 }
 0x743   : > { %3991 = vmatmul.mubr.f32.gmra.mrb[182].mxu1 %v3744_v43  ;;  %v3746_v58 = vmax.f32 %v3668_v39, 0.0 }
 0x744   : > { %v3747_v59 = vmax.f32 %v3670_v6, 0.0  ;;  %v3673_v47 = vpop.f32.mrb[186].mxu0 }
 0x745   : > { %v3674_v13 = vadd.f32 %v3673_v47, %v8409_v21  ;;  %v3675_v24 = vpop.f32.mrb[187].mxu0 }
 0x746   : > { %v3676_v5 = vadd.f32 %v3675_v24, %v8413_v37  ;;  %3995 = vmatprep.mubr.f32.mxu1 %v3747_v59 }
 0x747   : > { %3996 = vmatmul.mubr.f32.gmra.mrb[184].mxu1 %v3746_v58  ;;  %v3748_v2 = vmax.f32 %v3674_v13, 0.0 }
 0x748   : > { %v3749_v56 = vmax.f32 %v3676_v5, 0.0  ;;  %v3679_v54 = vpop.f32.mrb[188].mxu0 }
 0x749   : > { %v3680_v48 = vadd.f32 %v3679_v54, %v8409_v21  ;;  %v3681_v49 = vpop.f32.mrb[189].mxu0 }
 0x74a   : > { %v3682_v41 = vadd.f32 %v3681_v49, %v8413_v37  ;;  %4000 = vmatprep.mubr.f32.mxu1 %v3749_v56 }
 0x74b   : > { %4001 = vmatmul.mubr.f32.gmra.mrb[186].mxu1 %v3748_v2  ;;  %v3750_v35 = vmax.f32 %v3680_v48, 0.0 }
 0x74c   : > { %v3751_v61 = vmax.f32 %v3682_v41, 0.0  ;;  %v3685_v16 = vpop.f32.mrb[190].mxu0 }
 0x74d   : > { %v3686_v9 = vadd.f32 %v3685_v16, %v8409_v21  ;;  %v3687_v17 = vpop.f32.mrb[191].mxu0 }
 0x74e   : > { %v3688_v31 = vadd.f32 %v3687_v17, %v8413_v37  ;;  %4005 = vmatprep.mubr.f32.mxu1 %v3751_v61 }
 0x74f   : > { %4006 = vmatmul.mubr.f32.gmra.mrb[188].mxu1 %v3750_v35  ;;  %v3752_v4 = vmax.f32 %v3686_v9, 0.0 }
 0x750   : > { %v3753_v30 = vmax.f32 %v3688_v31, 0.0 }
 0x752   : > { %4010 = vmatprep.mubr.f32.mxu1 %v3753_v30 }
 0x753   : > { %4011 = vmatmul.mubr.f32.gmra.mrb[190].mxu1 %v3752_v4 }
 0x7a1   : > { %v3857_v23 = vpop.f32.mrb[128].mxu1 }
 0x7a2   : > { %v3858_v27 = vadd.f32 %v8482_v3, %v3857_v23  ;;  %v3859_v62 = vpop.f32.mrb[129].mxu1 }
 0x7a4   : > { %v8486_v21 = vadd.f32 %v3858_v27, %v8168_v25 }
 0x7a5   : > { %v3862_v38 = vpop.f32.mrb[130].mxu1 }
 0x7a6   : > { %v3863_v37 = vadd.f32 %v8482_v3, %v3862_v38  ;;  %v3864_v12 = vpop.f32.mrb[131].mxu1  ;;  %4048 = vadd.xlane.f32.xlu0 %v8486_v21 }
 0x7a8   : > { %v8491_v43 = vadd.f32 %v3863_v37, %v8175_v11 }
 0x7a9   : > { %v3867_v39 = vpop.f32.mrb[132].mxu1 }
 0x7aa   : > { %v3868_v22 = vadd.f32 %v8482_v3, %v3867_v39  ;;  %v3869_v6 = vpop.f32.mrb[133].mxu1  ;;  %4050 = vadd.xlane.f32.xlu1 %v8491_v43 }
 0x7ac   : > { %v8496_v59 = vadd.f32 %v3868_v22, %v8182_v36 }
 0x7ad   : > { %v3872_v25 = vpop.f32.mrb[134].mxu1 }
 0x7ae   : > { %v3873_v47 = vadd.f32 %v8482_v3, %v3872_v25  ;;  %v3874_v58 = vpop.f32.mrb[135].mxu1  ;;  %4052 = vadd.xlane.f32.xlu0 %v8496_v59 }
 0x7b0   : > { %v8501_v13 = vadd.f32 %v3873_v47, %v8191_v45 }
 0x7b1   : > { %v3877_v11 = vpop.f32.mrb[136].mxu1 }
 0x7b2   : > { %v3878_v24 = vadd.f32 %v8482_v3, %v3877_v11  ;;  %v3879_v5 = vpop.f32.mrb[137].mxu1  ;;  %4054 = vadd.xlane.f32.xlu1 %v8501_v13 }
 0x7b4   : > { %v8506_v56 = vadd.f32 %v3878_v24, %v8199_v53 }
 0x7b5   : > { %v3882_v36 = vpop.f32.mrb[138].mxu1 }
 0x7b6   : > { %v3883_v54 = vadd.f32 %v8482_v3, %v3882_v36  ;;  %v3884_v2 = vpop.f32.mrb[139].mxu1  ;;  %4056 = vadd.xlane.f32.xlu0 %v8506_v56 }
 0x7b8   : > { %v8511_v48 = vadd.f32 %v3883_v54, %v8207_v15 }
 0x7b9   : > { %v3887_v45 = vpop.f32.mrb[140].mxu1 }
 0x7ba   : > { %v3888_v49 = vadd.f32 %v8482_v3, %v3887_v45  ;;  %v3889_v41 = vpop.f32.mrb[141].mxu1  ;;  %4058 = vadd.xlane.f32.xlu1 %v8511_v48 }
 0x7bc   : > { %v8516_v61 = vadd.f32 %v3888_v49, %v8215_v33 }
 0x7bd   : > { %v3892_v53 = vpop.f32.mrb[142].mxu1 }
 0x7be   : > { %v3893_v16 = vadd.f32 %v8482_v3, %v3892_v53  ;;  %v3894_v35 = vpop.f32.mrb[143].mxu1  ;;  %4060 = vadd.xlane.f32.xlu0 %v8516_v61 }
 0x7c0   : > { %v8521_v9 = vadd.f32 %v3893_v16, %v8223_v19 }
 0x7c1   : > { %v3897_v15 = vpop.f32.mrb[144].mxu1 }
 0x7c2   : > { %v3898_v17 = vadd.f32 %v8482_v3, %v3897_v15  ;;  %v3899_v31 = vpop.f32.mrb[145].mxu1  ;;  %4062 = vadd.xlane.f32.xlu1 %v8521_v9 }
 0x7c4   : > { %v8526_v30 = vadd.f32 %v3898_v17, %v8231_v46 }
 0x7c5   : > { %v3902_v33 = vpop.f32.mrb[146].mxu1 }
 0x7c6   : > { %v3903_v4 = vadd.f32 %v8482_v3, %v3902_v33  ;;  %v3904_v23 = vpop.f32.mrb[147].mxu1  ;;  %4064 = vadd.xlane.f32.xlu0 %v8526_v30 }
 0x7c8   : > { %v8531_v27 = vadd.f32 %v3903_v4, %v8239_v57 }
 0x7c9   : > { %v3907_v19 = vpop.f32.mrb[148].mxu1 }
 0x7ca   : > { %v3908_v62 = vadd.f32 %v8482_v3, %v3907_v19  ;;  %v3909_v38 = vpop.f32.mrb[149].mxu1  ;;  %4066 = vadd.xlane.f32.xlu1 %v8531_v27 }
 0x7cc   : > { %v8536_v37 = vadd.f32 %v3908_v62, %v8247_v14 }
 0x7cd   : > { %v3912_v46 = vpop.f32.mrb[150].mxu1 }
 0x7ce   : > { %v3913_v12 = vadd.f32 %v8482_v3, %v3912_v46  ;;  %v3914_v39 = vpop.f32.mrb[151].mxu1  ;;  %4068 = vadd.xlane.f32.xlu0 %v8536_v37 }
 0x7d0   : > { %v8541_v22 = vadd.f32 %v3913_v12, %v8255_v8 }
 0x7d1   : > { %v3917_v57 = vpop.f32.mrb[152].mxu1 }
 0x7d2   : > { %v3918_v6 = vadd.f32 %v8482_v3, %v3917_v57  ;;  %v3919_v25 = vpop.f32.mrb[153].mxu1  ;;  %4070 = vadd.xlane.f32.xlu1 %v8541_v22 }
 0x7d4   : > { %v8546_v47 = vadd.f32 %v3918_v6, %v8264_v10 }
 0x7d5   : > { %v3922_v14 = vpop.f32.mrb[154].mxu1 }
 0x7d6   : > { %v3923_v58 = vadd.f32 %v8482_v3, %v3922_v14  ;;  %4072 = vadd.xlane.f32.xlu0 %v8546_v47  ;;  %v3924_v11 = vpop.f32.mrb[155].mxu1 }
 0x7d8   : > { %v8551_v24 = vadd.f32 %v3923_v58, %v8272_v42 }
 0x7d9   : > { %v3927_v8 = vpop.f32.mrb[156].mxu1 }
 0x7da   : > { %v3928_v5 = vadd.f32 %v8482_v3, %v3927_v8  ;;  %v3929_v36 = vpop.f32.mrb[157].mxu1  ;;  %4074 = vadd.xlane.f32.xlu1 %v8551_v24 }
 0x7dc   : > { %v8556_v54 = vadd.f32 %v3928_v5, %v8280_v34 }
 0x7dd   : > { %v3932_v10 = vpop.f32.mrb[158].mxu1 }
 0x7de   : > { %v3933_v2 = vadd.f32 %v8482_v3, %v3932_v10  ;;  %4076 = vadd.xlane.f32.xlu0 %v8556_v54  ;;  %v3934_v45 = vpop.f32.mrb[159].mxu1 }
 0x7e0   : > { %v8561_v49 = vadd.f32 %v3933_v2, %v8287_v32 }
 0x7e2   : > { %4078 = vadd.xlane.f32.xlu1 %v8561_v49 }
 0x7ea   : > { %v3937_v42 = vpop.f32.mrb[160].mxu1 }
 0x7eb   : > { %v3938_v41 = vadd.f32 %v8482_v3, %v3937_v42  ;;  %v3939_v53 = vpop.f32.mrb[161].mxu1 }
 0x7ed   : > { %v8566_v16 = vadd.f32 %v3938_v41, %v8297_v63 }
 0x7ee   : > { %v3942_v34 = vpop.f32.mrb[162].mxu1 }
 0x7ef   : > { %v3943_v35 = vadd.f32 %v8482_v3, %v3942_v34  ;;  %4080 = vadd.xlane.f32.xlu0 %v8566_v16  ;;  %v3944_v15 = vpop.f32.mrb[163].mxu1 }
 0x7f1   : > { %v8571_v17 = vadd.f32 %v3943_v35, %v8304_v50 }
 0x7f2   : > { %v3947_v32 = vpop.f32.mrb[164].mxu1 }
 0x7f3   : > { %v3948_v31 = vadd.f32 %v8482_v3, %v3947_v32  ;;  %v3949_v33 = vpop.f32.mrb[165].mxu1  ;;  %4082 = vadd.xlane.f32.xlu1 %v8571_v17 }
 0x7f5   : > { %v8576_v4 = vadd.f32 %v3948_v31, %v8311_v52 }
 0x7f6   : > { %v3952_v63 = vpop.f32.mrb[166].mxu1 }
 0x7f7   : > { %v3953_v23 = vadd.f32 %v8482_v3, %v3952_v63  ;;  %4084 = vadd.xlane.f32.xlu0 %v8576_v4  ;;  %v3954_v19 = vpop.f32.mrb[167].mxu1 }
 0x7f9   : > { %v8581_v62 = vadd.f32 %v3953_v23, %v8318_v0 }
 0x7fa   : > { %v3957_v50 = vpop.f32.mrb[168].mxu1 }
 0x7fb   : > { %v3958_v38 = vadd.f32 %v8482_v3, %v3957_v50  ;;  %v3959_v46 = vpop.f32.mrb[169].mxu1  ;;  %4086 = vadd.xlane.f32.xlu1 %v8581_v62 }
 0x7fd   : > { %v8586_v12 = vadd.f32 %v3958_v38, %v8325_v26 }
 0x7fe   : > { %v3962_v52 = vpop.f32.mrb[170].mxu1 }
 0x7ff   : > { %v3963_v39 = vadd.f32 %v8482_v3, %v3962_v52  ;;  %4088 = vadd.xlane.f32.xlu0 %v8586_v12  ;;  %v3964_v57 = vpop.f32.mrb[171].mxu1 }
 0x801   : > { %v8591_v6 = vadd.f32 %v3963_v39, %v8332_v18 }
 0x802   : > { %v3967_v0 = vpop.f32.mrb[172].mxu1 }
 0x803   : > { %v3968_v25 = vadd.f32 %v8482_v3, %v3967_v0  ;;  %v3969_v14 = vpop.f32.mrb[173].mxu1  ;;  %4090 = vadd.xlane.f32.xlu1 %v8591_v6 }
 0x805   : > { %v8596_v58 = vadd.f32 %v3968_v25, %v8339_v29 }
 0x806   : > { %v3972_v26 = vpop.f32.mrb[174].mxu1 }
 0x807   : > { %v3973_v11 = vadd.f32 %v8482_v3, %v3972_v26  ;;  %4092 = vadd.xlane.f32.xlu0 %v8596_v58  ;;  %v3974_v8 = vpop.f32.mrb[175].mxu1 }
 0x809   : > { %v8601_v5 = vadd.f32 %v3973_v11, %v8346_v28 }
 0x80a   : > { %v3977_v18 = vpop.f32.mrb[176].mxu1 }
 0x80b   : > { %v3978_v36 = vadd.f32 %v8482_v3, %v3977_v18  ;;  %v3979_v10 = vpop.f32.mrb[177].mxu1  ;;  %4094 = vadd.xlane.f32.xlu1 %v8601_v5 }
 0x80d   : > { %v8606_v2 = vadd.f32 %v3978_v36, %v8353_v44 }
 0x80e   : > { %v3982_v29 = vpop.f32.mrb[178].mxu1 }
 0x80f   : > { %v3983_v45 = vadd.f32 %v8482_v3, %v3982_v29  ;;  %4096 = vadd.xlane.f32.xlu0 %v8606_v2  ;;  %v3984_v42 = vpop.f32.mrb[179].mxu1 }
 0x811   : > { %v8611_v41 = vadd.f32 %v3983_v45, %v8360_v55 }
 0x812   : > { %v3987_v28 = vpop.f32.mrb[180].mxu1 }
 0x813   : > { %v3988_v53 = vadd.f32 %v8482_v3, %v3987_v28  ;;  %v3989_v34 = vpop.f32.mrb[181].mxu1  ;;  %4098 = vadd.xlane.f32.xlu1 %v8611_v41 }
 0x815   : > { %v8616_v35 = vadd.f32 %v3988_v53, %v8367_v60 }
 0x816   : > { %v3992_v44 = vpop.f32.mrb[182].mxu1 }
 0x817   : > { %v3993_v15 = vadd.f32 %v8482_v3, %v3992_v44  ;;  %4100 = vadd.xlane.f32.xlu0 %v8616_v35  ;;  %v3994_v32 = vpop.f32.mrb[183].mxu1 }
 0x819   : > { %v8621_v31 = vadd.f32 %v3993_v15, %v8374_v40 }
 0x81a   : > { %v3997_v55 = vpop.f32.mrb[184].mxu1 }
 0x81b   : > { %v3998_v33 = vadd.f32 %v8482_v3, %v3997_v55  ;;  %v3999_v63 = vpop.f32.mrb[185].mxu1  ;;  %4102 = vadd.xlane.f32.xlu1 %v8621_v31 }
 0x81d   : > { %v8626_v23 = vadd.f32 %v3998_v33, %v8381_v7 }
 0x81e   : > { %v4002_v60 = vpop.f32.mrb[186].mxu1 }
 0x81f   : > { %v4003_v19 = vadd.f32 %v8482_v3, %v4002_v60  ;;  %4104 = vadd.xlane.f32.xlu0 %v8626_v23  ;;  %v4004_v50 = vpop.f32.mrb[187].mxu1 }
 0x821   : > { %v8631_v38 = vadd.f32 %v4003_v19, %v8388_v20 }
 0x822   : > { %v4007_v40 = vpop.f32.mrb[188].mxu1 }
 0x823   : > { %v4008_v46 = vadd.f32 %v8482_v3, %v4007_v40  ;;  %v4009_v52 = vpop.f32.mrb[189].mxu1  ;;  %4106 = vadd.xlane.f32.xlu1 %v8631_v38 }
 0x825   : > { %v8636_v39 = vadd.f32 %v4008_v46, %v8395_v1 }
 0x826   : > { %v4012_v7 = vpop.f32.mrb[190].mxu1 }
 0x827   : > { %v4013_v57 = vadd.f32 %v8482_v3, %v4012_v7  ;;  %4108 = vadd.xlane.f32.xlu0 %v8636_v39  ;;  %v4014_v0 = vpop.f32.mrb[191].mxu1 }
 0x829   : > { %v8641_v25 = vadd.f32 %v4013_v57, %v8401_v51 }
 0x82b   : > { %4110 = vadd.xlane.f32.xlu1 %v8641_v25 }
 0x833   : > { %v4049_v20 = vpop.xlane.xlu0 %4048 }
 0x834   : > { %v4112_v14 = vmul.f32 0.0078125, %v4049_v20 }
 0x836   : > { %v8645_v26 = vsub.f32 %v8486_v21, %v4112_v14 }
 0x837   : > { %v4051_v11 = vpop.xlane.xlu1 %4050 }
 0x838   : > { %v4113_v8 = vmul.f32 0.0078125, %v4051_v11  ;;  %v4176_v1 = vmul.f32 %v8645_v26, %v8645_v26 }
 0x83a   : > { %v8650_v3 = vsub.f32 %v8491_v43, %v4113_v8  ;;  %4208 = vadd.xlane.f32.xlu0 %v4176_v1 }
 0x83b   : > { %v4053_v18 = vpop.xlane.xlu0 %4052 }
 0x83c   : > { %v4114_v36 = vmul.f32 0.0078125, %v4053_v18  ;;  %v4177_v51 = vmul.f32 %v8650_v3, %v8650_v3 }
 0x83e   : > { %v8655_v10 = vsub.f32 %v8496_v59, %v4114_v36  ;;  %4210 = vadd.xlane.f32.xlu1 %v4177_v51 }
 0x83f   : > { %v4055_v21 = vpop.xlane.xlu1 %4054 }
 0x840   : > { %v4115_v29 = vmul.f32 0.0078125, %v4055_v21  ;;  %v4178_v45 = vmul.f32 %v8655_v10, %v8655_v10 }
 0x842   : > { %v8660_v42 = vsub.f32 %v8501_v13, %v4115_v29  ;;  %4212 = vadd.xlane.f32.xlu0 %v4178_v45 }
 0x843   : > { %v4057_v43 = vpop.xlane.xlu0 %4056 }
 0x844   : > { %v4116_v28 = vmul.f32 0.0078125, %v4057_v43  ;;  %v4179_v53 = vmul.f32 %v8660_v42, %v8660_v42 }
 0x846   : > { %v8665_v34 = vsub.f32 %v8506_v56, %v4116_v28  ;;  %4214 = vadd.xlane.f32.xlu1 %v4179_v53 }
 0x847   : > { %v4059_v59 = vpop.xlane.xlu1 %4058 }
 0x848   : > { %v4117_v44 = vmul.f32 0.0078125, %v4059_v59  ;;  %v4180_v15 = vmul.f32 %v8665_v34, %v8665_v34 }
 0x84a   : > { %v8670_v32 = vsub.f32 %v8511_v48, %v4117_v44  ;;  %4216 = vadd.xlane.f32.xlu0 %v4180_v15 }
 0x84b   : > { %v4061_v13 = vpop.xlane.xlu0 %4060 }
 0x84c   : > { %v4118_v55 = vmul.f32 0.0078125, %v4061_v13  ;;  %v4181_v33 = vmul.f32 %v8670_v32, %v8670_v32 }
 0x84e   : > { %v8675_v63 = vsub.f32 %v8516_v61, %v4118_v55  ;;  %4218 = vadd.xlane.f32.xlu1 %v4181_v33 }
 0x84f   : > { %v4063_v56 = vpop.xlane.xlu1 %4062 }
 0x850   : > { %v4119_v60 = vmul.f32 0.0078125, %v4063_v56  ;;  %v4182_v19 = vmul.f32 %v8675_v63, %v8675_v63 }
 0x852   : > { %v8680_v50 = vsub.f32 %v8521_v9, %v4119_v60  ;;  %4220 = vadd.xlane.f32.xlu0 %v4182_v19 }
 0x853   : > { %v4065_v48 = vpop.xlane.xlu0 %4064 }
 0x854   : > { %v4120_v40 = vmul.f32 0.0078125, %v4065_v48  ;;  %v4183_v46 = vmul.f32 %v8680_v50, %v8680_v50 }
 0x856   : > { %v8685_v52 = vsub.f32 %v8526_v30, %v4120_v40  ;;  %4222 = vadd.xlane.f32.xlu1 %v4183_v46 }
 0x857   : > { %v4067_v61 = vpop.xlane.xlu1 %4066 }
 0x858   : > { %v4121_v7 = vmul.f32 0.0078125, %v4067_v61  ;;  %v4184_v57 = vmul.f32 %v8685_v52, %v8685_v52 }
 0x85a   : > { %v8690_v0 = vsub.f32 %v8531_v27, %v4121_v7  ;;  %4224 = vadd.xlane.f32.xlu0 %v4184_v57 }
 0x85b   : > { %v4069_v9 = vpop.xlane.xlu0 %4068 }
 0x85c   : > { %v4122_v20 = vmul.f32 0.0078125, %v4069_v9  ;;  %v4185_v14 = vmul.f32 %v8690_v0, %v8690_v0 }
 0x85e   : > { %v8695_v11 = vsub.f32 %v8536_v37, %v4122_v20  ;;  %4226 = vadd.xlane.f32.xlu1 %v4185_v14 }
 0x85f   : > { %v4071_v30 = vpop.xlane.xlu1 %4070 }
 0x860   : > { %v4123_v8 = vmul.f32 0.0078125, %v4071_v30  ;;  %v4186_v1 = vmul.f32 %v8695_v11, %v8695_v11 }
 0x862   : > { %v8700_v18 = vsub.f32 %v8541_v22, %v4123_v8  ;;  %4228 = vadd.xlane.f32.xlu0 %v4186_v1 }
 0x863   : > { %v4073_v27 = vpop.xlane.xlu0 %4072 }
 0x864   : > { %v4124_v36 = vmul.f32 0.0078125, %v4073_v27  ;;  %v4187_v51 = vmul.f32 %v8700_v18, %v8700_v18 }
 0x866   : > { %v8705_v21 = vsub.f32 %v8546_v47, %v4124_v36  ;;  %4230 = vadd.xlane.f32.xlu1 %v4187_v51 }
 0x867   : > { %v4075_v37 = vpop.xlane.xlu1 %4074 }
 0x868   : > { %v4125_v29 = vmul.f32 0.0078125, %v4075_v37  ;;  %v4188_v45 = vmul.f32 %v8705_v21, %v8705_v21 }
 0x86a   : > { %v8710_v43 = vsub.f32 %v8551_v24, %v4125_v29  ;;  %4232 = vadd.xlane.f32.xlu0 %v4188_v45 }
 0x86b   : > { %v4077_v22 = vpop.xlane.xlu0 %4076 }
 0x86c   : > { %v4126_v28 = vmul.f32 0.0078125, %v4077_v22  ;;  %v4189_v53 = vmul.f32 %v8710_v43, %v8710_v43 }
 0x86e   : > { %v8715_v59 = vsub.f32 %v8556_v54, %v4126_v28  ;;  %4234 = vadd.xlane.f32.xlu1 %v4189_v53 }
 0x86f   : > { %v4079_v47 = vpop.xlane.xlu1 %4078 }
 0x870   : > { %v4127_v44 = vmul.f32 0.0078125, %v4079_v47  ;;  %v4190_v15 = vmul.f32 %v8715_v59, %v8715_v59 }
 0x872   : > { %v8720_v13 = vsub.f32 %v8561_v49, %v4127_v44  ;;  %4236 = vadd.xlane.f32.xlu0 %v4190_v15 }
 0x874   : > { %v4191_v24 = vmul.f32 %v8720_v13, %v8720_v13 }
 0x876   : > { %4238 = vadd.xlane.f32.xlu1 %v4191_v24 }
 0x87c   : > { %v4081_v55 = vpop.xlane.xlu0 %4080 }
 0x87d   : > { %v4128_v33 = vmul.f32 0.0078125, %v4081_v55 }
 0x87f   : > { %v8725_v56 = vsub.f32 %v8566_v16, %v4128_v33 }
 0x880   : > { %v4083_v54 = vpop.xlane.xlu1 %4082 }
 0x881   : > { %v4129_v60 = vmul.f32 0.0078125, %v4083_v54  ;;  %v4192_v19 = vmul.f32 %v8725_v56, %v8725_v56 }
 0x883   : > { %v8730_v48 = vsub.f32 %v8571_v17, %v4129_v60  ;;  %4240 = vadd.xlane.f32.xlu0 %v4192_v19 }
 0x884   : > { %v4085_v49 = vpop.xlane.xlu0 %4084 }
 0x885   : > { %v4130_v40 = vmul.f32 0.0078125, %v4085_v49  ;;  %v4193_v46 = vmul.f32 %v8730_v48, %v8730_v48 }
 0x887   : > { %v8735_v61 = vsub.f32 %v8576_v4, %v4130_v40  ;;  %4242 = vadd.xlane.f32.xlu1 %v4193_v46 }
 0x888   : > { %v4087_v16 = vpop.xlane.xlu1 %4086 }
 0x889   : > { %v4131_v7 = vmul.f32 0.0078125, %v4087_v16  ;;  %v4194_v57 = vmul.f32 %v8735_v61, %v8735_v61 }
 0x88b   : > { %v8740_v9 = vsub.f32 %v8581_v62, %v4131_v7  ;;  %4244 = vadd.xlane.f32.xlu0 %v4194_v57 }
 0x88c   : > { %v4089_v17 = vpop.xlane.xlu0 %4088 }
 0x88d   : > { %v4132_v20 = vmul.f32 0.0078125, %v4089_v17  ;;  %v4195_v14 = vmul.f32 %v8740_v9, %v8740_v9 }
 0x88f   : > { %v8745_v30 = vsub.f32 %v8586_v12, %v4132_v20  ;;  %4246 = vadd.xlane.f32.xlu1 %v4195_v14 }
 0x890   : > { %v4091_v4 = vpop.xlane.xlu1 %4090 }
 0x891   : > { %v4133_v8 = vmul.f32 0.0078125, %v4091_v4  ;;  %v4196_v1 = vmul.f32 %v8745_v30, %v8745_v30 }
 0x893   : > { %v8750_v27 = vsub.f32 %v8591_v6, %v4133_v8  ;;  %4248 = vadd.xlane.f32.xlu0 %v4196_v1 }
 0x894   : > { %v4093_v62 = vpop.xlane.xlu0 %4092 }
 0x895   : > { %v4134_v36 = vmul.f32 0.0078125, %v4093_v62  ;;  %v4197_v51 = vmul.f32 %v8750_v27, %v8750_v27 }
 0x897   : > { %v8755_v37 = vsub.f32 %v8596_v58, %v4134_v36  ;;  %4250 = vadd.xlane.f32.xlu1 %v4197_v51 }
 0x898   : > { %v4095_v12 = vpop.xlane.xlu1 %4094 }
 0x899   : > { %v4135_v29 = vmul.f32 0.0078125, %v4095_v12  ;;  %v4198_v45 = vmul.f32 %v8755_v37, %v8755_v37 }
 0x89b   : > { %v8760_v22 = vsub.f32 %v8601_v5, %v4135_v29  ;;  %4252 = vadd.xlane.f32.xlu0 %v4198_v45 }
 0x89c   : > { %v4097_v6 = vpop.xlane.xlu0 %4096 }
 0x89d   : > { %v4136_v28 = vmul.f32 0.0078125, %v4097_v6  ;;  %v4199_v53 = vmul.f32 %v8760_v22, %v8760_v22 }
 0x89f   : > { %v8765_v47 = vsub.f32 %v8606_v2, %v4136_v28  ;;  %4254 = vadd.xlane.f32.xlu1 %v4199_v53 }
 0x8a0   : > { %v4099_v58 = vpop.xlane.xlu1 %4098 }
 0x8a1   : > { %v4137_v44 = vmul.f32 0.0078125, %v4099_v58  ;;  %v4200_v15 = vmul.f32 %v8765_v47, %v8765_v47 }
 0x8a3   : > { %v8770_v24 = vsub.f32 %v8611_v41, %v4137_v44  ;;  %4256 = vadd.xlane.f32.xlu0 %v4200_v15  ;;  %v8807_v15 = vld [vmem:[%s8993_s9 + $0x4] ss:$0 sm:$0xff] }
 0x8a4   : > { %v4101_v5 = vpop.xlane.xlu0 %4100 }
 0x8a5   : > { %v4138_v55 = vmul.f32 0.0078125, %v4101_v5  ;;  %v4201_v33 = vmul.f32 %v8770_v24, %v8770_v24 }
 0x8a7   : > { %v8775_v54 = vsub.f32 %v8616_v35, %v4138_v55  ;;  %4258 = vadd.xlane.f32.xlu1 %v4201_v33 }
 0x8a8   : > { %v4103_v2 = vpop.xlane.xlu1 %4102 }
 0x8a9   : > { %v4139_v60 = vmul.f32 0.0078125, %v4103_v2  ;;  %v4202_v19 = vmul.f32 %v8775_v54, %v8775_v54  ;;  %v8813_v2 = vld [vmem:[%s8993_s9 + $0x5] ss:$0 sm:$0xff] }
 0x8ab   : > { %v8780_v49 = vsub.f32 %v8621_v31, %v4139_v60  ;;  %4260 = vadd.xlane.f32.xlu0 %v4202_v19 }
 0x8ac   : > { %v4105_v41 = vpop.xlane.xlu0 %4104 }
 0x8ad   : > { %v4140_v40 = vmul.f32 0.0078125, %v4105_v41  ;;  %v4203_v46 = vmul.f32 %v8780_v49, %v8780_v49 }
 0x8af   : > { %v8785_v16 = vsub.f32 %v8626_v23, %v4140_v40  ;;  %4262 = vadd.xlane.f32.xlu1 %v4203_v46 }
 0x8b0   : > { %v4107_v35 = vpop.xlane.xlu1 %4106 }
 0x8b1   : > { %v4141_v7 = vmul.f32 0.0078125, %v4107_v35  ;;  %v4204_v57 = vmul.f32 %v8785_v16, %v8785_v16 }
 0x8b3   : > { %v8790_v17 = vsub.f32 %v8631_v38, %v4141_v7  ;;  %4264 = vadd.xlane.f32.xlu0 %v4204_v57 }
 0x8b4   : > { %v4109_v31 = vpop.xlane.xlu0 %4108 }
 0x8b5   : > { %v4142_v20 = vmul.f32 0.0078125, %v4109_v31  ;;  %v4205_v14 = vmul.f32 %v8790_v17, %v8790_v17 }
 0x8b7   : > { %v8795_v4 = vsub.f32 %v8636_v39, %v4142_v20  ;;  %4266 = vadd.xlane.f32.xlu1 %v4205_v14 }
 0x8b8   : > { %v4111_v23 = vpop.xlane.xlu1 %4110 }
 0x8b9   : > { %v4143_v8 = vmul.f32 0.0078125, %v4111_v23  ;;  %v4206_v1 = vmul.f32 %v8795_v4, %v8795_v4 }
 0x8bb   : > { %v8800_v62 = vsub.f32 %v8641_v25, %v4143_v8  ;;  %4268 = vadd.xlane.f32.xlu0 %v4206_v1 }
 0x8bd   : > { %v4207_v38 = vmul.f32 %v8800_v62, %v8800_v62 }
 0x8bf   : > { %4270 = vadd.xlane.f32.xlu1 %v4207_v38 }
 0x8c7   : > { %v4209_v36 = vpop.xlane.xlu0 %4208 }
 0x8c8   : > { %v4272_v51 = vmul.f32 0.0078125, %v4209_v36 }
 0x8ca   : > { %v4304_v12 = vadd.f32 1e-05, %v4272_v51 }
 0x8cb   : > { %v4211_v29 = vpop.xlane.xlu1 %4210 }
 0x8cc   : > { %5943 = vrsqrt.f32 %v4304_v12  ;;  %v4273_v39 = vmul.f32 0.0078125, %v4211_v29 }
 0x8ce   : > { %v4305_v45 = vadd.f32 1e-05, %v4273_v39 }
 0x8cf   : > { %v4213_v6 = vpop.xlane.xlu0 %4212 }
 0x8d0   : > { %5945 = vrsqrt.f32 %v4305_v45  ;;  %v4274_v28 = vmul.f32 0.0078125, %v4213_v6 }
 0x8d2   : > { %v4306_v53 = vadd.f32 1e-05, %v4274_v28 }
 0x8d3   : > { %v4215_v58 = vpop.xlane.xlu1 %4214 }
 0x8d4   : > { %5947 = vrsqrt.f32 %v4306_v53  ;;  %v4275_v25 = vmul.f32 0.0078125, %v4215_v58 }
 0x8d6   : > { %v5944_v44 = vpop.eup %5943  ;;  %v4307_v5 = vadd.f32 1e-05, %v4275_v25 }
 0x8d7   : > { %v4368_v55 = vmul.f32 %v5944_v44, %v8645_v26  ;;  %v4217_v33 = vpop.xlane.xlu0 %4216 }
 0x8d8   : > { %5949 = vrsqrt.f32 %v4307_v5  ;;  %v4276_v60 = vmul.f32 0.0078125, %v4217_v33 }
 0x8d9   : > { %v4405_v19 = vmul.f32 %v8807_v15, %v4368_v55 }
 0x8da   : > { %v5946_v41 = vpop.eup %5945  ;;  %v4308_v40 = vadd.f32 1e-05, %v4276_v60 }
 0x8db   : > { %v4442_v46 = vadd.f32 %v8813_v2, %v4405_v19  ;;  %v4369_v35 = vmul.f32 %v5946_v41, %v8650_v3  ;;  %v4219_v7 = vpop.xlane.xlu1 %4218 }
 0x8dc   : > { %5951 = vrsqrt.f32 %v4308_v40  ;;  %v4277_v57 = vmul.f32 0.0078125, %v4219_v7 }
 0x8dd   : > { %4474 = vst [vmem:[%s8820_s22] sm:$0xff] %v4442_v46  ;;  %v4406_v26 = vmul.f32 %v8807_v15, %v4369_v35 }
 0x8de   : > { %v5948_v31 = vpop.eup %5947  ;;  %v4309_v20 = vadd.f32 1e-05, %v4277_v57 }
 0x8df   : > { %v4443_v14 = vadd.f32 %v8813_v2, %v4406_v26  ;;  %v4370_v23 = vmul.f32 %v5948_v31, %v8655_v10  ;;  %v4221_v8 = vpop.xlane.xlu0 %4220 }
 0x8e0   : > { %5953 = vrsqrt.f32 %v4309_v20  ;;  %v4278_v3 = vmul.f32 0.0078125, %v4221_v8 }
 0x8e1   : > { %4475 = vst [vmem:[%s8820_s22 + $0x8] sm:$0xff] %v4443_v14  ;;  %v4407_v1 = vmul.f32 %v8807_v15, %v4370_v23 }
 0x8e2   : > { %v5950_v38 = vpop.eup %5949  ;;  %v4310_v36 = vadd.f32 1e-05, %v4278_v3 }
 0x8e3   : > { %v4444_v51 = vadd.f32 %v8813_v2, %v4407_v1  ;;  %v4371_v12 = vmul.f32 %v5950_v38, %v8660_v42  ;;  %v4223_v29 = vpop.xlane.xlu1 %4222 }
 0x8e4   : > { %5955 = vrsqrt.f32 %v4310_v36  ;;  %v4279_v39 = vmul.f32 0.0078125, %v4223_v29 }
 0x8e5   : > { %4476 = vst [vmem:[%s8820_s22 + $0x10] sm:$0xff] %v4444_v51  ;;  %v4408_v45 = vmul.f32 %v8807_v15, %v4371_v12 }
 0x8e6   : > { %v5952_v10 = vpop.eup %5951  ;;  %v4311_v6 = vadd.f32 1e-05, %v4279_v39 }
 0x8e7   : > { %v4445_v28 = vadd.f32 %v8813_v2, %v4408_v45  ;;  %v4372_v53 = vmul.f32 %v5952_v10, %v8665_v34  ;;  %v4225_v58 = vpop.xlane.xlu0 %4224 }
 0x8e8   : > { %5957 = vrsqrt.f32 %v4311_v6  ;;  %v4280_v25 = vmul.f32 0.0078125, %v4225_v58 }
 0x8e9   : > { %4477 = vst [vmem:[%s8820_s22 + $0x18] sm:$0xff] %v4445_v28  ;;  %v4409_v44 = vmul.f32 %v8807_v15, %v4372_v53 }
 0x8ea   : > { %v5954_v42 = vpop.eup %5953  ;;  %v4312_v5 = vadd.f32 1e-05, %v4280_v25 }
 0x8eb   : > { %v4446_v55 = vadd.f32 %v8813_v2, %v4409_v44  ;;  %v4373_v33 = vmul.f32 %v5954_v42, %v8670_v32  ;;  %v4227_v60 = vpop.xlane.xlu1 %4226 }
 0x8ec   : > { %5959 = vrsqrt.f32 %v4312_v5  ;;  %v4281_v19 = vmul.f32 0.0078125, %v4227_v60 }
 0x8ed   : > { %4478 = vst [vmem:[%s8820_s22 + $0x20] sm:$0xff] %v4446_v55  ;;  %v4410_v41 = vmul.f32 %v8807_v15, %v4373_v33 }
 0x8ee   : > { %v5956_v34 = vpop.eup %5955  ;;  %v4313_v40 = vadd.f32 1e-05, %v4281_v19 }
 0x8ef   : > { %v4447_v46 = vadd.f32 %v8813_v2, %v4410_v41  ;;  %v4374_v35 = vmul.f32 %v5956_v34, %v8675_v63  ;;  %v4229_v7 = vpop.xlane.xlu0 %4228 }
 0x8f0   : > { %5961 = vrsqrt.f32 %v4313_v40  ;;  %v4282_v57 = vmul.f32 0.0078125, %v4229_v7 }
 0x8f1   : > { %4479 = vst [vmem:[%s8820_s22 + $0x28] sm:$0xff] %v4447_v46  ;;  %v4411_v26 = vmul.f32 %v8807_v15, %v4374_v35 }
 0x8f2   : > { %v5958_v32 = vpop.eup %5957  ;;  %v4314_v31 = vadd.f32 1e-05, %v4282_v57 }
 0x8f3   : > { %v4448_v20 = vadd.f32 %v8813_v2, %v4411_v26  ;;  %v4375_v14 = vmul.f32 %v5958_v32, %v8680_v50  ;;  %v4231_v23 = vpop.xlane.xlu1 %4230 }
 0x8f4   : > { %5963 = vrsqrt.f32 %v4314_v31  ;;  %v4283_v8 = vmul.f32 0.0078125, %v4231_v23 }
 0x8f5   : > { %4480 = vst [vmem:[%s8820_s22 + $0x30] sm:$0xff] %v4448_v20  ;;  %v4412_v3 = vmul.f32 %v8807_v15, %v4375_v14 }
 0x8f6   : > { %v5960_v63 = vpop.eup %5959  ;;  %v4315_v1 = vadd.f32 1e-05, %v4283_v8 }
 0x8f7   : > { %v4449_v38 = vadd.f32 %v8813_v2, %v4412_v3  ;;  %v4376_v36 = vmul.f32 %v5960_v63, %v8685_v52  ;;  %v4233_v51 = vpop.xlane.xlu0 %4232 }
 0x8f8   : > { %5965 = vrsqrt.f32 %v4315_v1  ;;  %v4284_v12 = vmul.f32 0.0078125, %v4233_v51 }
 0x8f9   : > { %4481 = vst [vmem:[%s8820_s22 + $0x38] sm:$0xff] %v4449_v38  ;;  %v4413_v29 = vmul.f32 %v8807_v15, %v4376_v36 }
 0x8fa   : > { %v5962_v50 = vpop.eup %5961  ;;  %v4316_v39 = vadd.f32 1e-05, %v4284_v12 }
 0x8fb   : > { %v4450_v45 = vadd.f32 %v8813_v2, %v4413_v29  ;;  %v4377_v10 = vmul.f32 %v5962_v50, %v8690_v0  ;;  %v4235_v6 = vpop.xlane.xlu1 %4234 }
 0x8fc   : > { %5967 = vrsqrt.f32 %v4316_v39  ;;  %v4285_v28 = vmul.f32 0.0078125, %v4235_v6 }
 0x8fd   : > { %4482 = vst [vmem:[%s8820_s22 + $0x40] sm:$0xff] %v4450_v45  ;;  %v4414_v53 = vmul.f32 %v8807_v15, %v4377_v10 }
 0x8fe   : > { %v5964_v52 = vpop.eup %5963  ;;  %v4317_v58 = vadd.f32 1e-05, %v4285_v28 }
 0x8ff   : > { %v4451_v25 = vadd.f32 %v8813_v2, %v4414_v53  ;;  %v4378_v44 = vmul.f32 %v5964_v52, %v8695_v11  ;;  %v4237_v42 = vpop.xlane.xlu0 %4236 }
 0x900   : > { %5969 = vrsqrt.f32 %v4317_v58  ;;  %v4286_v5 = vmul.f32 0.0078125, %v4237_v42 }
 0x901   : > { %4483 = vst [vmem:[%s8820_s22 + $0x48] sm:$0xff] %v4451_v25  ;;  %v4415_v0 = vmul.f32 %v8807_v15, %v4378_v44 }
 0x902   : > { %v5966_v55 = vpop.eup %5965  ;;  %v4318_v33 = vadd.f32 1e-05, %v4286_v5 }
 0x903   : > { %v4452_v60 = vadd.f32 %v8813_v2, %v4415_v0  ;;  %v4379_v19 = vmul.f32 %v5966_v55, %v8700_v18  ;;  %v4239_v41 = vpop.xlane.xlu1 %4238 }
 0x904   : > { %5971 = vrsqrt.f32 %v4318_v33  ;;  %v4287_v34 = vmul.f32 0.0078125, %v4239_v41 }
 0x905   : > { %4484 = vst [vmem:[%s8820_s22 + $0x50] sm:$0xff] %v4452_v60  ;;  %v4416_v11 = vmul.f32 %v8807_v15, %v4379_v19 }
 0x906   : > { %v5968_v40 = vpop.eup %5967  ;;  %v4319_v46 = vadd.f32 1e-05, %v4287_v34 }
 0x907   : > { %v4453_v35 = vadd.f32 %v8813_v2, %v4416_v11  ;;  %v4380_v7 = vmul.f32 %v5968_v40, %v8705_v21 }
 0x908   : > { %5973 = vrsqrt.f32 %v4319_v46 }
 0x909   : > { %4485 = vst [vmem:[%s8820_s22 + $0x58] sm:$0xff] %v4453_v35  ;;  %v4417_v57 = vmul.f32 %v8807_v15, %v4380_v7 }
 0x90a   : > { %v5970_v26 = vpop.eup %5969 }
 0x90b   : > { %v4454_v18 = vadd.f32 %v8813_v2, %v4417_v57  ;;  %v4381_v32 = vmul.f32 %v5970_v26, %v8710_v43 }
 0x90d   : > { %4486 = vst [vmem:[%s8820_s22 + $0x60] sm:$0xff] %v4454_v18  ;;  %v4418_v31 = vmul.f32 %v8807_v15, %v4381_v32 }
 0x90e   : > { %v5972_v20 = vpop.eup %5971 }
 0x90f   : > { %v4455_v14 = vadd.f32 %v8813_v2, %v4418_v31  ;;  %v4382_v23 = vmul.f32 %v5972_v20, %v8715_v59 }
 0x910   : > { %v4241_v8 = vpop.xlane.xlu0 %4240 }
 0x911   : > { %4487 = vst [vmem:[%s8820_s22 + $0x68] sm:$0xff] %v4455_v14  ;;  %v4419_v21 = vmul.f32 %v8807_v15, %v4382_v23  ;;  %v4288_v3 = vmul.f32 0.0078125, %v4241_v8 }
 0x912   : > { %v5974_v63 = vpop.eup %5973 }
 0x913   : > { %v4456_v1 = vadd.f32 %v8813_v2, %v4419_v21  ;;  %v4383_v38 = vmul.f32 %v5974_v63, %v8720_v13  ;;  %v4320_v43 = vadd.f32 1e-05, %v4288_v3 }
 0x914   : > { %v4243_v36 = vpop.xlane.xlu1 %4242 }
 0x915   : > { %4488 = vst [vmem:[%s8820_s22 + $0x70] sm:$0xff] %v4456_v1  ;;  %v4420_v51 = vmul.f32 %v8807_v15, %v4383_v38  ;;  %5975 = vrsqrt.f32 %v4320_v43  ;;  %v4289_v12 = vmul.f32 0.0078125, %v4243_v36 }
 0x917   : > { %v4457_v59 = vadd.f32 %v8813_v2, %v4420_v51  ;;  %v4321_v29 = vadd.f32 1e-05, %v4289_v12 }
 0x918   : > { %v4245_v50 = vpop.xlane.xlu0 %4244 }
 0x919   : > { %4489 = vst [vmem:[%s8820_s22 + $0x78] sm:$0xff] %v4457_v59  ;;  %5977 = vrsqrt.f32 %v4321_v29  ;;  %v4290_v39 = vmul.f32 0.0078125, %v4245_v50 }
 0x91b   : > { %v4322_v45 = vadd.f32 1e-05, %v4290_v39 }
 0x91c   : > { %v4247_v10 = vpop.xlane.xlu1 %4246 }
 0x91d   : > { %5979 = vrsqrt.f32 %v4322_v45  ;;  %v4291_v6 = vmul.f32 0.0078125, %v4247_v10 }
 0x91f   : > { %v5976_v13 = vpop.eup %5975  ;;  %v4323_v28 = vadd.f32 1e-05, %v4291_v6 }
 0x920   : > { %v4384_v53 = vmul.f32 %v5976_v13, %v8725_v56  ;;  %v4249_v52 = vpop.xlane.xlu0 %4248 }
 0x921   : > { %5981 = vrsqrt.f32 %v4323_v28  ;;  %v4292_v58 = vmul.f32 0.0078125, %v4249_v52 }
 0x922   : > { %v4421_v25 = vmul.f32 %v8807_v15, %v4384_v53 }
 0x923   : > { %v5978_v44 = vpop.eup %5977  ;;  %v4324_v42 = vadd.f32 1e-05, %v4292_v58 }
 0x924   : > { %v4458_v5 = vadd.f32 %v8813_v2, %v4421_v25  ;;  %v4385_v0 = vmul.f32 %v5978_v44, %v8730_v48  ;;  %v4251_v55 = vpop.xlane.xlu1 %4250 }
 0x925   : > { %5983 = vrsqrt.f32 %v4324_v42  ;;  %v4293_v33 = vmul.f32 0.0078125, %v4251_v55 }
 0x926   : > { %4490 = vst [vmem:[%s8820_s22 + $0x80] sm:$0xff] %v4458_v5  ;;  %v4422_v60 = vmul.f32 %v8807_v15, %v4385_v0 }
 0x927   : > { %v5980_v19 = vpop.eup %5979  ;;  %v4325_v56 = vadd.f32 1e-05, %v4293_v33 }
 0x928   : > { %v4459_v41 = vadd.f32 %v8813_v2, %v4422_v60  ;;  %v4386_v34 = vmul.f32 %v5980_v19, %v8735_v61  ;;  %v4253_v11 = vpop.xlane.xlu0 %4252 }
 0x929   : > { %5985 = vrsqrt.f32 %v4325_v56  ;;  %v4294_v40 = vmul.f32 0.0078125, %v4253_v11 }
 0x92a   : > { %4491 = vst [vmem:[%s8820_s22 + $0x88] sm:$0xff] %v4459_v41  ;;  %v4423_v46 = vmul.f32 %v8807_v15, %v4386_v34 }
 0x92b   : > { %v5982_v48 = vpop.eup %5981  ;;  %v4326_v35 = vadd.f32 1e-05, %v4294_v40 }
 0x92c   : > { %v4460_v7 = vadd.f32 %v8813_v2, %v4423_v46  ;;  %v4387_v57 = vmul.f32 %v5982_v48, %v8740_v9  ;;  %v4255_v26 = vpop.xlane.xlu1 %4254 }
 0x92d   : > { %5987 = vrsqrt.f32 %v4326_v35  ;;  %v4295_v18 = vmul.f32 0.0078125, %v4255_v26 }
 0x92e   : > { %4492 = vst [vmem:[%s8820_s22 + $0x90] sm:$0xff] %v4460_v7  ;;  %v4424_v32 = vmul.f32 %v8807_v15, %v4387_v57 }
 0x92f   : > { %v5984_v61 = vpop.eup %5983  ;;  %v4327_v31 = vadd.f32 1e-05, %v4295_v18 }
 0x930   : > { %v4461_v20 = vadd.f32 %v8813_v2, %v4424_v32  ;;  %v4388_v14 = vmul.f32 %v5984_v61, %v8745_v30  ;;  %v4257_v23 = vpop.xlane.xlu0 %4256 }
 0x931   : > { %5989 = vrsqrt.f32 %v4327_v31  ;;  %v4296_v8 = vmul.f32 0.0078125, %v4257_v23 }
 0x932   : > { %4493 = vst [vmem:[%s8820_s22 + $0x98] sm:$0xff] %v4461_v20  ;;  %v4425_v21 = vmul.f32 %v8807_v15, %v4388_v14 }
 0x933   : > { %v5986_v9 = vpop.eup %5985  ;;  %v4328_v3 = vadd.f32 1e-05, %v4296_v8 }
 0x934   : > { %v4462_v63 = vadd.f32 %v8813_v2, %v4425_v21  ;;  %v4389_v1 = vmul.f32 %v5986_v9, %v8750_v27  ;;  %v4259_v38 = vpop.xlane.xlu1 %4258 }
 0x935   : > { %5991 = vrsqrt.f32 %v4328_v3  ;;  %v4297_v43 = vmul.f32 0.0078125, %v4259_v38 }
 0x936   : > { %4494 = vst [vmem:[%s8820_s22 + $0xa0] sm:$0xff] %v4462_v63  ;;  %v4426_v36 = vmul.f32 %v8807_v15, %v4389_v1 }
 0x937   : > { %v5988_v30 = vpop.eup %5987  ;;  %v4329_v51 = vadd.f32 1e-05, %v4297_v43 }
 0x938   : > { %v4463_v12 = vadd.f32 %v8813_v2, %v4426_v36  ;;  %v4390_v59 = vmul.f32 %v5988_v30, %v8755_v37  ;;  %v4261_v29 = vpop.xlane.xlu0 %4260 }
 0x939   : > { %5993 = vrsqrt.f32 %v4329_v51  ;;  %v4298_v50 = vmul.f32 0.0078125, %v4261_v29 }
 0x93a   : > { %4495 = vst [vmem:[%s8820_s22 + $0xa8] sm:$0xff] %v4463_v12  ;;  %v4427_v39 = vmul.f32 %v8807_v15, %v4390_v59 }
 0x93b   : > { %v5990_v27 = vpop.eup %5989  ;;  %v4330_v45 = vadd.f32 1e-05, %v4298_v50 }
 0x93c   : > { %v4464_v10 = vadd.f32 %v8813_v2, %v4427_v39  ;;  %v4391_v6 = vmul.f32 %v5990_v27, %v8760_v22  ;;  %v4263_v13 = vpop.xlane.xlu1 %4262 }
 0x93d   : > { %5995 = vrsqrt.f32 %v4330_v45  ;;  %v4299_v28 = vmul.f32 0.0078125, %v4263_v13 }
 0x93e   : > { %4496 = vst [vmem:[%s8820_s22 + $0xb0] sm:$0xff] %v4464_v10  ;;  %v4428_v53 = vmul.f32 %v8807_v15, %v4391_v6 }
 0x93f   : > { %v5992_v37 = vpop.eup %5991  ;;  %v4331_v52 = vadd.f32 1e-05, %v4299_v28 }
 0x940   : > { %v4465_v58 = vadd.f32 %v8813_v2, %v4428_v53  ;;  %v4392_v25 = vmul.f32 %v5992_v37, %v8765_v47  ;;  %v4265_v44 = vpop.xlane.xlu0 %4264 }
 0x941   : > { %5997 = vrsqrt.f32 %v4331_v52  ;;  %v4300_v42 = vmul.f32 0.0078125, %v4265_v44 }
 0x942   : > { %4497 = vst [vmem:[%s8820_s22 + $0xb8] sm:$0xff] %v4465_v58  ;;  %v4429_v5 = vmul.f32 %v8807_v15, %v4392_v25 }
 0x943   : > { %v5994_v22 = vpop.eup %5993  ;;  %v4332_v0 = vadd.f32 1e-05, %v4300_v42 }
 0x944   : > { %v4466_v55 = vadd.f32 %v8813_v2, %v4429_v5  ;;  %v4393_v33 = vmul.f32 %v5994_v22, %v8770_v24  ;;  %v4267_v60 = vpop.xlane.xlu1 %4266 }
 0x945   : > { %5999 = vrsqrt.f32 %v4332_v0  ;;  %v4301_v19 = vmul.f32 0.0078125, %v4267_v60 }
 0x946   : > { %4498 = vst [vmem:[%s8820_s22 + $0xc0] sm:$0xff] %v4466_v55  ;;  %v4430_v56 = vmul.f32 %v8807_v15, %v4393_v33 }
 0x947   : > { %v5996_v47 = vpop.eup %5995  ;;  %v4333_v41 = vadd.f32 1e-05, %v4301_v19 }
 0x948   : > { %v4467_v34 = vadd.f32 %v8813_v2, %v4430_v56  ;;  %v4394_v11 = vmul.f32 %v5996_v47, %v8775_v54  ;;  %v4269_v40 = vpop.xlane.xlu0 %4268 }
 0x949   : > { %6001 = vrsqrt.f32 %v4333_v41  ;;  %v4302_v46 = vmul.f32 0.0078125, %v4269_v40 }
 0x94a   : > { %4499 = vst [vmem:[%s8820_s22 + $0xc8] sm:$0xff] %v4467_v34  ;;  %v4431_v24 = vmul.f32 %v8807_v15, %v4394_v11 }
 0x94b   : > { %v5998_v48 = vpop.eup %5997  ;;  %v4334_v35 = vadd.f32 1e-05, %v4302_v46 }
 0x94c   : > { %v4468_v7 = vadd.f32 %v8813_v2, %v4431_v24  ;;  %v4395_v57 = vmul.f32 %v5998_v48, %v8780_v49  ;;  %v4271_v26 = vpop.xlane.xlu1 %4270 }
 0x94d   : > { %6003 = vrsqrt.f32 %v4334_v35  ;;  %v4303_v18 = vmul.f32 0.0078125, %v4271_v26 }
 0x94e   : > { %4500 = vst [vmem:[%s8820_s22 + $0xd0] sm:$0xff] %v4468_v7  ;;  %v4432_v54 = vmul.f32 %v8807_v15, %v4395_v57 }
 0x94f   : > { %v6000_v32 = vpop.eup %5999  ;;  %v4335_v61 = vadd.f32 1e-05, %v4303_v18 }
 0x950   : > { %v4469_v31 = vadd.f32 %v8813_v2, %v4432_v54  ;;  %v4396_v20 = vmul.f32 %v6000_v32, %v8785_v16 }
 0x951   : > { %6005 = vrsqrt.f32 %v4335_v61 }
 0x952   : > { %4501 = vst [vmem:[%s8820_s22 + $0xd8] sm:$0xff] %v4469_v31  ;;  %v4433_v14 = vmul.f32 %v8807_v15, %v4396_v20 }
 0x953   : > { %v6002_v49 = vpop.eup %6001 }
 0x954   : > { %v4470_v23 = vadd.f32 %v8813_v2, %v4433_v14  ;;  %v4397_v8 = vmul.f32 %v6002_v49, %v8790_v17 }
 0x956   : > { %4502 = vst [vmem:[%s8820_s22 + $0xe0] sm:$0xff] %v4470_v23  ;;  %v4434_v21 = vmul.f32 %v8807_v15, %v4397_v8 }
 0x957   : > { %v6004_v9 = vpop.eup %6003 }
 0x958   : > { %v4471_v3 = vadd.f32 %v8813_v2, %v4434_v21  ;;  %v4398_v16 = vmul.f32 %v6004_v9, %v8795_v4 }
 0x95a   : > { %4503 = vst [vmem:[%s8820_s22 + $0xe8] sm:$0xff] %v4471_v3  ;;  %v4435_v63 = vmul.f32 %v8807_v15, %v4398_v16 }
 0x95b   : > { %v6006_v1 = vpop.eup %6005 }
 0x95c   : > { %v4472_v38 = vadd.f32 %v8813_v2, %v4435_v63  ;;  %v4399_v43 = vmul.f32 %v6006_v1, %v8800_v62 }
 0x95e   : > { %4504 = vst [vmem:[%s8820_s22 + $0xf0] sm:$0xff] %v4472_v38  ;;  %v4436_v36 = vmul.f32 %v8807_v15, %v4399_v43 }
 0x960   : > { %v4473_v17 = vadd.f32 %v8813_v2, %v4436_v36 }
 0x962   : > { %4505 = vst [vmem:[%s8820_s22 + $0xf8] sm:$0xff] %v4473_v17 }
 0x963   : > { %s9087_s11 = sld [smem:[#allocation23_spill]]  ;;  %s4745_s29 = sshll.u32 %s6272_s17, 11 }
 0x964   : > { %s4536_s12 = sshll.u32 %s8820_s22, 4  ;;  %s9088_s7 = sld [smem:[#allocation52_spill]]  ;;  %s4537_s12 = int_to_ptr.vmem [resolvable:$true] %s4536_s12 }
 0x965   : > { %s6189_s3 = smov 2048   ;;  %s6190_s26 = smov 4096  }
 0x966   : > { %s6191_s25 = smov 16   ;;  %s6192_s30 = smov 128  }
 0x967   : > { %s6193_s17 = smov 8   ;;  %s6194_s19 = smov [#allocation13]  }
 0x968   : > { %s6195_s21 = smov 0  }
 0x969   : > { %p9089_p0 = scmp.ne.s32.totalorder %s9087_s11, 0 }
 0x96a   : > { %s4519_s13 = scalar_lea.hbm %s9088_s7, %s4745_s29 }
 0x96b   : > { %5602 = sst [smem:[#allocation14]] (%p9089_p0), %s6189_s3 }
 0x96c   : > { %5603 = sst [smem:[#allocation14 + $0x1]] (%p9089_p0), %s6190_s26 }
 0x96d   : > { %5604 = sst [smem:[#allocation14 + $0x2]] (%p9089_p0), %s6191_s25 }
 0x96e   : > { %5605 = sst [smem:[#allocation14 + $0x3]] (%p9089_p0), %s6192_s30 }
 0x96f   : > { %5606 = sst [smem:[#allocation14 + $0x4]] (%p9089_p0), %s6192_s30 }
 0x970   : > { %5607 = sst [smem:[#allocation14 + $0x5]] (%p9089_p0), %s6193_s17 }
 0x971   : > { %5608 = dma.general (%p9089_p0), %s4537_s12, 4096, %s4519_s13, %s4507_s20, %s6194_s19, [#allocation14], %s6195_s21, 0  }
 0x972 PF: > { %s9090_s23 = sld [smem:[#allocation20_spill]]  ;;  %s9091_s24 = sld [smem:[#allocation24_spill]] }
 0x978   : > { %s4564_s27 = sand.u32 1, %s9090_s23   ;;  %p9092_p7 = scmp.ne.s32.totalorder %s9091_s24, 0 }
 0x979   : > { %s4565_s28 = scalar_lea.sflag [#allocation4], %s4564_s27 }
 0x97a   : > { %p5621_p8 = pnand %p4656_p4, %p9092_p7 }
 0x97c   : > { %6153 = dma.done.wait (!%p5621_p8), %s4565_s28, 4096  }
 0x97d   : > { %6155 = vsyncadd (!%p5621_p8), %s4565_s28, 4294963200  ;;  %s9093_s16 = sld [smem:[#allocation21_spill]]  ;;  %s9094_s22 = sld [smem:[#allocation22_spill]] }
 0x97e   : > { %s9095_s13 = smov %s6162_s14  ;;  %s9096_s14 = smov %s6166_s15 }
 0x983   : > { %p25_p9 = scmp.ge.s32.totalorder %s9093_s16, 4   ;;  %s9097_s15 = smov %s9094_s22 }
 0x985   :  { %27 = sbr.rel (!%p25_p9) target bundleno = 11 (0xb), region = 127 }
 0x98c   :  { %4570 = vsyncpa [#allocation3], 1 }
 0x98d   :  { %4572 = vsyncpa [#allocation3 + $0x1], 1 }
 0x98e   :  { %4573 = vsyncpa [#allocation6], 1 }
 0x98f   :  { %4574 = vsyncpa [#allocation9], 1 }
 0x990   :  { %4575 = vsyncpa [#allocation4], 1 }
 0x991   :  { %4577 = vsyncpa [#allocation4 + $0x1], 1 }

</bundles_post_ra>
